<compile_context>
chip_gen: v7x
topology: tpu7x:2x2x1
jax: 0.10.0
libtpu: 0.0.40
codegen_flags: <defaults>
</compile_context>

<pallas_src>
import functools
import math

import jax
import jax.numpy as jnp
from jax import lax
from jax.experimental import pallas as pl
from jax.experimental.pallas import tpu as pltpu


# ---------------------------------------------------------------------------
# Kernel 1: fused QKV projection  y = x @ W + b  with RoPE epilogue.
#   * q heads: rotate + fold in the logit scale
#   * k heads: rotate
#   * v heads: passthrough
# RoPE is applied in the de-interleaved basis ([even dims | odd dims] per
# head); that permutation was folded into the weight columns by the wrapper,
# so rotation is x*cos_full + roll(x, D/2)*[-sin, sin].
# ---------------------------------------------------------------------------
def _qkv_rope_kernel(x_ref, w_ref, b_ref, cos_ref, sin_ref, o_ref, acc_ref,
                     *, n_q, n_kv, D, scale):
    kk = pl.program_id(1)

    @pl.when(kk == 0)
    def _():
        acc_ref[...] = jnp.zeros(acc_ref.shape, acc_ref.dtype)

    acc_ref[...] += jnp.dot(x_ref[...], w_ref[...],
                            preferred_element_type=jnp.float32)

    @pl.when(kk == pl.num_programs(1) - 1)
    def _():
        y = acc_ref[...] + b_ref[...]
        cos = cos_ref[...]
        sin = sin_ref[...]
        for h in range(n_q):                      # q heads: rotate + scale
            sl = slice(h * D, (h + 1) * D)
            qh = y[:, sl]
            qh = (qh * cos + pltpu.roll(qh, shift=D // 2, axis=1) * sin) * scale
            o_ref[:, sl] = qh.astype(o_ref.dtype)
        for h in range(n_kv):                     # k heads: rotate
            sl = slice((n_q + h) * D, (n_q + h + 1) * D)
            kh = y[:, sl]
            kh = kh * cos + pltpu.roll(kh, shift=D // 2, axis=1) * sin
            o_ref[:, sl] = kh.astype(o_ref.dtype)
        v0 = (n_q + n_kv) * D                     # v heads: passthrough
        o_ref[:, v0:] = y[:, v0:].astype(o_ref.dtype)


def qkv_rope_pallas(x2d, w, b, cos_t, sin_t, *, seq_len, n_q, n_kv, D, scale,
                    tm=128, tkw=256):
    """x2d: (B*T, K) bf16, w: (K, N) bf16 (RoPE-permuted cols), b: (N,) f32,
    cos_t/sin_t: (T, D) f32.  Returns (B*T, N) bf16 with q scaled & q/k rotated."""
    M, K = x2d.shape
    N = w.shape[1]
    tm = min(tm, seq_len)                         # raise to 256 on v6e/v7x when T allows
    assert seq_len % tm == 0 and M % seq_len == 0, "tm must divide T"
    tkw = min(tkw, K)
    assert K % tkw == 0, "tkw must divide K"
    pos_blocks = seq_len // tm

    kernel = functools.partial(_qkv_rope_kernel, n_q=n_q, n_kv=n_kv, D=D,
                               scale=scale)
    return pl.pallas_call(
        kernel,
        out_shape=jax.ShapeDtypeStruct((M, N), jnp.bfloat16),
        grid_spec=pltpu.PrefetchScalarGridSpec(
            num_scalar_prefetch=0,
            grid=(M // tm, K // tkw),
            in_specs=[
                pl.BlockSpec((tm, tkw), lambda i, k: (i, k)),
                pl.BlockSpec((tkw, N), lambda i, k: (k, 0)),
                pl.BlockSpec((1, N), lambda i, k: (0, 0)),
                pl.BlockSpec((tm, D), lambda i, k: (i % pos_blocks, 0)),
                pl.BlockSpec((tm, D), lambda i, k: (i % pos_blocks, 0)),
            ],
            out_specs=pl.BlockSpec((tm, N), lambda i, k: (i, 0)),
            scratch_shapes=[pltpu.VMEM((tm, N), jnp.float32)],
        ),
        compiler_params=pltpu.CompilerParams(
            dimension_semantics=("parallel", "arbitrary")),
    )(x2d, w, b.reshape(1, N), cos_t, sin_t)


# ---------------------------------------------------------------------------
# Kernel 2: generic linear  y = x @ W + b  (K-tiled, f32 accumulator).
# ---------------------------------------------------------------------------
def _linear_kernel(x_ref, w_ref, b_ref, o_ref, acc_ref):
    kk = pl.program_id(1)

    @pl.when(kk == 0)
    def _():
        acc_ref[...] = jnp.zeros(acc_ref.shape, acc_ref.dtype)

    acc_ref[...] += jnp.dot(x_ref[...], w_ref[...],
                            preferred_element_type=jnp.float32)

    @pl.when(kk == pl.num_programs(1) - 1)
    def _():
        o_ref[...] = (acc_ref[...] + b_ref[...]).astype(o_ref.dtype)


def linear_pallas(x2d, w, b, *, out_dtype=jnp.float32, tm=256, tkw=256):
    """x2d: (M, K) bf16, w: (K, N) bf16, b: (N,) f32 -> (M, N) out_dtype."""
    M, K = x2d.shape
    N = w.shape[1]
    tm = max(8, min(tm, M))
    tkw = min(tkw, K)
    assert K % tkw == 0, "tkw must divide K"
    Mp = (-(-M // tm)) * tm
    if Mp != M:
        x2d = jnp.pad(x2d, ((0, Mp - M), (0, 0)))

    out = pl.pallas_call(
        _linear_kernel,
        out_shape=jax.ShapeDtypeStruct((Mp, N), out_dtype),
        grid_spec=pltpu.PrefetchScalarGridSpec(
            num_scalar_prefetch=0,
            grid=(Mp // tm, K // tkw),
            in_specs=[
                pl.BlockSpec((tm, tkw), lambda i, k: (i, k)),
                pl.BlockSpec((tkw, N), lambda i, k: (k, 0)),
                pl.BlockSpec((1, N), lambda i, k: (0, 0)),
            ],
            out_specs=pl.BlockSpec((tm, N), lambda i, k: (i, 0)),
            scratch_shapes=[pltpu.VMEM((tm, N), jnp.float32)],
        ),
        compiler_params=pltpu.CompilerParams(
            dimension_semantics=("parallel", "arbitrary")),
    )(x2d, w, b.reshape(1, N))
    return out[:M]


# ---------------------------------------------------------------------------
# Kernel 3: causal GQA flash attention (online softmax).
#   Grid = (B, H, pair) where `pair` enumerates only causal (qi, ki<=qi) tile
#   pairs via scalar-prefetched tables (no wasted K/V DMA).  q/k/v are read
#   straight out of the (B, T, heads*D) qkv tensor through last-dim block
#   indices; RoPE and the logit scale were already folded into q/k upstream.
# ---------------------------------------------------------------------------
def _attn_kernel(qtab_ref, ktab_ref, q_ref, k_ref, v_ref, o_ref,
                 m_sc, l_sc, acc_sc):
    p = pl.program_id(2)
    qb = qtab_ref[p]
    kb = ktab_ref[p]
    tq, D = q_ref.shape
    tk = k_ref.shape[0]

    @pl.when(kb == 0)
    def _():
        m_sc[...] = jnp.full(m_sc.shape, -jnp.inf, m_sc.dtype)
        l_sc[...] = jnp.zeros(l_sc.shape, l_sc.dtype)
        acc_sc[...] = jnp.zeros(acc_sc.shape, acc_sc.dtype)

    # logits: bf16 MXU operands, f32 accumulation (scale already folded into q)
    s = lax.dot_general(q_ref[...], k_ref[...],
                        (((1,), (1,)), ((), ())),
                        preferred_element_type=jnp.float32)

    def update(logits):
        m_new = jnp.maximum(m_sc[...], logits.max(axis=-1, keepdims=True))
        alpha = jnp.exp(m_sc[...] - m_new)
        prob = jnp.exp(logits - m_new)
        l_sc[...] = alpha * l_sc[...] + prob.sum(axis=-1, keepdims=True)
        acc_sc[...] = alpha * acc_sc[...] + jnp.dot(
            prob.astype(jnp.bfloat16), v_ref[...],
            preferred_element_type=jnp.float32)
        m_sc[...] = m_new

    # interior tiles (kb < qb) are fully below the diagonal -> no mask at all
    @pl.when(kb < qb)
    def _():
        update(s)

    # diagonal tile (kb == qb): build the mask here only; it is also always
    # the last kv step for this q tile (pairs enumerate ki ascending), so
    # finalize and write the output.
    @pl.when(kb == qb)
    def _():
        row = lax.broadcasted_iota(jnp.int32, (tq, tk), 0)
        col = lax.broadcasted_iota(jnp.int32, (tq, tk), 1)
        update(jnp.where(col <= row, s, -1e30))
        o_ref[...] = (acc_sc[...] *
                      pl.reciprocal(l_sc[...], approx=True)).astype(o_ref.dtype)


def flash_attention_pallas(qkv, *, B, T, n_head, n_kv_head, head_dim, tile=128):
    """qkv: (B, T, (n_head + 2*n_kv_head)*D) bf16, q/k already rotated/scaled.
    Returns (B, T, n_head*D) bf16."""
    D = head_dim
    group = n_head // n_kv_head
    tile = min(tile, T)                  # raise to 256 on v6e/v7x for MXU fill
    assert T % tile == 0, "sequence length must tile evenly"
    nq = T // tile

    # Enumerate only the causal (qi, ki <= qi) tile pairs.
    q_idx, k_idx = [], []
    for qi in range(nq):
        for ki in range(qi + 1):
            q_idx.append(qi)
            k_idx.append(ki)
    q_tab = jnp.asarray(q_idx, dtype=jnp.int32)
    k_tab = jnp.asarray(k_idx, dtype=jnp.int32)
    npairs = len(q_idx)

    q_spec = pl.BlockSpec(
        (None, tile, D), lambda b, h, p, qt, kt: (b, qt[p], h))
    k_spec = pl.BlockSpec(
        (None, tile, D),
        lambda b, h, p, qt, kt: (b, kt[p], n_head + h // group))
    v_spec = pl.BlockSpec(
        (None, tile, D),
        lambda b, h, p, qt, kt: (b, kt[p], n_head + n_kv_head + h // group))
    o_spec = pl.BlockSpec(
        (None, tile, D), lambda b, h, p, qt, kt: (b, qt[p], h))

    return pl.pallas_call(
        _attn_kernel,
        out_shape=jax.ShapeDtypeStruct((B, T, n_head * D), jnp.bfloat16),
        grid_spec=pltpu.PrefetchScalarGridSpec(
            num_scalar_prefetch=2,
            grid=(B, n_head, npairs),
            in_specs=[q_spec, k_spec, v_spec],
            out_specs=o_spec,
            scratch_shapes=[
                pltpu.VMEM((tile, 1), jnp.float32),   # running max
                pltpu.VMEM((tile, 1), jnp.float32),   # running denominator
                pltpu.VMEM((tile, D), jnp.float32),   # output accumulator
            ],
        ),
        compiler_params=pltpu.CompilerParams(
            dimension_semantics=("parallel", "parallel", "arbitrary")),
    )(q_tab, k_tab, qkv, qkv, qkv)


# ---------------------------------------------------------------------------
# Full module wrapper
# ---------------------------------------------------------------------------
def causal_self_attention_pallas(x, w_qkv, b_qkv, w_out, b_out, rope_cache,
                                 *, n_head, n_kv_head):
    """x: (B, T, C).  Weights stored as (in, out) = PyTorch weight.T."""
    B, T, C = x.shape
    D = C // n_head
    assert n_head % n_kv_head == 0
    q_dim = n_head * D
    kv_dim = n_kv_head * D

    # Fold the RoPE de-interleave permutation ([even dims | odd dims] within
    # each q/k head) into the QKV weight/bias columns.  Attention logits are
    # invariant under a shared head-dim permutation of q and k; v is left in
    # the original layout so the attention output feeds out_proj unchanged.
    half = jnp.arange(0, D, 2)
    perm_head = jnp.concatenate([half, half + 1])
    q_cols = (jnp.arange(n_head)[:, None] * D + perm_head[None, :]).reshape(-1)
    k_cols = q_dim + (jnp.arange(n_kv_head)[:, None] * D
                      + perm_head[None, :]).reshape(-1)
    v_cols = q_dim + kv_dim + jnp.arange(kv_dim)
    col_perm = jnp.concatenate([q_cols, k_cols, v_cols])
    w_qkv_p = w_qkv[:, col_perm].astype(jnp.bfloat16)
    b_qkv_p = b_qkv[col_perm].astype(jnp.float32)

    # Module rope_cache layout: even cols = sin, odd cols = cos.
    sin = rope_cache[:T, 0::2]
    cos = rope_cache[:T, 1::2]
    cos_full = jnp.concatenate([cos, cos], axis=-1).astype(jnp.float32)
    sin_signed = jnp.concatenate([-sin, sin], axis=-1).astype(jnp.float32)

    # NOTE: the PyTorch module scales q by 1/sqrt(D) *and* SDPA applies its
    # default 1/sqrt(D) again -> net logit scale 1/D, folded into q here.
    scale = 1.0 / float(D)

    x2d = x.reshape(B * T, C).astype(jnp.bfloat16)
    qkv = qkv_rope_pallas(x2d, w_qkv_p, b_qkv_p, cos_full, sin_signed,
                          seq_len=T, n_q=n_head, n_kv=n_kv_head, D=D,
                          scale=scale)
    qkv = qkv.reshape(B, T, -1)          # (B, T, (H+2*KVH)*D); no transpose

    y = flash_attention_pallas(qkv, B=B, T=T, n_head=n_head,
                               n_kv_head=n_kv_head, head_dim=D)

    y2d = y.reshape(B * T, C)            # heads already contiguous; no transpose
    out = linear_pallas(y2d, w_out.astype(jnp.bfloat16),
                        b_out.astype(jnp.float32), out_dtype=jnp.float32)
    # TODO(synk): resid_drop with p=0.0 is the identity (eval semantics).
    return out.reshape(B, T, C)


# ---------------------------------------------------------------------------
# Pure-JAX f32 reference mirroring the PyTorch module
# ---------------------------------------------------------------------------
def reference_attention(x, w_qkv, b_qkv, w_out, b_out, rope_cache,
                        *, n_head, n_kv_head):
    B, T, C = x.shape
    D = C // n_head
    q_dim = n_head * D
    kv_dim = n_kv_head * D
    qkv = jnp.einsum("btc,cn->btn", x, w_qkv) + b_qkv
    q = qkv[..., :q_dim].reshape(B, T, n_head, D).transpose(0, 2, 1, 3)
    k = qkv[..., q_dim:q_dim + kv_dim].reshape(B, T, n_kv_head, D).transpose(0, 2, 1, 3)
    v = qkv[..., q_dim + kv_dim:].reshape(B, T, n_kv_head, D).transpose(0, 2, 1, 3)
    if n_kv_head < n_head:
        rep = n_head // n_kv_head
        k = jnp.repeat(k, rep, axis=1)
        v = jnp.repeat(v, rep, axis=1)

    def apply_rope(t):
        s = rope_cache[:T, 0::2]
        c = rope_cache[:T, 1::2]
        t0 = t[..., 0::2]
        t1 = t[..., 1::2]
        o0 = t0 * c - t1 * s
        o1 = t1 * c + t0 * s
        out = jnp.zeros_like(t)
        out = out.at[..., 0::2].set(o0)
        out = out.at[..., 1::2].set(o1)
        return out

    q = apply_rope(q)
    k = apply_rope(k)
    q = q * (1.0 / math.sqrt(D))
    s = jnp.einsum("bhqd,bhkd->bhqk", q, k) * (1.0 / math.sqrt(D))
    mask = jnp.tril(jnp.ones((T, T), dtype=bool))
    s = jnp.where(mask, s, -jnp.inf)
    p = jax.nn.softmax(s, axis=-1)
    y = jnp.einsum("bhqk,bhkd->bhqd", p, v)
    y = y.transpose(0, 2, 1, 3).reshape(B, T, C)
    return jnp.einsum("btc,cd->btd", y, w_out) + b_out


if __name__ == "__main__":
    # GQA config: n_head=4, n_kv_head=2, head_dim=128 (lane-dense), n_embd=512,
    # T=256 (so the causal-pair enumeration / accumulation paths are exercised).
    B, T = 2, 256
    n_head, n_kv_head = 4, 2
    n_embd = 512
    D = n_embd // n_head
    qkv_dim = (n_head + 2 * n_kv_head) * D

    key = jax.random.PRNGKey(0)
    kx, k1, k2, k3, k4 = jax.random.split(key, 5)
    x = jax.random.normal(kx, (B, T, n_embd), dtype=jnp.float32)
    # parameters stored as (in, out) = PyTorch weight.T, so y = x @ W + b
    w_qkv = jax.random.normal(k1, (n_embd, qkv_dim), dtype=jnp.float32) * 0.02
    b_qkv = jax.random.normal(k2, (qkv_dim,), dtype=jnp.float32) * 0.02
    w_out = jax.random.normal(k3, (n_embd, n_embd), dtype=jnp.float32) * 0.02
    b_out = jax.random.normal(k4, (n_embd,), dtype=jnp.float32) * 0.02

    # rope_cache[t, 2i] = sin(t * f_i), rope_cache[t, 2i+1] = cos(t * f_i)
    rope_scaling = 10000.0
    inv_freq = 1.0 / (rope_scaling ** (jnp.arange(0, D, 2, dtype=jnp.float32) / D))
    ang = jnp.arange(T, dtype=jnp.float32)[:, None] * inv_freq[None, :]
    rope_cache = jnp.zeros((T, D), dtype=jnp.float32)
    rope_cache = rope_cache.at[:, 0::2].set(jnp.sin(ang))
    rope_cache = rope_cache.at[:, 1::2].set(jnp.cos(ang))

    out = causal_self_attention_pallas(
        x, w_qkv, b_qkv, w_out, b_out, rope_cache,
        n_head=n_head, n_kv_head=n_kv_head)
    out = jax.block_until_ready(out)

    ref = reference_attention(
        x, w_qkv, b_qkv, w_out, b_out, rope_cache,
        n_head=n_head, n_kv_head=n_kv_head)
    assert out.shape == (B, T, n_embd)
    max_err = float(jnp.max(jnp.abs(out - ref)))
    # bf16 MXU operands / bf16 intermediate activations with f32 accumulation
    # -> tolerance loosened vs a pure-f32 pipeline.
    assert jnp.allclose(out, ref, atol=3e-2, rtol=3e-2), \
        f"mismatch, max abs err={max_err}"

    print("KERNEL_OK")
</pallas_src>

<mosaic_0001>
module attributes {stable_mosaic.version = 11 : i64} {
  func.func @_qkv_rope_kernel(%arg0: i32, %arg1: i32, %arg2: memref<128x256xbf16, #tpu.memory_space<vmem>>, %arg3: memref<256x1024xbf16, #tpu.memory_space<vmem>>, %arg4: memref<1x1024xf32, #tpu.memory_space<vmem>>, %arg5: memref<128x128xf32, #tpu.memory_space<vmem>>, %arg6: memref<128x128xf32, #tpu.memory_space<vmem>>, %arg7: memref<128x1024xbf16, #tpu.memory_space<vmem>>, %arg8: memref<128x1024xf32, #tpu.memory_space<vmem>>) attributes {dimension_semantics = [#tpu.dimension_semantics<parallel>, #tpu.dimension_semantics<arbitrary>], iteration_bounds = array<i64: 4, 2>, scalar_prefetch = 0 : i64, scratch_operands = 1 : i64, tpu.core_type = #tpu.core_type<tc>, window_params = [{transform_indices = @transform_0, window_bounds = array<i64: 128, 256>}, {transform_indices = @transform_1, window_bounds = array<i64: 256, 1024>}, {pipeline_mode = #tpu.pipeline_mode<synchronous>, transform_indices = @transform_2, window_bounds = array<i64: 1, 1024>}, {transform_indices = @transform_3, window_bounds = array<i64: 128, 128>}, {transform_indices = @transform_4, window_bounds = array<i64: 128, 128>}, {transform_indices = @transform_5, window_bounds = array<i64: 128, 1024>}]} {
    %c0_i32 = arith.constant 0 : i32
    %0 = arith.cmpi eq, %arg1, %c0_i32 : i32
    %1 = arith.extui %0 : i1 to i32
    %c0_i32_0 = arith.constant 0 : i32
    %2 = arith.cmpi ne, %1, %c0_i32_0 : i32
    scf.if %2 {
      %cst_9 = arith.constant 0.000000e+00 : f32
      %12 = vector.broadcast %cst_9 : f32 to vector<128x1024xf32>
      %c0_10 = arith.constant 0 : index
      %c0_11 = arith.constant 0 : index
      %13 = vector.load %arg8[%c0_10, %c0_11] : memref<128x1024xf32, #tpu.memory_space<vmem>>, vector<128x1024xf32>
      tpu.vector_store %arg8[%c0_10, %c0_11], %12 {strides = array<i32>} : memref<128x1024xf32, #tpu.memory_space<vmem>>, vector<128x1024xf32>,
    } else {
    }
    %c0 = arith.constant 0 : index
    %c0_1 = arith.constant 0 : index
    %3 = vector.load %arg8[%c0, %c0_1] : memref<128x1024xf32, #tpu.memory_space<vmem>>, vector<128x1024xf32>
    %c0_2 = arith.constant 0 : index
    %c0_3 = arith.constant 0 : index
    %4 = vector.load %arg2[%c0_2, %c0_3] : memref<128x256xbf16, #tpu.memory_space<vmem>>, vector<128x256xbf16>
    %c0_4 = arith.constant 0 : index
    %c0_5 = arith.constant 0 : index
    %5 = vector.load %arg3[%c0_4, %c0_5] : memref<256x1024xbf16, #tpu.memory_space<vmem>>, vector<256x1024xbf16>
    %cst = arith.constant dense<0.000000e+00> : vector<128x1024xf32>
    %6 = tpu.matmul %4, %5, %cst {dimension_numbers = #tpu.dot_dimension_numbers<[1], [0], [0], [1], [0, 0, 1, 1], [], []>} : vector<128x256xbf16>, vector<256x1024xbf16>, vector<128x1024xf32> -> vector<128x1024xf32>
    %7 = arith.addf %3, %6 : vector<128x1024xf32>
    %c0_6 = arith.constant 0 : index
    %c0_7 = arith.constant 0 : index
    %8 = vector.load %arg8[%c0_6, %c0_7] : memref<128x1024xf32, #tpu.memory_space<vmem>>, vector<128x1024xf32>
    tpu.vector_store %arg8[%c0_6, %c0_7], %7 {strides = array<i32>} : memref<128x1024xf32, #tpu.memory_space<vmem>>, vector<128x1024xf32>,
    %c1_i32 = arith.constant 1 : i32
    %9 = arith.cmpi eq, %arg1, %c1_i32 : i32
    %10 = arith.extui %9 : i1 to i32
    %c0_i32_8 = arith.constant 0 : i32
    %11 = arith.cmpi ne, %10, %c0_i32_8 : i32
    scf.if %11 {
      %c0_9 = arith.constant 0 : index
      %c0_10 = arith.constant 0 : index
      %12 = vector.load %arg8[%c0_9, %c0_10] : memref<128x1024xf32, #tpu.memory_space<vmem>>, vector<128x1024xf32>
      %c0_11 = arith.constant 0 : index
      %c0_12 = arith.constant 0 : index
      %13 = vector.load %arg4[%c0_11, %c0_12] : memref<1x1024xf32, #tpu.memory_space<vmem>>, vector<1x1024xf32>
      %14 = vector.broadcast %13 : vector<1x1024xf32> to vector<128x1024xf32>
      %15 = arith.addf %12, %14 : vector<128x1024xf32>
      %c0_13 = arith.constant 0 : index
      %c0_14 = arith.constant 0 : index
      %16 = vector.load %arg5[%c0_13, %c0_14] : memref<128x128xf32, #tpu.memory_space<vmem>>, vector<128x128xf32>
      %c0_15 = arith.constant 0 : index
      %c0_16 = arith.constant 0 : index
      %17 = vector.load %arg6[%c0_15, %c0_16] : memref<128x128xf32, #tpu.memory_space<vmem>>, vector<128x128xf32>
      %18 = vector.extract_strided_slice %15 {offsets = [0, 0], sizes = [128, 128], strides = [1, 1]} : vector<128x1024xf32> to vector<128x128xf32>
      %19 = arith.mulf %18, %16 : vector<128x128xf32>
      %c64_i32 = arith.constant 64 : i32
      %20 = tpu.dynamic_rotate %18 by %c64_i32 dim 1 : vector<128x128xf32>, i32 -> vector<128x128xf32>
      %21 = arith.mulf %20, %17 : vector<128x128xf32>
      %22 = arith.addf %19, %21 : vector<128x128xf32>
      %cst_17 = arith.constant 7.812500e-03 : f32
      %23 = vector.broadcast %cst_17 : f32 to vector<128x128xf32>
      %24 = arith.mulf %22, %23 : vector<128x128xf32>
      %25 = arith.truncf %24 : vector<128x128xf32> to vector<128x128xbf16>
      %c0_18 = arith.constant 0 : index
      %c0_19 = arith.constant 0 : index
      %26 = vector.load %arg7[%c0_18, %c0_19] : memref<128x1024xbf16, #tpu.memory_space<vmem>>, vector<128x128xbf16>
      tpu.vector_store %arg7[%c0_18, %c0_19], %25 {strides = array<i32>} : memref<128x1024xbf16, #tpu.memory_space<vmem>>, vector<128x128xbf16>,
      %27 = vector.extract_strided_slice %15 {offsets = [0, 128], sizes = [128, 128], strides = [1, 1]} : vector<128x1024xf32> to vector<128x128xf32>
      %28 = arith.mulf %27, %16 : vector<128x128xf32>
      %c64_i32_20 = arith.constant 64 : i32
      %29 = tpu.dynamic_rotate %27 by %c64_i32_20 dim 1 : vector<128x128xf32>, i32 -> vector<128x128xf32>
      %30 = arith.mulf %29, %17 : vector<128x128xf32>
      %31 = arith.addf %28, %30 : vector<128x128xf32>
      %cst_21 = arith.constant 7.812500e-03 : f32
      %32 = vector.broadcast %cst_21 : f32 to vector<128x128xf32>
      %33 = arith.mulf %31, %32 : vector<128x128xf32>
      %34 = arith.truncf %33 : vector<128x128xf32> to vector<128x128xbf16>
      %c0_22 = arith.constant 0 : index
      %c128 = arith.constant 128 : index
      %35 = vector.load %arg7[%c0_22, %c128] : memref<128x1024xbf16, #tpu.memory_space<vmem>>, vector<128x128xbf16>
      tpu.vector_store %arg7[%c0_22, %c128], %34 {strides = array<i32>} : memref<128x1024xbf16, #tpu.memory_space<vmem>>, vector<128x128xbf16>,
      %36 = vector.extract_strided_slice %15 {offsets = [0, 256], sizes = [128, 128], strides = [1, 1]} : vector<128x1024xf32> to vector<128x128xf32>
      %37 = arith.mulf %36, %16 : vector<128x128xf32>
      %c64_i32_23 = arith.constant 64 : i32
      %38 = tpu.dynamic_rotate %36 by %c64_i32_23 dim 1 : vector<128x128xf32>, i32 -> vector<128x128xf32>
      %39 = arith.mulf %38, %17 : vector<128x128xf32>
      %40 = arith.addf %37, %39 : vector<128x128xf32>
      %cst_24 = arith.constant 7.812500e-03 : f32
      %41 = vector.broadcast %cst_24 : f32 to vector<128x128xf32>
      %42 = arith.mulf %40, %41 : vector<128x128xf32>
      %43 = arith.truncf %42 : vector<128x128xf32> to vector<128x128xbf16>
      %c0_25 = arith.constant 0 : index
      %c256 = arith.constant 256 : index
      %44 = vector.load %arg7[%c0_25, %c256] : memref<128x1024xbf16, #tpu.memory_space<vmem>>, vector<128x128xbf16>
      tpu.vector_store %arg7[%c0_25, %c256], %43 {strides = array<i32>} : memref<128x1024xbf16, #tpu.memory_space<vmem>>, vector<128x128xbf16>,
      %45 = vector.extract_strided_slice %15 {offsets = [0, 384], sizes = [128, 128], strides = [1, 1]} : vector<128x1024xf32> to vector<128x128xf32>
      %46 = arith.mulf %45, %16 : vector<128x128xf32>
      %c64_i32_26 = arith.constant 64 : i32
      %47 = tpu.dynamic_rotate %45 by %c64_i32_26 dim 1 : vector<128x128xf32>, i32 -> vector<128x128xf32>
      %48 = arith.mulf %47, %17 : vector<128x128xf32>
      %49 = arith.addf %46, %48 : vector<128x128xf32>
      %cst_27 = arith.constant 7.812500e-03 : f32
      %50 = vector.broadcast %cst_27 : f32 to vector<128x128xf32>
      %51 = arith.mulf %49, %50 : vector<128x128xf32>
      %52 = arith.truncf %51 : vector<128x128xf32> to vector<128x128xbf16>
      %c0_28 = arith.constant 0 : index
      %c384 = arith.constant 384 : index
      %53 = vector.load %arg7[%c0_28, %c384] : memref<128x1024xbf16, #tpu.memory_space<vmem>>, vector<128x128xbf16>
      tpu.vector_store %arg7[%c0_28, %c384], %52 {strides = array<i32>} : memref<128x1024xbf16, #tpu.memory_space<vmem>>, vector<128x128xbf16>,
      %54 = vector.extract_strided_slice %15 {offsets = [0, 512], sizes = [128, 128], strides = [1, 1]} : vector<128x1024xf32> to vector<128x128xf32>
      %55 = arith.mulf %54, %16 : vector<128x128xf32>
      %c64_i32_29 = arith.constant 64 : i32
      %56 = tpu.dynamic_rotate %54 by %c64_i32_29 dim 1 : vector<128x128xf32>, i32 -> vector<128x128xf32>
      %57 = arith.mulf %56, %17 : vector<128x128xf32>
      %58 = arith.addf %55, %57 : vector<128x128xf32>
      %59 = arith.truncf %58 : vector<128x128xf32> to vector<128x128xbf16>
      %c0_30 = arith.constant 0 : index
      %c512 = arith.constant 512 : index
      %60 = vector.load %arg7[%c0_30, %c512] : memref<128x1024xbf16, #tpu.memory_space<vmem>>, vector<128x128xbf16>
      tpu.vector_store %arg7[%c0_30, %c512], %59 {strides = array<i32>} : memref<128x1024xbf16, #tpu.memory_space<vmem>>, vector<128x128xbf16>,
      %61 = vector.extract_strided_slice %15 {offsets = [0, 640], sizes = [128, 128], strides = [1, 1]} : vector<128x1024xf32> to vector<128x128xf32>
      %62 = arith.mulf %61, %16 : vector<128x128xf32>
      %c64_i32_31 = arith.constant 64 : i32
      %63 = tpu.dynamic_rotate %61 by %c64_i32_31 dim 1 : vector<128x128xf32>, i32 -> vector<128x128xf32>
      %64 = arith.mulf %63, %17 : vector<128x128xf32>
      %65 = arith.addf %62, %64 : vector<128x128xf32>
      %66 = arith.truncf %65 : vector<128x128xf32> to vector<128x128xbf16>
      %c0_32 = arith.constant 0 : index
      %c640 = arith.constant 640 : index
      %67 = vector.load %arg7[%c0_32, %c640] : memref<128x1024xbf16, #tpu.memory_space<vmem>>, vector<128x128xbf16>
      tpu.vector_store %arg7[%c0_32, %c640], %66 {strides = array<i32>} : memref<128x1024xbf16, #tpu.memory_space<vmem>>, vector<128x128xbf16>,
      %68 = vector.extract_strided_slice %15 {offsets = [0, 768], sizes = [128, 256], strides = [1, 1]} : vector<128x1024xf32> to vector<128x256xf32>
      %69 = arith.truncf %68 : vector<128x256xf32> to vector<128x256xbf16>
      %c0_33 = arith.constant 0 : index
      %c768 = arith.constant 768 : index
      %70 = vector.load %arg7[%c0_33, %c768] : memref<128x1024xbf16, #tpu.memory_space<vmem>>, vector<128x256xbf16>
      tpu.vector_store %arg7[%c0_33, %c768], %69 {strides = array<i32>} : memref<128x1024xbf16, #tpu.memory_space<vmem>>, vector<128x256xbf16>,
    } else {
    }
    return
  }
  func.func @transform_0(%arg0: i32, %arg1: i32) -> (i32, i32) {
    %c0_i32 = arith.constant 0 : i32
    return %arg0, %arg1 : i32, i32
  }
  func.func @transform_1(%arg0: i32, %arg1: i32) -> (i32, i32) {
    %c0_i32 = arith.constant 0 : i32
    %c0_i32_0 = arith.constant 0 : i32
    return %arg1, %c0_i32 : i32, i32
  }
  func.func @transform_2(%arg0: i32, %arg1: i32) -> (i32, i32) {
    %c0_i32 = arith.constant 0 : i32
    %c0_i32_0 = arith.constant 0 : i32
    %c0_i32_1 = arith.constant 0 : i32
    return %c0_i32, %c0_i32_0 : i32, i32
  }
  func.func @transform_3(%arg0: i32, %arg1: i32) -> (i32, i32) {
    %c2_i32 = arith.constant 2 : i32
    %c0_i32 = arith.constant 0 : i32
    %0 = arith.cmpi eq, %c2_i32, %c0_i32 : i32
    %c1_i32 = arith.constant 1 : i32
    %1 = arith.select %0, %c1_i32, %c2_i32 : i32
    %2 = arith.remsi %arg0, %1 : i32
    %c0_i32_0 = arith.constant 0 : i32
    %3 = arith.cmpi ne, %2, %c0_i32_0 : i32
    %c0_i32_1 = arith.constant 0 : i32
    %4 = arith.cmpi slt, %2, %c0_i32_1 : i32
    %c0_i32_2 = arith.constant 0 : i32
    %5 = arith.cmpi slt, %1, %c0_i32_2 : i32
    %6 = arith.xori %4, %5 : i1
    %7 = arith.andi %6, %3 : i1
    %8 = arith.addi %2, %1 : i32
    %9 = arith.select %7, %8, %2 : i32
    %c0_i32_3 = arith.constant 0 : i32
    %c0_i32_4 = arith.constant 0 : i32
    return %9, %c0_i32_3 : i32, i32
  }
  func.func @transform_4(%arg0: i32, %arg1: i32) -> (i32, i32) {
    %c2_i32 = arith.constant 2 : i32
    %c0_i32 = arith.constant 0 : i32
    %0 = arith.cmpi eq, %c2_i32, %c0_i32 : i32
    %c1_i32 = arith.constant 1 : i32
    %1 = arith.select %0, %c1_i32, %c2_i32 : i32
    %2 = arith.remsi %arg0, %1 : i32
    %c0_i32_0 = arith.constant 0 : i32
    %3 = arith.cmpi ne, %2, %c0_i32_0 : i32
    %c0_i32_1 = arith.constant 0 : i32
    %4 = arith.cmpi slt, %2, %c0_i32_1 : i32
    %c0_i32_2 = arith.constant 0 : i32
    %5 = arith.cmpi slt, %1, %c0_i32_2 : i32
    %6 = arith.xori %4, %5 : i1
    %7 = arith.andi %6, %3 : i1
    %8 = arith.addi %2, %1 : i32
    %9 = arith.select %7, %8, %2 : i32
    %c0_i32_3 = arith.constant 0 : i32
    %c0_i32_4 = arith.constant 0 : i32
    return %9, %c0_i32_3 : i32, i32
  }
  func.func @transform_5(%arg0: i32, %arg1: i32) -> (i32, i32) {
    %c0_i32 = arith.constant 0 : i32
    %c0_i32_0 = arith.constant 0 : i32
    return %arg0, %c0_i32 : i32, i32
  }
}

</mosaic_0001>

<bundles_post_ra>
// kernel: tpu_custom_call.1
= control target key start
LH: loop header
LB: loop body
LE: loop exit
PB: predicated region body
PF: predicated region fallthrough
CT: control target
= control target key end

     0   :  { %s7042_s0 = inlined_call_operand.hbm [shape: bf16[512,512], index: 0, kind: input, shape index: {}]   ;;  %s7043_s1 = inlined_call_operand.hbm [shape: bf16[512,1024], index: 1, kind: input, shape index: {}]   ;;  %s7044_s2 = inlined_call_operand.hbm [shape: f32[1,1024], index: 2, kind: input, shape index: {}]   ;;  %s7045_s3 = inlined_call_operand.hbm [shape: f32[256,128], index: 3, kind: input, shape index: {}]   ;;  %s7046_s4 = inlined_call_operand.hbm [shape: f32[256,128], index: 4, kind: input, shape index: {}]   ;;  %s7047_s5 = inlined_call_operand.hbm [shape: bf16[512,1024], index: 5, kind: output, shape index: {}]  }
   0x1   :  { %7149 = sst [smem:[#allocation91_spill]] %s7044_s2 }
   0x2   :  { %7150 = sst [smem:[#allocation92_spill]] %s7045_s3 }
   0x3   :  { %7151 = sst [smem:[#allocation93_spill]] %s7047_s5 }
   0x4   :  { %10 = vsyncpa [#allocation4], 0 }
   0x5   :  { %12 = vsyncpa [#allocation4 + $0x1], 0 }
   0x6   :  { %13 = vsyncpa [#allocation7], 0 }
   0x7   :  { %15 = vsyncpa [#allocation7 + $0x1], 0 }
   0x8   :  { %16 = vsyncpa [#allocation10], 0 }
   0x9   :  { %18 = vsyncpa [#allocation10 + $0x1], 0 }
   0xa   :  { %19 = vsyncpa [#allocation5], 0 }
   0xb   :  { %21 = vsyncpa [#allocation5 + $0x1], 0  ;;  %s5017_s18 = smov 0   ;;  %s5019_s19 = smov 0  }
   0xc   :  { %s5021_s20 = smov 0   ;;  %s5023_s21 = smov 0  }
   0xd   :  { %s5025_s22 = smov 0   ;;  %s5027_s23 = smov 0  }
   0xe   :  { %s5029_s24 = smov 0   ;;  %s5031_s25 = smov 0  }
   0xf   :  { %s5033_s26 = smov 0   ;;  %s5035_s27 = smov 0  }
  0x10   :  { %s5037_s28 = smov 0   ;;  %s5039_s29 = smov 0  }
  0x11   :  { %s5041_s30 = smov 0   ;;  %s5043_s6 = smov 0  }
  0x12   :  { %s5045_s7 = smov 0   ;;  %s5047_s8 = smov 0  }
  0x13   :  { %s5049_s9 = smov 0  }
  0x14 LB: > { %7152 = sst [smem:[#allocation18_spill]] %s4906_s18  ;;  %s5097_s10 = sadd.s32 4294967295, %s4970_s9   ;;  %s4970_s9 = sphi %s5049_s9, %s27_s9   ;;  %s4966_s8 = sphi %s5047_s8, %s7364_s8   ;;  %s4962_s7 = sphi %s5045_s7, %s7363_s7   ;;  %s4958_s6 = sphi %s5043_s6, %s7362_s6   ;;  %s4954_s30 = sphi %s5041_s30, %s7361_s30   ;;  %s4950_s29 = sphi %s5039_s29, %s7360_s29   ;;  %s4946_s28 = sphi %s5037_s28, %s7359_s28   ;;  %s4942_s27 = sphi %s5035_s27, %s7349_s27   ;;  %s4938_s26 = sphi %s5033_s26, %s7358_s26   ;;  %s4934_s25 = sphi %s5031_s25, %s7357_s25   ;;  %s4930_s24 = sphi %s5029_s24, %s7356_s24   ;;  %s4926_s23 = sphi %s5027_s23, %s7348_s23   ;;  %s4922_s22 = sphi %s5025_s22, %s7355_s22   ;;  %s4918_s21 = sphi %s5023_s21, %s7346_s21   ;;  %s4914_s20 = sphi %s5021_s20, %s7354_s20   ;;  %s4910_s19 = sphi %s5019_s19, %s7353_s19   ;;  %s4906_s18 = sphi %s5017_s18, %s7345_s18  }
  0x15   : > { %7153 = sst [smem:[#allocation19_spill]] %s4910_s19  ;;  %s3972_s11 = sadd.s32 4294967294, %s4970_s9  }
  0x16   : > { %7154 = sst [smem:[#allocation20_spill]] %s4922_s22  ;;  %p61_p0 = scmp.ne.s32.totalorder %s4946_s28, %s4942_s27 }
  0x17   : > { %7155 = sst [smem:[#allocation21_spill]] %s4926_s23  ;;  %p7055_p1 = scmp.eq.s32.totalorder %s5097_s10, 0 }
  0x18   : > { %7156 = sst [smem:[#allocation22_spill]] %s4946_s28  ;;  %p87_p2 = scmp.ne.s32.totalorder %s4934_s25, %s4930_s24 }
  0x19   : > { %7157 = sst [smem:[#allocation23_spill]] %s4954_s30  ;;  %p158_p3 = scmp.ne.s32.totalorder %s4922_s22, %s4918_s21 }
  0x1a   : > { %7158 = sst [smem:[#allocation24_spill]] %s4958_s6  ;;  %p5106_p4 = por %p7055_p1, %p61_p0 }
  0x1b   : > { %7159 = sst [smem:[#allocation25_spill]] %s5097_s10  ;;  %p5113_p5 = por %p87_p2, %p7055_p1 }
  0x1c   : > { %s7160_s12 = scalar_select %p5106_p4, 1, 0 }
  0x1d   : > { %s7162_s14 = scalar_select %p5113_p5, 1, 0 }
  0x1e   : > { %7161 = sst [smem:[#allocation26_spill]] %s7160_s12  ;;  %p5119_p6 = por %p158_p3, %p7055_p1 }
  0x1f   : > { %7163 = sst [smem:[#allocation27_spill]] %s7162_s14  ;;  %p231_p7 = scmp.ne.s32.totalorder %s4914_s20, %s4910_s19 }
  0x20   : > { %s7164_s15 = scalar_select %p5119_p6, 1, 0 }
  0x21   : > { %p232_p8 = scmp.eq.s32.totalorder %s5097_s10, 7  ;;  %p237_p9 = scmp.ne.s32.totalorder %s4910_s19, %s4906_s18 }
  0x22   : > { %7165 = sst [smem:[#allocation28_spill]] %s7164_s15  ;;  %p238_p10 = scmp.eq.s32.totalorder %s3972_s11, 7 }
  0x23   : > { %p5128_p11 = por %p232_p8, %p231_p7  ;;  %p3985_p12 = scmp.ge.s32.totalorder %s4970_s9, 1 }
  0x24   : > { %p5133_p13 = por %p238_p10, %p237_p9  ;;  %p245_p0 = scmp.lt.s32.totalorder %s4970_s9, 9 }
  0x25   : > { %s7166_s16 = scalar_select %p5128_p11, 1, 0 }
  0x26   : > { %s7168_s17 = scalar_select %p5133_p13, 1, 0 }
  0x27   : > { %7167 = sst [smem:[#allocation29_spill]] %s7166_s16  ;;  %p5138_p2 = pnand %p3985_p12, %p245_p0 }
  0x28   : > { %7169 = sst [smem:[#allocation30_spill]] %s7168_s17  ;;  %s4972_s24 = smov [#allocation8]  }
  0x29   : > { %s7170_s21 = scalar_select %p5138_p2, 1, 0 }
  0x2a   : > { %s258_s27 = sshll.u32 %s4972_s24, 4  ;;  %p4413_p3 = pneg %p5138_p2  ;;  %s259_s27 = int_to_ptr.vmem [resolvable:$true] %s258_s27 }
  0x2b   : > { %7171 = sst [smem:[#allocation31_spill]] %s7170_s21  ;;  %s7061_s13 = sadd.s32 1, %s4962_s7 }
  0x2c   : > { %p5146_p7 = pnand %p4413_p3, %p7055_p1  ;;  %s7173_s2 = sld [smem:[#allocation91_spill]] }
  0x2e   : > { %p4642_p9 = pneg %p5146_p7 }
  0x32   : > { %s4640_s5 = scalar_lea.hbm %s7173_s2, 128 }
  0x33   : > { %p4641_p8 = scmp.ne.s32.totalorder %s7173_s2, %s4640_s5  ;;  %p4647_p0 = scmp.lt.u32.totalorder %s4640_s5, %s7173_s2 }
  0x35   : > { %p4643_p10 = pnand %p4642_p9, %p4641_p8 }
  0x37   : > { %p4644_p12 = pneg %p4643_p10 }
  0x39   : > { %p4649_p3 = pnand %p4647_p0, %p4644_p12 }
  0x3b   : > { %4652 = shalt.err (!%p4649_p3)
}
  0x3c   : > { %s4653_s19 = scalar_lea.vmem %s259_s27, 128  ;;  %p4661_p6 = scmp.lt.s32.totalorder %s259_s27, %s259_s27 }
  0x3d   : > { %p4654_p1 = scmp.ne.s32.totalorder %s259_s27, %s4653_s19  ;;  %p4662_p5 = scmp.lt.s32.totalorder %s4653_s19, %s4653_s19 }
  0x3f   : > { %p4656_p13 = pnand %p4654_p1, %p4642_p9  ;;  %p4663_p4 = por %p4662_p5, %p4661_p6 }
  0x41   : > { %p4657_p11 = pneg %p4656_p13 }
  0x43   : > { %p4664_p2 = pnand %p4663_p4, %p4657_p11 }
  0x45   : > { %4667 = shalt.err (!%p4664_p2)
}
  0x46   : > { %4416 = dma.hbm_to_vmem [thread:$0]  (!%p5146_p7), %s7173_s2, 128, %s259_s27, [#allocation7]  }
  0x47   : > { %p5169_p1 = scmp.ge.s32.totalorder %s7061_s13, 2  ;;  %s39_s19 = sadd.s32 1, %s4966_s8 }
  0x48   : > { %p7071_p4 = scmp.eq.s32.totalorder %s4970_s9, 0  ;;  %s119_s30 = ssub.s32 0, %s4966_s8 }
  0x49   : > { %s7366_s19 = smov (!%p5169_p1, %s39_s19), %s4966_s8  ;;  %s145_s16 = sadd.s32 1, %s4926_s23 }
  0x4a   : > { %p41_p5 = scmp.ge.s32.totalorder %s7366_s19, 4  ;;  %s3973_s17 = smin.u32 %s4966_s8, %s119_s30 }
  0x4b   : > { %s121_s11 = sand.u32 1, %s3973_s17   ;;  %p152_p6 = scmp.ne.s32.totalorder %s4926_s23, %s4922_s22 }
  0x4c   : > { %s7368_s19 = smov (%p41_p5, %s7366_s19), 0  ;;  %p3975_p13 = scmp.lt.s32.totalorder %s121_s11, 0 }
  0x4d   : > { %7175 = sst [smem:[#allocation32_spill]] %s7368_s19  ;;  %p5187_p11 = por %p152_p6, %p7071_p4 }
  0x4e   : > { %s131_s24 = ssub.s32 0, %s7368_s19  ;;  %s128_s18 = sadd.s32 2, %s121_s11 }
  0x4f   : > { %s3976_s6 = smin.u32 %s131_s24, %s7368_s19  ;;  %p7070_p2 = scmp.lt.s32.totalorder %s4970_s9, 8 }
  0x50   : > { %s7370_s18 = smov (!%p3975_p13, %s128_s18), %s121_s11  ;;  %s133_s30 = sand.u32 1, %s3976_s6  }
  0x51   : > { %s317_s13 = sand.u32 1, %s4926_s23   ;;  %p3978_p7 = scmp.lt.s32.totalorder %s133_s30, 0 }
  0x52   : > { %s140_s2 = sadd.s32 2, %s133_s30  ;;  %s5198_s15 = sshll.u32 %s317_s13, 7 }
  0x53   : > { %s7372_s2 = smov (!%p3978_p7, %s140_s2), %s133_s30  ;;  %s7069_s24 = sshll.u32 %s7370_s18, 11 }
  0x54   : > { %s142_s22 = ssub.s32 %s7370_s18, %s7372_s2  ;;  %s7177_s3 = sld [smem:[#allocation92_spill]] }
  0x55   : > { %p143_p8 = scmp.eq.s32.totalorder %s142_s22, 0  ;;  %s319_s6 = scalar_lea.vmem [#allocation9], %s5198_s15 }
  0x56   : > { %s338_s17 = sshll.u32 %s319_s6, 4  ;;  %p5214_p9 = pnand %p7070_p2, %p5187_p11  ;;  %s5221_s17 = int_to_ptr.vmem [resolvable:$true] %s338_s17 }
  0x57   : > { %s5219_s2 = scalar_select %p143_p8, %s4926_s23, %s145_s16  }
  0x58   : > { %s7180_s22 = sand.u32 1, %s4970_s9   ;;  %p7083_p12 = pneg %p5214_p9 }
  0x59   : > { %7179 = sst [smem:[#allocation33_spill]] %s5219_s2  ;;  %s5225_s14 = scalar_lea.sflag [#allocation10], %s7180_s22 }
  0x5a   : > { %s5207_s10 = scalar_lea.hbm %s7177_s3, %s7069_s24  ;;  %s4673_s6 = scalar_lea.hbm %s7177_s3, 4096 }
  0x5b   : > { %s4668_s30 = scalar_lea.hbm %s5207_s10, 2048  ;;  %p4674_p5 = scmp.lt.u32.totalorder %s5207_s10, %s7177_s3 }
  0x5c   : > { %p4669_p10 = scmp.ne.s32.totalorder %s5207_s10, %s4668_s30  ;;  %p4675_p6 = scmp.lt.u32.totalorder %s4673_s6, %s4668_s30 }
  0x5d   : > { %p4677_p13 = scmp.lt.u32.totalorder %s4668_s30, %s5207_s10 }
  0x5e   : > { %p4671_p0 = pnand %p7083_p12, %p4669_p10  ;;  %p4676_p11 = por %p4675_p6, %p4674_p5 }
  0x60   : > { %p4672_p3 = pneg %p4671_p0  ;;  %p4678_p7 = por %p4677_p13, %p4676_p11 }
  0x62   : > { %p4679_p8 = pnand %p4678_p7, %p4672_p3 }
  0x64   : > { %4682 = shalt.err (!%p4679_p8)
}
  0x65   : > { %s4683_s22 = scalar_lea.vmem %s5221_s17, 2048  ;;  %s4973_s27 = smov [#allocation9]  }
  0x66   : > { %p4684_p10 = scmp.ne.s32.totalorder %s5221_s17, %s4683_s22  ;;  %s4688_s11 = sshll.u32 %s4973_s27, 4  ;;  %s4689_s11 = int_to_ptr.vmem [resolvable:$false] %s4688_s11 }
  0x67   : > { %s4690_s24 = scalar_lea.vmem %s4689_s11, 4096  ;;  %p4691_p4 = scmp.lt.s32.totalorder %s5221_s17, %s4689_s11 }
  0x68   : > { %p4686_p0 = pnand %p4684_p10, %p7083_p12  ;;  %p4692_p5 = scmp.lt.s32.totalorder %s4690_s24, %s4683_s22 }
  0x6a   : > { %p4687_p2 = pneg %p4686_p0  ;;  %p4693_p6 = por %p4692_p5, %p4691_p4 }
  0x6c   : > { %p4694_p11 = pnand %p4693_p6, %p4687_p2 }
  0x6e   : > { %4697 = shalt.err (!%p4694_p11)
}
  0x6f   : > { %s7073_s30 = smov 128   ;;  %s7075_s6 = smov 8  }
  0x70   : > { %4426 = dma.hbm_to_vmem [thread:$0]  (!%p5214_p9), %s5207_s10, 2048, %s5221_s17, %s5225_s14, %s7073_s30, %s7073_s30, %s7075_s6  }
  0x71   : > { %s7181_s16 = sshll.u32 %s7370_s18, 11  ;;  %s352_s24 = scalar_lea.vmem [#allocation11], %s5198_s15 }
  0x72   : > { %s5261_s11 = scalar_lea.hbm %s7046_s4, %s7181_s16  ;;  %s371_s3 = sshll.u32 %s352_s24, 4  ;;  %s5264_s3 = int_to_ptr.vmem [resolvable:$true] %s371_s3 }
  0x73   : > { %s7182_s2 = sadd.s32 1, %s4962_s7  ;;  %s43_s23 = ssub.s32 %s4966_s8, %s7368_s19 }
  0x74   : > { %s7374_s2 = smov (%p5169_p1, %s7182_s2), 0  ;;  %s48_s10 = sadd.s32 1, %s4950_s29 }
  0x75   : > { %7183 = sst [smem:[#allocation34_spill]] %s7374_s2  ;;  %s5277_s18 = ssub.s32 %s4962_s7, %s7374_s2 }
  0x76   : > { %p55_p4 = scmp.ne.s32.totalorder %s4950_s29, %s4946_s28  ;;  %s45_s17 = sor.u32 %s5277_s18, %s43_s23 }
  0x77   : > { %p219_p2 = scmp.eq.s32.totalorder %s43_s23, 0  ;;  %p46_p3 = scmp.eq.s32.totalorder %s45_s17, 0 }
  0x78   : > { %p7184_p13 = scmp.eq.s32.totalorder %s4970_s9, 0  ;;  %s7186_s16 = sadd.s32 1, %s4914_s20 }
  0x79   : > { %s5291_s5 = scalar_select %p219_p2, %s4914_s20, %s7186_s16  }
  0x7a   : > { %p5284_p7 = por %p7184_p13, %p55_p4  ;;  %s269_s27 = sand.u32 1, %s4950_s29  }
  0x7b   : > { %s5294_s22 = scalar_select %p46_p3, %s4950_s29, %s48_s10  }
  0x7c   : > { %s3990_s24 = sshll.u32 %s4962_s7, 1  ;;  %s3988_s30 = sshll.u32 %s269_s27, 7 }
  0x7d   : > { %s4280_s6 = sshll.u32 %s4966_s8, 6  ;;  %s273_s2 = scalar_lea.vmem [#allocation3], %s3988_s30 }
  0x7e   : > { %s280_s19 = sadd.s32 %s4280_s6, %s3990_s24  ;;  %s283_s12 = sshll.u32 %s273_s2, 4  ;;  %s5299_s12 = int_to_ptr.vmem [resolvable:$true] %s283_s12 }
  0x7f   : > { %s3992_s23 = sshll.u32 %s280_s19, 6  ;;  %p7187_p1 = scmp.lt.s32.totalorder %s4970_s9, 8 }
  0x80   : > { %s5304_s21 = scalar_lea.hbm %s7042_s0, %s3992_s23  ;;  %s5314_s19 = scalar_lea.sflag [#allocation4], %s269_s27 }
  0x81   : > { %p5310_p8 = pnand %p7187_p1, %p5284_p7  ;;  %s4698_s2 = scalar_lea.hbm %s5304_s21, 2048 }
  0x82   : > { %p4699_p10 = scmp.ne.s32.totalorder %s5304_s21, %s4698_s2  ;;  %s4703_s6 = scalar_lea.hbm %s7042_s0, 16384 }
  0x83   : > { %p4700_p0 = pneg %p5310_p8  ;;  %p4704_p11 = scmp.lt.u32.totalorder %s5304_s21, %s7042_s0 }
  0x84   : > { %p4705_p4 = scmp.lt.u32.totalorder %s4703_s6, %s4698_s2  ;;  %p4707_p3 = scmp.lt.u32.totalorder %s4698_s2, %s5304_s21 }
  0x85   : > { %p4701_p5 = pnand %p4700_p0, %p4699_p10 }
  0x86   : > { %p4706_p2 = por %p4705_p4, %p4704_p11 }
  0x87   : > { %p4702_p6 = pneg %p4701_p5 }
  0x88   : > { %p4708_p13 = por %p4707_p3, %p4706_p2 }
  0x8a   : > { %p4709_p7 = pnand %p4708_p13, %p4702_p6 }
  0x8c   : > { %4712 = shalt.err (!%p4709_p7)
}
  0x8d   : > { %s4713_s27 = scalar_lea.vmem %s5299_s12, 2048  ;;  %s4976_s24 = smov [#allocation3]  }
  0x8e   : > { %p4714_p1 = scmp.ne.s32.totalorder %s5299_s12, %s4713_s27  ;;  %s4718_s23 = sshll.u32 %s4976_s24, 4  ;;  %s4719_s23 = int_to_ptr.vmem [resolvable:$false] %s4718_s23 }
  0x8f   : > { %s4720_s17 = scalar_lea.vmem %s4719_s23, 4096  ;;  %p4721_p12 = scmp.lt.s32.totalorder %s5299_s12, %s4719_s23 }
  0x90   : > { %p4716_p10 = pnand %p4714_p1, %p4700_p0  ;;  %p4722_p11 = scmp.lt.s32.totalorder %s4720_s17, %s4713_s27 }
  0x92   : > { %p4717_p5 = pneg %p4716_p10  ;;  %p4723_p4 = por %p4722_p11, %p4721_p12 }
  0x94   : > { %p4724_p2 = pnand %p4723_p4, %p4717_p5 }
  0x96   : > { %4727 = shalt.err (!%p4724_p2)
}
  0x97   : > { %s4977_s2 = smov 256   ;;  %s7189_s28 = smov 8  }
  0x98   : > { %s7190_s30 = smov 128   ;;  %p72_p12 = scmp.eq.s32.totalorder %s5277_s18, 0 }
  0x99   : > { %4420 = dma.hbm_to_vmem [thread:$0]  (!%p5310_p8), %s5304_s21, 2048, %s5299_s12, %s5314_s19, %s4977_s2, %s7190_s30, %s7189_s28  }
  0x9a   : > { %s74_s6 = sadd.s32 1, %s4938_s26  ;;  %p81_p0 = scmp.ne.s32.totalorder %s4938_s26, %s4934_s25 }
  0x9b   : > { %s295_s10 = sand.u32 1, %s4938_s26   ;;  %p7191_p6 = scmp.eq.s32.totalorder %s4970_s9, 0 }
  0x9c   : > { %s5350_s15 = scalar_select %p72_p12, %s4938_s26, %s74_s6  }
  0x9d   : > { %p83_p3 = por %p81_p0, %p7191_p6  ;;  %s3993_s16 = sshll.u32 %s295_s10, 10 }
  0x9e   : > { %s4282_s27 = sshll.u32 %s4962_s7, 14  ;;  %s297_s12 = scalar_lea.vmem [#allocation6], %s3993_s16 }
  0x9f   : > { %s5358_s17 = scalar_lea.hbm %s7043_s1, %s4282_s27  ;;  %s305_s21 = sshll.u32 %s297_s12, 4  ;;  %s5360_s21 = int_to_ptr.vmem [resolvable:$true] %s305_s21 }
  0xa0   : > { %p7192_p8 = scmp.lt.s32.totalorder %s4970_s9, 8  ;;  %s7194_s19 = sand.u32 1, %s4970_s9  }
  0xa1   : > { %s5370_s2 = scalar_lea.sflag [#allocation7], %s7194_s19  ;;  %s4728_s6 = scalar_lea.hbm %s5358_s17, 16384 }
  0xa2   : > { %p5364_p13 = pnand %p7192_p8, %p83_p3  ;;  %p4729_p7 = scmp.ne.s32.totalorder %s5358_s17, %s4728_s6 }
  0xa3   : > { %s4733_s27 = scalar_lea.hbm %s7043_s1, 32768  ;;  %p4734_p11 = scmp.lt.u32.totalorder %s5358_s17, %s7043_s1 }
  0xa4   : > { %p4730_p1 = pneg %p5364_p13  ;;  %p4735_p4 = scmp.lt.u32.totalorder %s4733_s27, %s4728_s6 }
  0xa5   : > { %p4737_p12 = scmp.lt.u32.totalorder %s4728_s6, %s5358_s17 }
  0xa6   : > { %p4731_p10 = pnand %p4730_p1, %p4729_p7  ;;  %p4736_p2 = por %p4735_p4, %p4734_p11 }
  0xa8   : > { %p4732_p5 = pneg %p4731_p10  ;;  %p4738_p0 = por %p4737_p12, %p4736_p2 }
  0xaa   : > { %p4739_p6 = pnand %p4738_p0, %p4732_p5 }
  0xac   : > { %4742 = shalt.err (!%p4739_p6)
}
  0xad   : > { %s4743_s12 = scalar_lea.vmem %s5360_s21, 16384  ;;  %s4978_s19 = smov [#allocation6]  }
  0xae   : > { %p4744_p3 = scmp.ne.s32.totalorder %s5360_s21, %s4743_s12  ;;  %s4748_s10 = sshll.u32 %s4978_s19, 4  ;;  %s4749_s10 = int_to_ptr.vmem [resolvable:$false] %s4748_s10 }
  0xaf   : > { %s4750_s16 = scalar_lea.vmem %s4749_s10, 32768  ;;  %p4751_p10 = scmp.lt.s32.totalorder %s5360_s21, %s4749_s10 }
  0xb0   : > { %p4746_p8 = pnand %p4744_p3, %p4730_p1  ;;  %p4752_p11 = scmp.lt.s32.totalorder %s4750_s16, %s4743_s12 }
  0xb2   : > { %p4747_p7 = pneg %p4746_p8  ;;  %p4753_p4 = por %p4752_p11, %p4751_p10 }
  0xb4   : > { %p4754_p2 = pnand %p4753_p4, %p4747_p7 }
  0xb6   : > { %4757 = shalt.err (!%p4754_p2)
}
  0xb7   : > { %s4979_s6 = smov 512   ;;  %s4980_s27 = smov 32  }
  0xb8   : > { %4423 = dma.hbm_to_vmem [thread:$0]  (!%p5364_p13), %s5358_s17, 16384, %s5360_s21, %s5370_s2, %s4979_s6, %s4979_s6, %s4980_s27  }
  0xb9   : > { %s4758_s24 = scalar_lea.hbm %s5261_s11, 2048  ;;  %p7195_p5 = pneg %p5214_p9 }
  0xba   : > { %p4759_p1 = scmp.ne.s32.totalorder %s5261_s11, %s4758_s24  ;;  %s4763_s19 = scalar_lea.hbm %s7046_s4, 4096 }
  0xbb   : > { %p4764_p6 = scmp.lt.u32.totalorder %s5261_s11, %s7046_s4  ;;  %p4765_p3 = scmp.lt.u32.totalorder %s4763_s19, %s4758_s24 }
  0xbc   : > { %p4761_p12 = pnand %p4759_p1, %p7195_p5  ;;  %p4767_p7 = scmp.lt.u32.totalorder %s4758_s24, %s5261_s11 }
  0xbd   : > { %p4766_p8 = por %p4765_p3, %p4764_p6 }
  0xbe   : > { %p4762_p0 = pneg %p4761_p12 }
  0xbf   : > { %p4768_p10 = por %p4767_p7, %p4766_p8 }
  0xc1   : > { %p4769_p11 = pnand %p4768_p10, %p4762_p0 }
  0xc3   : > { %4772 = shalt.err (!%p4769_p11)
}
  0xc4   : > { %s4773_s17 = scalar_lea.vmem %s5264_s3, 2048  ;;  %p7196_p4 = pmov %p7195_p5 }
  0xc5   : > { %p4774_p13 = scmp.ne.s32.totalorder %s5264_s3, %s4773_s17  ;;  %s4981_s21 = smov [#allocation11]  }
  0xc6   : > { %s4778_s18 = sshll.u32 %s4981_s21, 4  ;;  %s4779_s18 = int_to_ptr.vmem [resolvable:$false] %s4778_s18 }
  0xc7   : > { %p4776_p2 = pnand %p4774_p13, %p7196_p4  ;;  %s4780_s2 = scalar_lea.vmem %s4779_s18, 4096 }
  0xc8   : > { %p4781_p5 = scmp.lt.s32.totalorder %s5264_s3, %s4779_s18  ;;  %p4782_p12 = scmp.lt.s32.totalorder %s4780_s2, %s4773_s17 }
  0xc9   : > { %p4777_p1 = pneg %p4776_p2 }
  0xca   : > { %p4783_p6 = por %p4782_p12, %p4781_p5 }
  0xcc   : > { %p4784_p3 = pnand %p4783_p6, %p4777_p1 }
  0xce   : > { %4787 = shalt.err (!%p4784_p3)
}
  0xcf   : > { %4429 = dma.hbm_to_vmem [thread:$0]  (!%p5214_p9), %s5261_s11, 2048, %s5264_s3, %s5225_s14, %s7190_s30, %s7190_s30, %s7189_s28  }
  0xd0   : > { %s7197_s6 = sld [smem:[#allocation31_spill]] }
  0xd6   : > { %p7198_p0 = scmp.ne.s32.totalorder %s7197_s6, 0 }
  0xd7   : > { %s7199_s27 = sld [smem:[#allocation22_spill]] (!%p7198_p0) }
  0xd8   : > { %383 = sbr.rel (%p7198_p0) target bundleno = 1087 (0x43f), region = 40  ;;  %s7200_s24 = sld [smem:[#allocation26_spill]] (!%p7198_p0) }
  0xdd   : > { %s385_s23 = sand.u32 (!%p7198_p0), 1, %s7199_s27  }
  0xde   : > { %s4010_s12 = sshll.u32 (!%p7198_p0), %s385_s23, 7  ;;  %s386_s19 = scalar_lea.sflag (!%p7198_p0), [#allocation4], %s385_s23 }
  0xdf   : > { %s5428_s10 = scalar_lea.vmem [#allocation3], %s4010_s12  ;;  %p7201_p8 = scmp.ne.s32.totalorder %s7200_s24, 0 }
  0xe1   : > { %4885 = dma.done.wait (%p7201_p8), %s386_s19, 2048  }
  0xe2   : > { %4887 = vsyncadd (%p7201_p8), %s386_s19, 4294965248  ;;  %s7202_s13 = sld [smem:[#allocation25_spill]]  ;;  %s7203_s16 = sld [smem:[#allocation27_spill]] }
  0xe3   : > { %s396_s3 = sand.u32 1, %s4934_s25  }
  0xe4   : > { %s4011_s14 = sshll.u32 %s396_s3, 10 }
  0xe5   : > { %s5436_s28 = scalar_lea.vmem [#allocation6], %s4011_s14 }
  0xe8   : > { %s394_s17 = sand.u32 1, %s7202_s13   ;;  %p7204_p9 = scmp.ne.s32.totalorder %s7203_s16, 0 }
  0xe9   : > { %s395_s11 = scalar_lea.sflag [#allocation7], %s394_s17 }
  0xea   : > { %4889 = dma.done.wait (%p7204_p9), %s395_s11, 16384  }
  0xeb   : > { %4891 = vsyncadd (%p7204_p9), %s395_s11, 4294950912  ;;  %p7205_p7 = scmp.eq.s32.totalorder %s7202_s13, 0 }
  0xed   : > { %4893 = dma.done.wait (%p7205_p7), [#allocation7], 128   ;;  %p7206_p10 = pmov %p7205_p7 }
  0xee   : > { %s7207_s30 = sld [smem:[#allocation20_spill]]  ;;  %s7208_s21 = sld [smem:[#allocation28_spill]] }
  0xef   : > { %4895 = vsyncadd (%p7206_p10), [#allocation7], 4294967168  ;;  %s408_s6 = scalar_lea.sflag [#allocation10], %s394_s17 }
  0xf4   : > { %s409_s18 = sand.u32 1, %s7207_s30   ;;  %p7209_p11 = scmp.ne.s32.totalorder %s7208_s21, 0 }
  0xf5   : > { %s4013_s2 = sshll.u32 %s409_s18, 7 }
  0xf6   : > { %s5447_s27 = scalar_lea.vmem [#allocation9], %s4013_s2 }
  0xf7   : > { %4897 = dma.done.wait (%p7209_p11), %s408_s6, 4096  }
  0xf8   : > { %4899 = vsyncadd (%p7209_p11), %s408_s6, 4294963200  ;;  %s7210_s24 = sld [smem:[#allocation19_spill]]  ;;  %s5456_s19 = scalar_lea.vmem [#allocation11], %s4013_s2 }
  0xf9   : > { %s7211_s16 = sld [smem:[#allocation23_spill]] }
  0xfe   : > { %s459_s23 = sand.u32 1, %s7210_s24  }
  0xff   : > { %s4015_s12 = sshll.u32 %s459_s23, 9  ;;  %p4016_p13 = scmp.ne.s32.totalorder %s7211_s16, 0 }
 0x100   : > { %s5458_s13 = scalar_lea.vmem [#allocation12], %s4015_s12  ;;  %v4982_v0 = vmov (!%p4016_p13), 0.0  }
 0x101   : > { %495 = sbr.rel (%p4016_p13) target bundleno = 321 (0x141), region = 64  ;;  %496 = vst [vmem:[#allocation2] sm:$0xff] (!%p4016_p13), %v4982_v0  ;;  %497 = vst [vmem:[#allocation2 + $0x8] sm:$0xff] (!%p4016_p13), %v4982_v0 }
 0x102   : > { %498 = vst [vmem:[#allocation2 + $0x10] sm:$0xff] (!%p4016_p13), %v4982_v0  ;;  %499 = vst [vmem:[#allocation2 + $0x18] sm:$0xff] (!%p4016_p13), %v4982_v0 }
 0x103   : > { %500 = vst [vmem:[#allocation2 + $0x20] sm:$0xff] (!%p4016_p13), %v4982_v0  ;;  %501 = vst [vmem:[#allocation2 + $0x28] sm:$0xff] (!%p4016_p13), %v4982_v0 }
 0x104   : > { %502 = vst [vmem:[#allocation2 + $0x30] sm:$0xff] (!%p4016_p13), %v4982_v0  ;;  %503 = vst [vmem:[#allocation2 + $0x38] sm:$0xff] (!%p4016_p13), %v4982_v0 }
 0x105   : > { %504 = vst [vmem:[#allocation2 + $0x40] sm:$0xff] (!%p4016_p13), %v4982_v0  ;;  %505 = vst [vmem:[#allocation2 + $0x48] sm:$0xff] (!%p4016_p13), %v4982_v0 }
 0x106   : > { %506 = vst [vmem:[#allocation2 + $0x50] sm:$0xff] (!%p4016_p13), %v4982_v0  ;;  %507 = vst [vmem:[#allocation2 + $0x58] sm:$0xff] (!%p4016_p13), %v4982_v0 }
 0x107   : > { %508 = vst [vmem:[#allocation2 + $0x60] sm:$0xff] (!%p4016_p13), %v4982_v0  ;;  %509 = vst [vmem:[#allocation2 + $0x68] sm:$0xff] (!%p4016_p13), %v4982_v0 }
 0x108   : > { %510 = vst [vmem:[#allocation2 + $0x70] sm:$0xff] %v4982_v0  ;;  %511 = vst [vmem:[#allocation2 + $0x78] sm:$0xff] %v4982_v0 }
 0x109   : > { %512 = vst [vmem:[#allocation2 + $0x80] sm:$0xff] %v4982_v0  ;;  %513 = vst [vmem:[#allocation2 + $0x88] sm:$0xff] %v4982_v0 }
 0x10a   : > { %514 = vst [vmem:[#allocation2 + $0x90] sm:$0xff] %v4982_v0  ;;  %515 = vst [vmem:[#allocation2 + $0x98] sm:$0xff] %v4982_v0 }
 0x10b   : > { %516 = vst [vmem:[#allocation2 + $0xa0] sm:$0xff] %v4982_v0  ;;  %517 = vst [vmem:[#allocation2 + $0xa8] sm:$0xff] %v4982_v0 }
 0x10c   : > { %518 = vst [vmem:[#allocation2 + $0xb0] sm:$0xff] %v4982_v0  ;;  %519 = vst [vmem:[#allocation2 + $0xb8] sm:$0xff] %v4982_v0 }
 0x10d   : > { %520 = vst [vmem:[#allocation2 + $0xc0] sm:$0xff] %v4982_v0  ;;  %521 = vst [vmem:[#allocation2 + $0xc8] sm:$0xff] %v4982_v0 }
 0x10e   : > { %522 = vst [vmem:[#allocation2 + $0xd0] sm:$0xff] %v4982_v0  ;;  %523 = vst [vmem:[#allocation2 + $0xd8] sm:$0xff] %v4982_v0 }
 0x10f   : > { %524 = vst [vmem:[#allocation2 + $0xe0] sm:$0xff] %v4982_v0  ;;  %525 = vst [vmem:[#allocation2 + $0xe8] sm:$0xff] %v4982_v0 }
 0x110   : > { %526 = vst [vmem:[#allocation2 + $0xf0] sm:$0xff] %v4982_v0  ;;  %527 = vst [vmem:[#allocation2 + $0xf8] sm:$0xff] %v4982_v0 }
 0x111   : > { %528 = vst [vmem:[#allocation2 + $0x100] sm:$0xff] %v4982_v0  ;;  %529 = vst [vmem:[#allocation2 + $0x108] sm:$0xff] %v4982_v0 }
 0x112   : > { %530 = vst [vmem:[#allocation2 + $0x110] sm:$0xff] %v4982_v0  ;;  %531 = vst [vmem:[#allocation2 + $0x118] sm:$0xff] %v4982_v0 }
 0x113   : > { %532 = vst [vmem:[#allocation2 + $0x120] sm:$0xff] %v4982_v0  ;;  %533 = vst [vmem:[#allocation2 + $0x128] sm:$0xff] %v4982_v0 }
 0x114   : > { %534 = vst [vmem:[#allocation2 + $0x130] sm:$0xff] %v4982_v0  ;;  %535 = vst [vmem:[#allocation2 + $0x138] sm:$0xff] %v4982_v0 }
 0x115   : > { %536 = vst [vmem:[#allocation2 + $0x140] sm:$0xff] %v4982_v0  ;;  %537 = vst [vmem:[#allocation2 + $0x148] sm:$0xff] %v4982_v0 }
 0x116   : > { %538 = vst [vmem:[#allocation2 + $0x150] sm:$0xff] %v4982_v0  ;;  %539 = vst [vmem:[#allocation2 + $0x158] sm:$0xff] %v4982_v0 }
 0x117   : > { %540 = vst [vmem:[#allocation2 + $0x160] sm:$0xff] %v4982_v0  ;;  %541 = vst [vmem:[#allocation2 + $0x168] sm:$0xff] %v4982_v0 }
 0x118   : > { %542 = vst [vmem:[#allocation2 + $0x170] sm:$0xff] %v4982_v0  ;;  %543 = vst [vmem:[#allocation2 + $0x178] sm:$0xff] %v4982_v0 }
 0x119   : > { %544 = vst [vmem:[#allocation2 + $0x180] sm:$0xff] %v4982_v0  ;;  %545 = vst [vmem:[#allocation2 + $0x188] sm:$0xff] %v4982_v0 }
 0x11a   : > { %546 = vst [vmem:[#allocation2 + $0x190] sm:$0xff] %v4982_v0  ;;  %547 = vst [vmem:[#allocation2 + $0x198] sm:$0xff] %v4982_v0 }
 0x11b   : > { %548 = vst [vmem:[#allocation2 + $0x1a0] sm:$0xff] %v4982_v0  ;;  %549 = vst [vmem:[#allocation2 + $0x1a8] sm:$0xff] %v4982_v0 }
 0x11c   : > { %550 = vst [vmem:[#allocation2 + $0x1b0] sm:$0xff] %v4982_v0  ;;  %551 = vst [vmem:[#allocation2 + $0x1b8] sm:$0xff] %v4982_v0 }
 0x11d   : > { %552 = vst [vmem:[#allocation2 + $0x1c0] sm:$0xff] %v4982_v0  ;;  %553 = vst [vmem:[#allocation2 + $0x1c8] sm:$0xff] %v4982_v0 }
 0x11e   : > { %554 = vst [vmem:[#allocation2 + $0x1d0] sm:$0xff] %v4982_v0  ;;  %555 = vst [vmem:[#allocation2 + $0x1d8] sm:$0xff] %v4982_v0 }
 0x11f   : > { %556 = vst [vmem:[#allocation2 + $0x1e0] sm:$0xff] %v4982_v0  ;;  %557 = vst [vmem:[#allocation2 + $0x1e8] sm:$0xff] %v4982_v0 }
 0x120   : > { %558 = vst [vmem:[#allocation2 + $0x1f0] sm:$0xff] %v4982_v0  ;;  %559 = vst [vmem:[#allocation2 + $0x1f8] sm:$0xff] %v4982_v0 }
 0x121   : > { %560 = vst [vmem:[#allocation2 + $0x200] sm:$0xff] %v4982_v0  ;;  %561 = vst [vmem:[#allocation2 + $0x208] sm:$0xff] %v4982_v0 }
 0x122   : > { %562 = vst [vmem:[#allocation2 + $0x210] sm:$0xff] %v4982_v0  ;;  %563 = vst [vmem:[#allocation2 + $0x218] sm:$0xff] %v4982_v0 }
 0x123   : > { %564 = vst [vmem:[#allocation2 + $0x220] sm:$0xff] %v4982_v0  ;;  %565 = vst [vmem:[#allocation2 + $0x228] sm:$0xff] %v4982_v0 }
 0x124   : > { %566 = vst [vmem:[#allocation2 + $0x230] sm:$0xff] %v4982_v0  ;;  %567 = vst [vmem:[#allocation2 + $0x238] sm:$0xff] %v4982_v0 }
 0x125   : > { %568 = vst [vmem:[#allocation2 + $0x240] sm:$0xff] %v4982_v0  ;;  %569 = vst [vmem:[#allocation2 + $0x248] sm:$0xff] %v4982_v0 }
 0x126   : > { %570 = vst [vmem:[#allocation2 + $0x250] sm:$0xff] %v4982_v0  ;;  %571 = vst [vmem:[#allocation2 + $0x258] sm:$0xff] %v4982_v0 }
 0x127   : > { %572 = vst [vmem:[#allocation2 + $0x260] sm:$0xff] %v4982_v0  ;;  %573 = vst [vmem:[#allocation2 + $0x268] sm:$0xff] %v4982_v0 }
 0x128   : > { %574 = vst [vmem:[#allocation2 + $0x270] sm:$0xff] %v4982_v0  ;;  %575 = vst [vmem:[#allocation2 + $0x278] sm:$0xff] %v4982_v0 }
 0x129   : > { %576 = vst [vmem:[#allocation2 + $0x280] sm:$0xff] %v4982_v0  ;;  %577 = vst [vmem:[#allocation2 + $0x288] sm:$0xff] %v4982_v0 }
 0x12a   : > { %578 = vst [vmem:[#allocation2 + $0x290] sm:$0xff] %v4982_v0  ;;  %579 = vst [vmem:[#allocation2 + $0x298] sm:$0xff] %v4982_v0 }
 0x12b   : > { %580 = vst [vmem:[#allocation2 + $0x2a0] sm:$0xff] %v4982_v0  ;;  %581 = vst [vmem:[#allocation2 + $0x2a8] sm:$0xff] %v4982_v0 }
 0x12c   : > { %582 = vst [vmem:[#allocation2 + $0x2b0] sm:$0xff] %v4982_v0  ;;  %583 = vst [vmem:[#allocation2 + $0x2b8] sm:$0xff] %v4982_v0 }
 0x12d   : > { %584 = vst [vmem:[#allocation2 + $0x2c0] sm:$0xff] %v4982_v0  ;;  %585 = vst [vmem:[#allocation2 + $0x2c8] sm:$0xff] %v4982_v0 }
 0x12e   : > { %586 = vst [vmem:[#allocation2 + $0x2d0] sm:$0xff] %v4982_v0  ;;  %587 = vst [vmem:[#allocation2 + $0x2d8] sm:$0xff] %v4982_v0 }
 0x12f   : > { %588 = vst [vmem:[#allocation2 + $0x2e0] sm:$0xff] %v4982_v0  ;;  %589 = vst [vmem:[#allocation2 + $0x2e8] sm:$0xff] %v4982_v0 }
 0x130   : > { %590 = vst [vmem:[#allocation2 + $0x2f0] sm:$0xff] %v4982_v0  ;;  %591 = vst [vmem:[#allocation2 + $0x2f8] sm:$0xff] %v4982_v0 }
 0x131   : > { %592 = vst [vmem:[#allocation2 + $0x300] sm:$0xff] %v4982_v0  ;;  %593 = vst [vmem:[#allocation2 + $0x308] sm:$0xff] %v4982_v0 }
 0x132   : > { %594 = vst [vmem:[#allocation2 + $0x310] sm:$0xff] %v4982_v0  ;;  %595 = vst [vmem:[#allocation2 + $0x318] sm:$0xff] %v4982_v0 }
 0x133   : > { %596 = vst [vmem:[#allocation2 + $0x320] sm:$0xff] %v4982_v0  ;;  %597 = vst [vmem:[#allocation2 + $0x328] sm:$0xff] %v4982_v0 }
 0x134   : > { %598 = vst [vmem:[#allocation2 + $0x330] sm:$0xff] %v4982_v0  ;;  %599 = vst [vmem:[#allocation2 + $0x338] sm:$0xff] %v4982_v0 }
 0x135   : > { %600 = vst [vmem:[#allocation2 + $0x340] sm:$0xff] %v4982_v0  ;;  %601 = vst [vmem:[#allocation2 + $0x348] sm:$0xff] %v4982_v0 }
 0x136   : > { %602 = vst [vmem:[#allocation2 + $0x350] sm:$0xff] %v4982_v0  ;;  %603 = vst [vmem:[#allocation2 + $0x358] sm:$0xff] %v4982_v0 }
 0x137   : > { %604 = vst [vmem:[#allocation2 + $0x360] sm:$0xff] %v4982_v0  ;;  %605 = vst [vmem:[#allocation2 + $0x368] sm:$0xff] %v4982_v0 }
 0x138   : > { %606 = vst [vmem:[#allocation2 + $0x370] sm:$0xff] %v4982_v0  ;;  %607 = vst [vmem:[#allocation2 + $0x378] sm:$0xff] %v4982_v0 }
 0x139   : > { %608 = vst [vmem:[#allocation2 + $0x380] sm:$0xff] %v4982_v0  ;;  %609 = vst [vmem:[#allocation2 + $0x388] sm:$0xff] %v4982_v0 }
 0x13a   : > { %610 = vst [vmem:[#allocation2 + $0x390] sm:$0xff] %v4982_v0  ;;  %611 = vst [vmem:[#allocation2 + $0x398] sm:$0xff] %v4982_v0 }
 0x13b   : > { %612 = vst [vmem:[#allocation2 + $0x3a0] sm:$0xff] %v4982_v0  ;;  %613 = vst [vmem:[#allocation2 + $0x3a8] sm:$0xff] %v4982_v0 }
 0x13c   : > { %614 = vst [vmem:[#allocation2 + $0x3b0] sm:$0xff] %v4982_v0  ;;  %615 = vst [vmem:[#allocation2 + $0x3b8] sm:$0xff] %v4982_v0 }
 0x13d   : > { %616 = vst [vmem:[#allocation2 + $0x3c0] sm:$0xff] %v4982_v0  ;;  %617 = vst [vmem:[#allocation2 + $0x3c8] sm:$0xff] %v4982_v0 }
 0x13e   : > { %618 = vst [vmem:[#allocation2 + $0x3d0] sm:$0xff] %v4982_v0  ;;  %619 = vst [vmem:[#allocation2 + $0x3d8] sm:$0xff] %v4982_v0 }
 0x13f   : > { %620 = vst [vmem:[#allocation2 + $0x3e0] sm:$0xff] %v4982_v0  ;;  %621 = vst [vmem:[#allocation2 + $0x3e8] sm:$0xff] %v4982_v0 }
 0x140   : > { %622 = vst [vmem:[#allocation2 + $0x3f0] sm:$0xff] %v4982_v0  ;;  %623 = vst [vmem:[#allocation2 + $0x3f8] sm:$0xff] %v4982_v0 }
 0x141 PF: > { %v768_v1 = vld [vmem:[%s5436_s28] sm:$0xff]  ;;  %v769_v3 = vld [vmem:[%s5436_s28 + $0x8] sm:$0xff] }
 0x142   : > { %v772_v2 = vld [vmem:[%s5436_s28 + $0x20] sm:$0xff]  ;;  %v773_v5 = vld [vmem:[%s5436_s28 + $0x28] sm:$0xff] }
 0x143   : > { %v4034_v4 = vcombine.high %v768_v1, %v772_v2  ;;  %v4033_v6 = vcombine.low %v768_v1, %v772_v2  ;;  %v776_v7 = vld [vmem:[%s5436_s28 + $0x40] sm:$0xff]  ;;  %v4036_v9 = vcombine.high %v769_v3, %v773_v5  ;;  %v4035_v10 = vcombine.low %v769_v3, %v773_v5  ;;  %v777_v12 = vld [vmem:[%s5436_s28 + $0x48] sm:$0xff] }
 0x144   : > { %v780_v8 = vld [vmem:[%s5436_s28 + $0x60] sm:$0xff]  ;;  %v781_v13 = vld [vmem:[%s5436_s28 + $0x68] sm:$0xff] }
 0x145   : > { %v4042_v11 = vcombine.high %v776_v7, %v780_v8  ;;  %v784_v14 = vld [vmem:[%s5436_s28 + $0x80] sm:$0xff]  ;;  %1616 = vmatprep.subr.bf16.mxu0 %v4034_v4  ;;  %v4044_v15 = vcombine.high %v777_v12, %v781_v13  ;;  %v785_v17 = vld [vmem:[%s5436_s28 + $0x88] sm:$0xff]  ;;  %1729 = vmatprep.subr.bf16.mxu1 %v4036_v9  ;;  %v4041_v19 = vcombine.low %v776_v7, %v780_v8 }
 0x146   : > { %v788_v16 = vld [vmem:[%s5436_s28 + $0xa0] sm:$0xff]  ;;  %v789_v18 = vld [vmem:[%s5436_s28 + $0xa8] sm:$0xff]  ;;  %1617 = vmatpush1.bf16.msra.mxu0 %v4033_v6  ;;  %1730 = vmatpush1.bf16.msra.mxu1 %v4035_v10  ;;  %v4043_v20 = vcombine.low %v777_v12, %v781_v13 }
 0x147   : > { %1618 = vmatprep.subr.bf16.mxu0 %v4042_v11  ;;  %v4050_v21 = vcombine.high %v784_v14, %v788_v16  ;;  %1731 = vmatprep.subr.bf16.mxu1 %v4044_v15  ;;  %v4052_v22 = vcombine.high %v785_v17, %v789_v18  ;;  %v792_v23 = vld [vmem:[%s5436_s28 + $0xc0] sm:$0xff]  ;;  %v793_v25 = vld [vmem:[%s5436_s28 + $0xc8] sm:$0xff]  ;;  %v4049_v27 = vcombine.low %v784_v14, %v788_v16 }
 0x148   : > { %v796_v24 = vld [vmem:[%s5436_s28 + $0xe0] sm:$0xff]  ;;  %v797_v26 = vld [vmem:[%s5436_s28 + $0xe8] sm:$0xff]  ;;  %v4051_v28 = vcombine.low %v785_v17, %v789_v18 }
 0x149   : > { %v4058_v29 = vcombine.high %v792_v23, %v796_v24  ;;  %v4060_v30 = vcombine.high %v793_v25, %v797_v26  ;;  %v800_v31 = vld [vmem:[%s5436_s28 + $0x100] sm:$0xff]  ;;  %v801_v33 = vld [vmem:[%s5436_s28 + $0x108] sm:$0xff]  ;;  %v4057_v35 = vcombine.low %v792_v23, %v796_v24  ;;  %v4059_v36 = vcombine.low %v793_v25, %v797_v26 }
 0x14a   : > { %1619 = vmatpush1.bf16.msra.mxu0 %v4041_v19  ;;  %1732 = vmatpush1.bf16.msra.mxu1 %v4043_v20  ;;  %v804_v32 = vld [vmem:[%s5436_s28 + $0x120] sm:$0xff]  ;;  %v805_v34 = vld [vmem:[%s5436_s28 + $0x128] sm:$0xff] }
 0x14b   : > { %1620 = vmatprep.subr.bf16.mxu0 %v4050_v21  ;;  %1733 = vmatprep.subr.bf16.mxu1 %v4052_v22  ;;  %v4066_v37 = vcombine.high %v800_v31, %v804_v32  ;;  %v4068_v38 = vcombine.high %v801_v33, %v805_v34  ;;  %v808_v39 = vld [vmem:[%s5436_s28 + $0x140] sm:$0xff]  ;;  %v809_v41 = vld [vmem:[%s5436_s28 + $0x148] sm:$0xff]  ;;  %v4065_v43 = vcombine.low %v800_v31, %v804_v32 }
 0x14c   : > { %v812_v40 = vld [vmem:[%s5436_s28 + $0x160] sm:$0xff]  ;;  %v813_v42 = vld [vmem:[%s5436_s28 + $0x168] sm:$0xff]  ;;  %v4067_v44 = vcombine.low %v801_v33, %v805_v34 }
 0x14d   : > { %v4074_v45 = vcombine.high %v808_v39, %v812_v40  ;;  %v4076_v46 = vcombine.high %v809_v41, %v813_v42  ;;  %v816_v47 = vld [vmem:[%s5436_s28 + $0x180] sm:$0xff]  ;;  %v817_v49 = vld [vmem:[%s5436_s28 + $0x188] sm:$0xff]  ;;  %v4073_v51 = vcombine.low %v808_v39, %v812_v40  ;;  %v4075_v52 = vcombine.low %v809_v41, %v813_v42 }
 0x14e   : > { %1621 = vmatpush1.bf16.msra.mxu0 %v4049_v27  ;;  %1734 = vmatpush1.bf16.msra.mxu1 %v4051_v28  ;;  %v820_v48 = vld [vmem:[%s5436_s28 + $0x1a0] sm:$0xff]  ;;  %v821_v50 = vld [vmem:[%s5436_s28 + $0x1a8] sm:$0xff] }
 0x14f   : > { %1622 = vmatprep.subr.bf16.mxu0 %v4058_v29  ;;  %1735 = vmatprep.subr.bf16.mxu1 %v4060_v30  ;;  %v4082_v53 = vcombine.high %v816_v47, %v820_v48  ;;  %v4084_v54 = vcombine.high %v817_v49, %v821_v50  ;;  %v824_v55 = vld [vmem:[%s5436_s28 + $0x1c0] sm:$0xff]  ;;  %v825_v58 = vld [vmem:[%s5436_s28 + $0x1c8] sm:$0xff]  ;;  %v4081_v60 = vcombine.low %v816_v47, %v820_v48 }
 0x150   : > { %v828_v56 = vld [vmem:[%s5436_s28 + $0x1e0] sm:$0xff]  ;;  %v829_v59 = vld [vmem:[%s5436_s28 + $0x1e8] sm:$0xff]  ;;  %v4083_v61 = vcombine.low %v817_v49, %v821_v50 }
 0x151   : > { %v5620_v57 = vld [vmem:[%s5428_s10 + $0x4] ss:$8 sps:$4 sm:$0xff]   ;;  %v4090_v62 = vcombine.high %v824_v55, %v828_v56  ;;  %v4092_v63 = vcombine.high %v825_v58, %v829_v59  ;;  %v4089_v4 = vcombine.low %v824_v55, %v828_v56  ;;  %v4091_v5 = vcombine.low %v825_v58, %v829_v59 }
 0x152   : > { %1623 = vmatpush1.bf16.msra.mxu0 %v4057_v35  ;;  %1736 = vmatpush1.bf16.msra.mxu1 %v4059_v36  ;;  %v832_v0 = vld [vmem:[%s5436_s28 + $0x200] sm:$0xff]  ;;  %v833_v2 = vld [vmem:[%s5436_s28 + $0x208] sm:$0xff] }
 0x153   : > { %1624 = vmatprep.subr.bf16.mxu0 %v4066_v37  ;;  %1737 = vmatprep.subr.bf16.mxu1 %v4068_v38  ;;  %v836_v1 = vld [vmem:[%s5436_s28 + $0x220] sm:$0xff]  ;;  %v837_v3 = vld [vmem:[%s5436_s28 + $0x228] sm:$0xff] }
 0x154   : > { %1648 = vmatprep.mubr.bf16.mxu0 %v5620_v57  ;;  %1761 = vmatprep.mubr.bf16.mxu1 %v5620_v57  ;;  %v4098_v6 = vcombine.high %v832_v0, %v836_v1  ;;  %v4100_v7 = vcombine.high %v833_v2, %v837_v3  ;;  %v840_v8 = vld [vmem:[%s5436_s28 + $0x240] sm:$0xff]  ;;  %v841_v10 = vld [vmem:[%s5436_s28 + $0x248] sm:$0xff]  ;;  %v4097_v12 = vcombine.low %v832_v0, %v836_v1  ;;  %v770_v1 = vld [vmem:[%s5436_s28 + $0x10] sm:$0xff] }
 0x155   : > { %v844_v9 = vld [vmem:[%s5436_s28 + $0x260] sm:$0xff]  ;;  %v845_v11 = vld [vmem:[%s5436_s28 + $0x268] sm:$0xff]  ;;  %v4099_v13 = vcombine.low %v833_v2, %v837_v3  ;;  %v774_v2 = vld [vmem:[%s5436_s28 + $0x30] sm:$0xff] }
 0x156   : > { %1625 = vmatpush1.bf16.msra.mxu0 %v4065_v43  ;;  %1738 = vmatpush1.bf16.msra.mxu1 %v4067_v44  ;;  %v4106_v14 = vcombine.high %v840_v8, %v844_v9  ;;  %v4108_v15 = vcombine.high %v841_v10, %v845_v11  ;;  %v848_v16 = vld [vmem:[%s5436_s28 + $0x280] sm:$0xff]  ;;  %v849_v18 = vld [vmem:[%s5436_s28 + $0x288] sm:$0xff]  ;;  %v4105_v20 = vcombine.low %v840_v8, %v844_v9  ;;  %v771_v3 = vld [vmem:[%s5436_s28 + $0x18] sm:$0xff] }
 0x157   : > { %1626 = vmatprep.subr.bf16.mxu0 %v4074_v45  ;;  %1739 = vmatprep.subr.bf16.mxu1 %v4076_v46  ;;  %v852_v17 = vld [vmem:[%s5436_s28 + $0x2a0] sm:$0xff]  ;;  %v853_v19 = vld [vmem:[%s5436_s28 + $0x2a8] sm:$0xff]  ;;  %v4107_v21 = vcombine.low %v841_v10, %v845_v11  ;;  %v778_v9 = vld [vmem:[%s5436_s28 + $0x50] sm:$0xff] }
 0x158   : > { %v4114_v22 = vcombine.high %v848_v16, %v852_v17  ;;  %v4116_v23 = vcombine.high %v849_v18, %v853_v19  ;;  %v856_v24 = vld [vmem:[%s5436_s28 + $0x2c0] sm:$0xff]  ;;  %v857_v26 = vld [vmem:[%s5436_s28 + $0x2c8] sm:$0xff]  ;;  %v4113_v28 = vcombine.low %v848_v16, %v852_v17  ;;  %v4115_v29 = vcombine.low %v849_v18, %v853_v19  ;;  %v782_v10 = vld [vmem:[%s5436_s28 + $0x70] sm:$0xff] }
 0x159   : > { %v860_v25 = vld [vmem:[%s5436_s28 + $0x2e0] sm:$0xff]  ;;  %v861_v27 = vld [vmem:[%s5436_s28 + $0x2e8] sm:$0xff]  ;;  %v4046_v16 = vcombine.high %v778_v9, %v782_v10  ;;  %v5670_v18 = vld [vmem:[%s5428_s10 + $0x14] ss:$8 sps:$4 sm:$0xff]  }
 0x15a   : > { %1627 = vmatpush1.bf16.msra.mxu0 %v4073_v51  ;;  %1740 = vmatpush1.bf16.msra.mxu1 %v4075_v52  ;;  %v4122_v30 = vcombine.high %v856_v24, %v860_v25  ;;  %v4124_v31 = vcombine.high %v857_v26, %v861_v27  ;;  %v864_v32 = vld [vmem:[%s5436_s28 + $0x300] sm:$0xff]  ;;  %v865_v34 = vld [vmem:[%s5436_s28 + $0x308] sm:$0xff]  ;;  %v4121_v36 = vcombine.low %v856_v24, %v860_v25  ;;  %v786_v19 = vld [vmem:[%s5436_s28 + $0x90] sm:$0xff] }
 0x15b   : > { %1628 = vmatprep.subr.bf16.mxu0 %v4082_v53  ;;  %1741 = vmatprep.subr.bf16.mxu1 %v4084_v54  ;;  %v868_v33 = vld [vmem:[%s5436_s28 + $0x320] sm:$0xff]  ;;  %v869_v35 = vld [vmem:[%s5436_s28 + $0x328] sm:$0xff]  ;;  %v4123_v37 = vcombine.low %v857_v26, %v861_v27  ;;  %v794_v27 = vld [vmem:[%s5436_s28 + $0xd0] sm:$0xff] }
 0x15c   : > { %v4130_v38 = vcombine.high %v864_v32, %v868_v33  ;;  %v4132_v39 = vcombine.high %v865_v34, %v869_v35  ;;  %v872_v40 = vld [vmem:[%s5436_s28 + $0x340] sm:$0xff]  ;;  %v873_v42 = vld [vmem:[%s5436_s28 + $0x348] sm:$0xff]  ;;  %v4129_v44 = vcombine.low %v864_v32, %v868_v33  ;;  %v4131_v45 = vcombine.low %v865_v34, %v869_v35 }
 0x15d   : > { %v876_v41 = vld [vmem:[%s5436_s28 + $0x360] sm:$0xff]  ;;  %v877_v43 = vld [vmem:[%s5436_s28 + $0x368] sm:$0xff] }
 0x15e   : > { %1629 = vmatpush1.bf16.msra.mxu0 %v4081_v60  ;;  %1742 = vmatpush1.bf16.msra.mxu1 %v4083_v61  ;;  %v4138_v46 = vcombine.high %v872_v40, %v876_v41  ;;  %v4140_v47 = vcombine.high %v873_v42, %v877_v43  ;;  %v880_v48 = vld [vmem:[%s5436_s28 + $0x380] sm:$0xff]  ;;  %v881_v50 = vld [vmem:[%s5436_s28 + $0x388] sm:$0xff]  ;;  %v4137_v52 = vcombine.low %v872_v40, %v876_v41  ;;  %v807_v40 = vld [vmem:[%s5436_s28 + $0x138] sm:$0xff] }
 0x15f   : > { %1630 = vmatprep.subr.bf16.mxu0 %v4090_v62  ;;  %1743 = vmatprep.subr.bf16.mxu1 %v4092_v63  ;;  %v884_v49 = vld [vmem:[%s5436_s28 + $0x3a0] sm:$0xff]  ;;  %v885_v51 = vld [vmem:[%s5436_s28 + $0x3a8] sm:$0xff]  ;;  %v4139_v53 = vcombine.low %v873_v42, %v877_v43 }
 0x160   : > { %v4146_v54 = vcombine.high %v880_v48, %v884_v49  ;;  %v4148_v55 = vcombine.high %v881_v50, %v885_v51  ;;  %v888_v56 = vld [vmem:[%s5436_s28 + $0x3c0] sm:$0xff]  ;;  %v889_v59 = vld [vmem:[%s5436_s28 + $0x3c8] sm:$0xff]  ;;  %v4145_v61 = vcombine.low %v880_v48, %v884_v49  ;;  %v4147_v62 = vcombine.low %v881_v50, %v885_v51  ;;  %v811_v48 = vld [vmem:[%s5436_s28 + $0x158] sm:$0xff] }
 0x161   : > { %v892_v58 = vld [vmem:[%s5436_s28 + $0x3e0] sm:$0xff]  ;;  %v893_v60 = vld [vmem:[%s5436_s28 + $0x3e8] sm:$0xff]  ;;  %v815_v49 = vld [vmem:[%s5436_s28 + $0x178] sm:$0xff] }
 0x162   : > { %1631 = vmatpush1.bf16.msra.mxu0 %v4089_v4  ;;  %1744 = vmatpush1.bf16.msra.mxu1 %v4091_v5  ;;  %v4154_v63 = vcombine.high %v888_v56, %v892_v58  ;;  %v4156_v0 = vcombine.high %v889_v59, %v893_v60  ;;  %v775_v4 = vld [vmem:[%s5436_s28 + $0x38] sm:$0xff]  ;;  %v4153_v5 = vcombine.low %v888_v56, %v892_v58  ;;  %v5665_v11 = vld [vmem:[%s5428_s10] ss:$8 sps:$4 sm:$0xff]   ;;  %v822_v56 = vld [vmem:[%s5436_s28 + $0x1b0] sm:$0xff] }
 0x163   : > { %1632 = vmatprep.subr.bf16.mxu0 %v4098_v6  ;;  %1745 = vmatprep.subr.bf16.mxu1 %v4100_v7  ;;  %v4155_v6 = vcombine.low %v889_v59, %v893_v60  ;;  %v4038_v7 = vcombine.high %v770_v1, %v774_v2  ;;  %v4040_v8 = vcombine.high %v771_v3, %v775_v4  ;;  %v819_v58 = vld [vmem:[%s5436_s28 + $0x198] sm:$0xff] }
 0x164   : > { %v823_v59 = vld [vmem:[%s5436_s28 + $0x1b8] sm:$0xff] }
 0x166   : > { %1633 = vmatpush1.bf16.msra.mxu0 %v4097_v12  ;;  %1746 = vmatpush1.bf16.msra.mxu1 %v4099_v13  ;;  %v779_v12 = vld [vmem:[%s5436_s28 + $0x58] sm:$0xff] }
 0x167   : > { %1634 = vmatprep.subr.bf16.mxu0 %v4106_v14  ;;  %1747 = vmatprep.subr.bf16.mxu1 %v4108_v15  ;;  %v783_v13 = vld [vmem:[%s5436_s28 + $0x78] sm:$0xff]  ;;  %v4037_v14 = vcombine.low %v770_v1, %v774_v2  ;;  %v4039_v15 = vcombine.low %v771_v3, %v775_v4  ;;  %v830_v1 = vld [vmem:[%s5436_s28 + $0x1f0] sm:$0xff] }
 0x168   : > { %v4048_v17 = vcombine.high %v779_v12, %v783_v13  ;;  %v4047_v24 = vcombine.low %v779_v12, %v783_v13  ;;  %v5719_v2 = vld [vmem:[%s5428_s10 + $0x30] ss:$8 sps:$4 sm:$0xff]  }
 0x169   : > { %v827_v3 = vld [vmem:[%s5436_s28 + $0x1d8] sm:$0xff]  ;;  %v838_v12 = vld [vmem:[%s5436_s28 + $0x230] sm:$0xff] }
 0x16a   : > { %1635 = vmatpush1.bf16.msra.mxu0 %v4105_v20  ;;  %1748 = vmatpush1.bf16.msra.mxu1 %v4107_v21  ;;  %v790_v20 = vld [vmem:[%s5436_s28 + $0xb0] sm:$0xff]  ;;  %v787_v21 = vld [vmem:[%s5436_s28 + $0x98] sm:$0xff] }
 0x16b   : > { %1636 = vmatprep.subr.bf16.mxu0 %v4114_v22  ;;  %1749 = vmatprep.subr.bf16.mxu1 %v4116_v23  ;;  %v791_v22 = vld [vmem:[%s5436_s28 + $0xb8] sm:$0xff]  ;;  %v4045_v23 = vcombine.low %v778_v9, %v782_v10  ;;  %v4054_v25 = vcombine.high %v786_v19, %v790_v20  ;;  %v4053_v32 = vcombine.low %v786_v19, %v790_v20  ;;  %v5724_v9 = vld [vmem:[%s5428_s10 + $0x44] ss:$8 sps:$4 sm:$0xff]   ;;  %v834_v10 = vld [vmem:[%s5436_s28 + $0x210] sm:$0xff] }
 0x16c   : > { %v4056_v26 = vcombine.high %v787_v21, %v791_v22  ;;  %v4055_v33 = vcombine.low %v787_v21, %v791_v22  ;;  %v831_v4 = vld [vmem:[%s5436_s28 + $0x1f8] sm:$0xff]  ;;  %v842_v20 = vld [vmem:[%s5436_s28 + $0x250] sm:$0xff]  ;;  %v5737_v22 = vld [vmem:[%s5428_s10 + $0x40] ss:$8 sps:$4 sm:$0xff]  }
 0x16d   : > { %v835_v13 = vld [vmem:[%s5436_s28 + $0x218] sm:$0xff]  ;;  %v846_v21 = vld [vmem:[%s5436_s28 + $0x270] sm:$0xff] }
 0x16e   : > { %1637 = vmatpush1.bf16.msra.mxu0 %v4113_v28  ;;  %1750 = vmatpush1.bf16.msra.mxu1 %v4115_v29  ;;  %v798_v28 = vld [vmem:[%s5436_s28 + $0xf0] sm:$0xff] }
 0x16f   : > { %1638 = vmatprep.subr.bf16.mxu0 %v4122_v30  ;;  %1751 = vmatprep.subr.bf16.mxu1 %v4124_v31  ;;  %v5683_v29 = vld [vmem:[%s5428_s10 + $0x10] ss:$8 sps:$4 sm:$0xff]   ;;  %v4062_v34 = vcombine.high %v794_v27, %v798_v28  ;;  %v4061_v41 = vcombine.low %v794_v27, %v798_v28  ;;  %v4110_v27 = vcombine.high %v842_v20, %v846_v21 }
 0x170   : > { %v795_v30 = vld [vmem:[%s5436_s28 + $0xd8] sm:$0xff] }
 0x171   : > { %v799_v31 = vld [vmem:[%s5436_s28 + $0xf8] sm:$0xff] }
 0x172   : > { %1639 = vmatpush1.bf16.msra.mxu0 %v4121_v36  ;;  %1752 = vmatpush1.bf16.msra.mxu1 %v4123_v37  ;;  %v4064_v35 = vcombine.high %v795_v30, %v799_v31  ;;  %v5688_v36 = vld [vmem:[%s5428_s10 + $0x24] ss:$8 sps:$4 sm:$0xff]   ;;  %v802_v37 = vld [vmem:[%s5436_s28 + $0x110] sm:$0xff]  ;;  %v4063_v42 = vcombine.low %v795_v30, %v799_v31 }
 0x173   : > { %1640 = vmatprep.subr.bf16.mxu0 %v4130_v38  ;;  %1753 = vmatprep.subr.bf16.mxu1 %v4132_v39  ;;  %v806_v38 = vld [vmem:[%s5436_s28 + $0x130] sm:$0xff]  ;;  %v803_v39 = vld [vmem:[%s5436_s28 + $0x118] sm:$0xff] }
 0x174   : > { %v4070_v43 = vcombine.high %v802_v37, %v806_v38  ;;  %v4069_v50 = vcombine.low %v802_v37, %v806_v38  ;;  %v4071_v51 = vcombine.low %v803_v39, %v807_v40  ;;  %v5742_v30 = vld [vmem:[%s5428_s10 + $0x54] ss:$8 sps:$4 sm:$0xff]  }
 0x175   : > { %v850_v31 = vld [vmem:[%s5436_s28 + $0x290] sm:$0xff] }
 0x176   : > { %1641 = vmatpush1.bf16.msra.mxu0 %v4129_v44  ;;  %1754 = vmatpush1.bf16.msra.mxu1 %v4131_v45  ;;  %v4072_v44 = vcombine.high %v803_v39, %v807_v40  ;;  %v810_v45 = vld [vmem:[%s5436_s28 + $0x150] sm:$0xff] }
 0x177   : > { %1642 = vmatprep.subr.bf16.mxu0 %v4138_v46  ;;  %1755 = vmatprep.subr.bf16.mxu1 %v4140_v47  ;;  %v814_v46 = vld [vmem:[%s5436_s28 + $0x170] sm:$0xff]  ;;  %v5701_v47 = vld [vmem:[%s5428_s10 + $0x20] ss:$8 sps:$4 sm:$0xff]  }
 0x178   : > { %v4077_v60 = vcombine.low %v810_v45, %v814_v46  ;;  %v858_v40 = vld [vmem:[%s5436_s28 + $0x2d0] sm:$0xff] }
 0x17a   : > { %1643 = vmatpush1.bf16.msra.mxu0 %v4137_v52  ;;  %1756 = vmatpush1.bf16.msra.mxu1 %v4139_v53  ;;  %v4078_v52 = vcombine.high %v810_v45, %v814_v46  ;;  %v4080_v53 = vcombine.high %v811_v48, %v815_v49 }
 0x17b   : > { %1644 = vmatprep.subr.bf16.mxu0 %v4146_v54  ;;  %1757 = vmatprep.subr.bf16.mxu1 %v4148_v55  ;;  %v5706_v54 = vld [vmem:[%s5428_s10 + $0x34] ss:$8 sps:$4 sm:$0xff]  }
 0x17c   : > { %v818_v55 = vld [vmem:[%s5436_s28 + $0x190] sm:$0xff] }
 0x17e   : > { %1645 = vmatpush1.bf16.msra.mxu0 %v4145_v61  ;;  %1758 = vmatpush1.bf16.msra.mxu1 %v4147_v62  ;;  %v4079_v61 = vcombine.low %v811_v48, %v815_v49  ;;  %v4086_v62 = vcombine.high %v818_v55, %v822_v56 }
 0x17f   : > { %1646 = vmatprep.subr.bf16.mxu0 %v4154_v63  ;;  %1759 = vmatprep.subr.bf16.mxu1 %v4156_v0  ;;  %v4088_v63 = vcombine.high %v819_v58, %v823_v59  ;;  %v826_v0 = vld [vmem:[%s5436_s28 + $0x1d0] sm:$0xff] }
 0x182   : > { %1647 = vmatpush1.bf16.msra.mxu0 %v4153_v5  ;;  %1760 = vmatpush1.bf16.msra.mxu1 %v4155_v6  ;;  %v4085_v5 = vcombine.low %v818_v55, %v822_v56  ;;  %v4087_v6 = vcombine.low %v819_v58, %v823_v59  ;;  %v871_v55 = vld [vmem:[%s5436_s28 + $0x338] sm:$0xff] }
 0x183   : > { %1842 = vmatprep.subr.bf16.mxu0 %v4038_v7  ;;  %1955 = vmatprep.subr.bf16.mxu1 %v4040_v8  ;;  %v4094_v7 = vcombine.high %v826_v0, %v830_v1  ;;  %v4096_v8 = vcombine.high %v827_v3, %v831_v4 }
 0x185   : > { %1649 = vmatmul.mubr.bf16.vlgmr.msra.gmra.mrb[0].mxu0 %v5665_v11  ;;  %1762 = vmatmul.mubr.bf16.vlgmr.msra.gmra.mrb[0].mxu1 %v5665_v11 }
 0x186   : > { %1843 = vmatpush1.bf16.msra.mxu0 %v4037_v14  ;;  %1956 = vmatpush1.bf16.msra.mxu1 %v4039_v15  ;;  %v839_v14 = vld [vmem:[%s5436_s28 + $0x238] sm:$0xff]  ;;  %v4093_v15 = vcombine.low %v826_v0, %v830_v1 }
 0x187   : > { %1844 = vmatprep.subr.bf16.mxu0 %v4046_v16  ;;  %1957 = vmatprep.subr.bf16.mxu1 %v4048_v17  ;;  %v4095_v16 = vcombine.low %v827_v3, %v831_v4  ;;  %v4102_v17 = vcombine.high %v834_v10, %v838_v12  ;;  %v4104_v19 = vcombine.high %v835_v13, %v839_v14  ;;  %v875_v0 = vld [vmem:[%s5436_s28 + $0x358] sm:$0xff] }
 0x188   : > { %1658 = vmatprep.mubr.bf16.mxu0 %v5670_v18  ;;  %1771 = vmatprep.mubr.bf16.mxu1 %v5670_v18  ;;  %v879_v1 = vld [vmem:[%s5436_s28 + $0x378] sm:$0xff] }
 0x18a   : > { %1845 = vmatpush1.bf16.msra.mxu0 %v4045_v23  ;;  %1958 = vmatpush1.bf16.msra.mxu1 %v4047_v24  ;;  %v843_v23 = vld [vmem:[%s5436_s28 + $0x258] sm:$0xff] }
 0x18b   : > { %1846 = vmatprep.subr.bf16.mxu0 %v4054_v25  ;;  %1959 = vmatprep.subr.bf16.mxu1 %v4056_v26  ;;  %v847_v24 = vld [vmem:[%s5436_s28 + $0x278] sm:$0xff]  ;;  %v4101_v25 = vcombine.low %v834_v10, %v838_v12  ;;  %v4103_v26 = vcombine.low %v835_v13, %v839_v14  ;;  %v886_v10 = vld [vmem:[%s5436_s28 + $0x3b0] sm:$0xff] }
 0x18c   : > { %v4112_v28 = vcombine.high %v843_v23, %v847_v24  ;;  %v4111_v37 = vcombine.low %v843_v23, %v847_v24  ;;  %v883_v12 = vld [vmem:[%s5436_s28 + $0x398] sm:$0xff] }
 0x18d   : > { %1659 = vmatmul.mubr.bf16.gmra.mrb[4].mxu0 %v5683_v29  ;;  %1772 = vmatmul.mubr.bf16.gmra.mrb[4].mxu1 %v5683_v29  ;;  %v887_v13 = vld [vmem:[%s5436_s28 + $0x3b8] sm:$0xff] }
 0x18e   : > { %1847 = vmatpush1.bf16.msra.mxu0 %v4053_v32  ;;  %1960 = vmatpush1.bf16.msra.mxu1 %v4055_v33  ;;  %v854_v32 = vld [vmem:[%s5436_s28 + $0x2b0] sm:$0xff]  ;;  %v851_v33 = vld [vmem:[%s5436_s28 + $0x298] sm:$0xff] }
 0x18f   : > { %1848 = vmatprep.subr.bf16.mxu0 %v4062_v34  ;;  %1961 = vmatprep.subr.bf16.mxu1 %v4064_v35  ;;  %v855_v34 = vld [vmem:[%s5436_s28 + $0x2b8] sm:$0xff]  ;;  %v4109_v35 = vcombine.low %v842_v20, %v846_v21  ;;  %v4118_v38 = vcombine.high %v850_v31, %v854_v32  ;;  %v4117_v45 = vcombine.low %v850_v31, %v854_v32  ;;  %v894_v20 = vld [vmem:[%s5436_s28 + $0x3f0] sm:$0xff] }
 0x190   : > { %1668 = vmatprep.mubr.bf16.mxu0 %v5688_v36  ;;  %1781 = vmatprep.mubr.bf16.mxu1 %v5688_v36  ;;  %v4120_v39 = vcombine.high %v851_v33, %v855_v34  ;;  %v4119_v46 = vcombine.low %v851_v33, %v855_v34  ;;  %v4607_v21 = vld [vmem:[%s5428_s10 + $0x70] ss:$8 sps:$4 sm:$0xff]  }
 0x191   : > { %v891_v23 = vld [vmem:[%s5436_s28 + $0x3d8] sm:$0xff] }
 0x192   : > { %1849 = vmatpush1.bf16.msra.mxu0 %v4061_v41  ;;  %1962 = vmatpush1.bf16.msra.mxu1 %v4063_v42  ;;  %v862_v41 = vld [vmem:[%s5436_s28 + $0x2f0] sm:$0xff]  ;;  %v895_v24 = vld [vmem:[%s5436_s28 + $0x3f8] sm:$0xff] }
 0x193   : > { %1850 = vmatprep.subr.bf16.mxu0 %v4070_v43  ;;  %1963 = vmatprep.subr.bf16.mxu1 %v4072_v44  ;;  %v5755_v42 = vld [vmem:[%s5428_s10 + $0x50] ss:$8 sps:$4 sm:$0xff]   ;;  %v4126_v48 = vcombine.high %v858_v40, %v862_v41  ;;  %v4125_v56 = vcombine.low %v858_v40, %v862_v41  ;;  %v4159_v32 = vcombine.low %v891_v23, %v895_v24 }
 0x194   : > { %v859_v43 = vld [vmem:[%s5436_s28 + $0x2d8] sm:$0xff] }
 0x195   : > { %1669 = vmatmul.mubr.bf16.gmra.mrb[8].mxu0 %v5701_v47  ;;  %1782 = vmatmul.mubr.bf16.gmra.mrb[8].mxu1 %v5701_v47  ;;  %v863_v44 = vld [vmem:[%s5436_s28 + $0x2f8] sm:$0xff] }
 0x196   : > { %1851 = vmatpush1.bf16.msra.mxu0 %v4069_v50  ;;  %1964 = vmatpush1.bf16.msra.mxu1 %v4071_v51  ;;  %v4128_v49 = vcombine.high %v859_v43, %v863_v44  ;;  %v5760_v50 = vld [vmem:[%s5428_s10 + $0x64] ss:$8 sps:$4 sm:$0xff]   ;;  %v866_v51 = vld [vmem:[%s5436_s28 + $0x310] sm:$0xff]  ;;  %v4127_v58 = vcombine.low %v859_v43, %v863_v44 }
 0x197   : > { %1852 = vmatprep.subr.bf16.mxu0 %v4078_v52  ;;  %1965 = vmatprep.subr.bf16.mxu1 %v4080_v53  ;;  %v870_v52 = vld [vmem:[%s5436_s28 + $0x330] sm:$0xff]  ;;  %v867_v53 = vld [vmem:[%s5436_s28 + $0x318] sm:$0xff] }
 0x198   : > { %1678 = vmatprep.mubr.bf16.mxu0 %v5706_v54  ;;  %1791 = vmatprep.mubr.bf16.mxu1 %v5706_v54  ;;  %v4134_v59 = vcombine.high %v866_v51, %v870_v52  ;;  %v4133_v3 = vcombine.low %v866_v51, %v870_v52  ;;  %v4135_v4 = vcombine.low %v867_v53, %v871_v55  ;;  %v643_v52 = vld [vmem:[#allocation2 + $0x98] sm:$0xff] }
 0x19a   : > { %1853 = vmatpush1.bf16.msra.mxu0 %v4077_v60  ;;  %1966 = vmatpush1.bf16.msra.mxu1 %v4079_v61  ;;  %v4136_v60 = vcombine.high %v867_v53, %v871_v55  ;;  %v874_v61 = vld [vmem:[%s5436_s28 + $0x350] sm:$0xff]  ;;  %v648_v53 = vld [vmem:[#allocation2 + $0xc0] sm:$0xff] }
 0x19b   : > { %1854 = vmatprep.subr.bf16.mxu0 %v4086_v62  ;;  %1967 = vmatprep.subr.bf16.mxu1 %v4088_v63  ;;  %v878_v62 = vld [vmem:[%s5436_s28 + $0x370] sm:$0xff]  ;;  %v5773_v63 = vld [vmem:[%s5428_s10 + $0x60] ss:$8 sps:$4 sm:$0xff]  }
 0x19c   : > { %v4141_v14 = vcombine.low %v874_v61, %v878_v62 }
 0x19d   : > { %1679 = vmatmul.mubr.bf16.gmra.mrb[12].mxu0 %v5719_v2  ;;  %1792 = vmatmul.mubr.bf16.gmra.mrb[12].mxu1 %v5719_v2 }
 0x19e   : > { %1855 = vmatpush1.bf16.msra.mxu0 %v4085_v5  ;;  %1968 = vmatpush1.bf16.msra.mxu1 %v4087_v6  ;;  %v4142_v5 = vcombine.high %v874_v61, %v878_v62  ;;  %v4144_v6 = vcombine.high %v875_v0, %v879_v1 }
 0x19f   : > { %1856 = vmatprep.subr.bf16.mxu0 %v4094_v7  ;;  %1969 = vmatprep.subr.bf16.mxu1 %v4096_v8  ;;  %v5778_v7 = vld [vmem:[%s5428_s10 + $0x74] ss:$8 sps:$4 sm:$0xff]   ;;  %s7212_s10 = sld [smem:[#allocation23_spill]] }
 0x1a0   : > { %1688 = vmatprep.mubr.bf16.mxu0 %v5724_v9  ;;  %1801 = vmatprep.mubr.bf16.mxu1 %v5724_v9  ;;  %v882_v8 = vld [vmem:[%s5436_s28 + $0x390] sm:$0xff] }
 0x1a2   : > { %1857 = vmatpush1.bf16.msra.mxu0 %v4093_v15  ;;  %1970 = vmatpush1.bf16.msra.mxu1 %v4095_v16  ;;  %v4143_v15 = vcombine.low %v875_v0, %v879_v1  ;;  %v4150_v16 = vcombine.high %v882_v8, %v886_v10  ;;  %v651_v1 = vld [vmem:[#allocation2 + $0xd8] sm:$0xff] }
 0x1a3   : > { %1858 = vmatprep.subr.bf16.mxu0 %v4102_v17  ;;  %1971 = vmatprep.subr.bf16.mxu1 %v4104_v19  ;;  %v4152_v17 = vcombine.high %v883_v12, %v887_v13  ;;  %v890_v19 = vld [vmem:[%s5436_s28 + $0x3d0] sm:$0xff] }
 0x1a4   : > { %v4157_v31 = vcombine.low %v890_v19, %v894_v20 }
 0x1a5   : > { %1689 = vmatmul.mubr.bf16.gmra.mrb[16].mxu0 %v5737_v22  ;;  %1802 = vmatmul.mubr.bf16.gmra.mrb[16].mxu1 %v5737_v22  ;;  %p4161_p4 = scmp.ne.s32.totalorder %s7212_s10, 1 }
 0x1a6   : > { %1859 = vmatpush1.bf16.msra.mxu0 %v4101_v25  ;;  %1972 = vmatpush1.bf16.msra.mxu1 %v4103_v26  ;;  %v4149_v25 = vcombine.low %v882_v8, %v886_v10  ;;  %v4151_v26 = vcombine.low %v883_v12, %v887_v13  ;;  %v656_v13 = vld [vmem:[#allocation2 + $0x100] sm:$0xff] }
 0x1a7   : > { %1860 = vmatprep.subr.bf16.mxu0 %v4110_v27  ;;  %1973 = vmatprep.subr.bf16.mxu1 %v4112_v28  ;;  %v4158_v27 = vcombine.high %v890_v19, %v894_v20  ;;  %v4160_v28 = vcombine.high %v891_v23, %v895_v24  ;;  %v664_v19 = vld [vmem:[#allocation2 + $0x140] sm:$0xff]  ;;  %v666_v24 = vld [vmem:[#allocation2 + $0x150] sm:$0xff] }
 0x1a8   : > { %1698 = vmatprep.mubr.bf16.mxu0 %v5742_v30  ;;  %1811 = vmatprep.mubr.bf16.mxu1 %v5742_v30 }
 0x1aa   : > { %1861 = vmatpush1.bf16.msra.mxu0 %v4109_v35  ;;  %1974 = vmatpush1.bf16.msra.mxu1 %v4111_v37 }
 0x1ab   : > { %1862 = vmatprep.subr.bf16.mxu0 %v4118_v38  ;;  %1975 = vmatprep.subr.bf16.mxu1 %v4120_v39  ;;  %v635_v38 = vld [vmem:[#allocation2 + $0x58] sm:$0xff] }
 0x1ad   : > { %1699 = vmatmul.mubr.bf16.gmra.mrb[20].mxu0 %v5755_v42  ;;  %1812 = vmatmul.mubr.bf16.gmra.mrb[20].mxu1 %v5755_v42 }
 0x1ae   : > { %1863 = vmatpush1.bf16.msra.mxu0 %v4117_v45  ;;  %1976 = vmatpush1.bf16.msra.mxu1 %v4119_v46 }
 0x1af   : > { %1864 = vmatprep.subr.bf16.mxu0 %v4126_v48  ;;  %1977 = vmatprep.subr.bf16.mxu1 %v4128_v49  ;;  %v640_v48 = vld [vmem:[#allocation2 + $0x80] sm:$0xff]  ;;  %v642_v49 = vld [vmem:[#allocation2 + $0x90] sm:$0xff] }
 0x1b0   : > { %1708 = vmatprep.mubr.bf16.mxu0 %v5760_v50  ;;  %1821 = vmatprep.mubr.bf16.mxu1 %v5760_v50 }
 0x1b2   : > { %1865 = vmatpush1.bf16.msra.mxu0 %v4125_v56  ;;  %1978 = vmatpush1.bf16.msra.mxu1 %v4127_v58 }
 0x1b3   : > { %1866 = vmatprep.subr.bf16.mxu0 %v4134_v59  ;;  %1979 = vmatprep.subr.bf16.mxu1 %v4136_v60  ;;  %v650_v59 = vld [vmem:[#allocation2 + $0xd0] sm:$0xff]  ;;  %v649_v60 = vld [vmem:[#allocation2 + $0xc8] sm:$0xff] }
 0x1b5   : > { %1709 = vmatmul.mubr.bf16.gmra.mrb[24].mxu0 %v5773_v63  ;;  %1822 = vmatmul.mubr.bf16.gmra.mrb[24].mxu1 %v5773_v63 }
 0x1b6   : > { %1867 = vmatpush1.bf16.msra.mxu0 %v4133_v3  ;;  %1980 = vmatpush1.bf16.msra.mxu1 %v4135_v4 }
 0x1b7   : > { %1868 = vmatprep.subr.bf16.mxu0 %v4142_v5  ;;  %1981 = vmatprep.subr.bf16.mxu1 %v4144_v6 }
 0x1b8   : > { %1718 = vmatprep.mubr.bf16.mxu0 %v5778_v7  ;;  %1831 = vmatprep.mubr.bf16.mxu1 %v5778_v7 }
 0x1ba   : > { %1869 = vmatpush1.bf16.msra.mxu0 %v4141_v14  ;;  %1982 = vmatpush1.bf16.msra.mxu1 %v4143_v15  ;;  %v658_v14 = vld [vmem:[#allocation2 + $0x110] sm:$0xff]  ;;  %v657_v15 = vld [vmem:[#allocation2 + $0x108] sm:$0xff] }
 0x1bb   : > { %1870 = vmatprep.subr.bf16.mxu0 %v4150_v16  ;;  %1983 = vmatprep.subr.bf16.mxu1 %v4152_v17  ;;  %v659_v17 = vld [vmem:[#allocation2 + $0x118] sm:$0xff] }
 0x1bd   : > { %1719 = vmatmul.mubr.bf16.gmra.mrb[28].mxu0 %v4607_v21  ;;  %1832 = vmatmul.mubr.bf16.gmra.mrb[28].mxu1 %v4607_v21 }
 0x1be   : > { %1871 = vmatpush1.bf16.msra.mxu0 %v4149_v25  ;;  %1984 = vmatpush1.bf16.msra.mxu1 %v4151_v26  ;;  %v665_v25 = vld [vmem:[#allocation2 + $0x148] sm:$0xff] }
 0x1bf   : > { %1872 = vmatprep.subr.bf16.mxu0 %v4158_v27  ;;  %1985 = vmatprep.subr.bf16.mxu1 %v4160_v28 }
 0x1c0   : > { %1874 = vmatprep.mubr.bf16.mxu0 %v5620_v57  ;;  %1987 = vmatprep.mubr.bf16.mxu1 %v5620_v57  ;;  %v624_v57 = vld [vmem:[#allocation2] sm:$0xff] }
 0x1c2   : > { %1873 = vmatpush1.bf16.msra.mxu0 %v4157_v31  ;;  %1986 = vmatpush1.bf16.msra.mxu1 %v4159_v32  ;;  %v667_v32 = vld [vmem:[#allocation2 + $0x158] sm:$0xff] }
 0x1c5   : > { %1875 = vmatmul.mubr.bf16.vlgmr.msra.gmra.mrb[32].mxu0 %v5665_v11  ;;  %1988 = vmatmul.mubr.bf16.vlgmr.msra.gmra.mrb[32].mxu1 %v5665_v11  ;;  %v626_v11 = vld [vmem:[#allocation2 + $0x10] sm:$0xff] }
 0x1c6   : > { %1884 = vmatprep.mubr.bf16.mxu0 %v5670_v18  ;;  %1997 = vmatprep.mubr.bf16.mxu1 %v5670_v18  ;;  %v625_v18 = vld [vmem:[#allocation2 + $0x8] sm:$0xff] }
 0x1cd   : > { %1885 = vmatmul.mubr.bf16.gmra.mrb[36].mxu0 %v5683_v29  ;;  %1998 = vmatmul.mubr.bf16.gmra.mrb[36].mxu1 %v5683_v29 }
 0x1ce   : > { %1894 = vmatprep.mubr.bf16.mxu0 %v5688_v36  ;;  %2007 = vmatprep.mubr.bf16.mxu1 %v5688_v36  ;;  %v627_v36 = vld [vmem:[#allocation2 + $0x18] sm:$0xff] }
 0x1d5   : > { %1895 = vmatmul.mubr.bf16.gmra.mrb[40].mxu0 %v5701_v47  ;;  %2008 = vmatmul.mubr.bf16.gmra.mrb[40].mxu1 %v5701_v47  ;;  %v632_v47 = vld [vmem:[#allocation2 + $0x40] sm:$0xff] }
 0x1d6   : > { %1904 = vmatprep.mubr.bf16.mxu0 %v5706_v54  ;;  %2017 = vmatprep.mubr.bf16.mxu1 %v5706_v54 }
 0x1dd   : > { %1905 = vmatmul.mubr.bf16.gmra.mrb[44].mxu0 %v5719_v2  ;;  %2018 = vmatmul.mubr.bf16.gmra.mrb[44].mxu1 %v5719_v2 }
 0x1de   : > { %1914 = vmatprep.mubr.bf16.mxu0 %v5724_v9  ;;  %2027 = vmatprep.mubr.bf16.mxu1 %v5724_v9 }
 0x1e5   : > { %1915 = vmatmul.mubr.bf16.gmra.mrb[48].mxu0 %v5737_v22  ;;  %2028 = vmatmul.mubr.bf16.gmra.mrb[48].mxu1 %v5737_v22  ;;  %v634_v22 = vld [vmem:[#allocation2 + $0x50] sm:$0xff] }
 0x1e6   : > { %1924 = vmatprep.mubr.bf16.mxu0 %v5742_v30  ;;  %2037 = vmatprep.mubr.bf16.mxu1 %v5742_v30  ;;  %v633_v30 = vld [vmem:[#allocation2 + $0x48] sm:$0xff] }
 0x1ed   : > { %1925 = vmatmul.mubr.bf16.gmra.mrb[52].mxu0 %v5755_v42  ;;  %2038 = vmatmul.mubr.bf16.gmra.mrb[52].mxu1 %v5755_v42 }
 0x1ee   : > { %1934 = vmatprep.mubr.bf16.mxu0 %v5760_v50  ;;  %2047 = vmatprep.mubr.bf16.mxu1 %v5760_v50  ;;  %v641_v50 = vld [vmem:[#allocation2 + $0x88] sm:$0xff] }
 0x1f5   : > { %1935 = vmatmul.mubr.bf16.gmra.mrb[56].mxu0 %v5773_v63  ;;  %2048 = vmatmul.mubr.bf16.gmra.mrb[56].mxu1 %v5773_v63 }
 0x1f6   : > { %1944 = vmatprep.mubr.bf16.mxu0 %v5778_v7  ;;  %2057 = vmatprep.mubr.bf16.mxu1 %v5778_v7 }
 0x1fd   : > { %1945 = vmatmul.mubr.bf16.gmra.mrb[60].mxu0 %v4607_v21  ;;  %2058 = vmatmul.mubr.bf16.gmra.mrb[60].mxu1 %v4607_v21 }
 0x258   : > { %v1650_v29 = vpop.f32.mrb[0].mxu0  ;;  %v1763_v2 = vpop.f32.mrb[0].mxu1 }
 0x259   : > { %v2068_v54 = vadd.f32 %v1650_v29, %v624_v57  ;;  %v1652_v9 = vpop.f32.mrb[1].mxu0  ;;  %v2070_v33 = vadd.f32 %v1763_v2, %v626_v11  ;;  %v1765_v35 = vpop.f32.mrb[1].mxu1 }
 0x25a   : > { %v2069_v34 = vadd.f32 %v1652_v9, %v625_v18  ;;  %v1654_v37 = vpop.f32.mrb[2].mxu0  ;;  %v2071_v39 = vadd.f32 %v1765_v35, %v627_v36  ;;  %v1767_v41 = vpop.f32.mrb[2].mxu1  ;;  %v672_v9 = vld [vmem:[#allocation2 + $0x180] sm:$0xff] }
 0x25b   : > { %2196 = vst [vmem:[#allocation2] sm:$0xff] %v2068_v54  ;;  %v2076_v40 = vadd.f32 %v1654_v37, %v632_v47  ;;  %v1656_v42 = vpop.f32.mrb[3].mxu0  ;;  %2198 = vst [vmem:[#allocation2 + $0x10] sm:$0xff] %v2070_v33  ;;  %v2078_v43 = vadd.f32 %v1767_v41, %v634_v22  ;;  %v1769_v45 = vpop.f32.mrb[3].mxu1  ;;  %v674_v22 = vld [vmem:[#allocation2 + $0x190] sm:$0xff]  ;;  %v680_v35 = vld [vmem:[#allocation2 + $0x1c0] sm:$0xff] }
 0x25c   : > { %2197 = vst [vmem:[#allocation2 + $0x8] sm:$0xff] %v2069_v34  ;;  %v2077_v44 = vadd.f32 %v1656_v42, %v633_v30  ;;  %2199 = vst [vmem:[#allocation2 + $0x18] sm:$0xff] %v2071_v39  ;;  %v2079_v46 = vadd.f32 %v1769_v45, %v635_v38  ;;  %v673_v30 = vld [vmem:[#allocation2 + $0x188] sm:$0xff]  ;;  %v675_v34 = vld [vmem:[#allocation2 + $0x198] sm:$0xff] }
 0x25d   : > { %2204 = vst [vmem:[#allocation2 + $0x40] sm:$0xff] %v2076_v40  ;;  %2206 = vst [vmem:[#allocation2 + $0x50] sm:$0xff] %v2078_v43  ;;  %v682_v40 = vld [vmem:[#allocation2 + $0x1d0] sm:$0xff]  ;;  %v681_v41 = vld [vmem:[#allocation2 + $0x1c8] sm:$0xff] }
 0x25e   : > { %2205 = vst [vmem:[#allocation2 + $0x48] sm:$0xff] %v2077_v44  ;;  %2207 = vst [vmem:[#allocation2 + $0x58] sm:$0xff] %v2079_v46  ;;  %v683_v46 = vld [vmem:[#allocation2 + $0x1d8] sm:$0xff] }
 0x260   : > { %v1660_v51 = vpop.f32.mrb[4].mxu0  ;;  %v1773_v56 = vpop.f32.mrb[4].mxu1 }
 0x261   : > { %v2084_v55 = vadd.f32 %v1660_v51, %v640_v48  ;;  %v1662_v58 = vpop.f32.mrb[5].mxu0  ;;  %v2086_v61 = vadd.f32 %v1773_v56, %v642_v49  ;;  %v1775_v63 = vpop.f32.mrb[5].mxu1 }
 0x262   : > { %v2085_v62 = vadd.f32 %v1662_v58, %v641_v50  ;;  %v1664_v0 = vpop.f32.mrb[6].mxu0  ;;  %v2087_v3 = vadd.f32 %v1775_v63, %v643_v52  ;;  %v1777_v5 = vpop.f32.mrb[6].mxu1  ;;  %v688_v58 = vld [vmem:[#allocation2 + $0x200] sm:$0xff] }
 0x263   : > { %2212 = vst [vmem:[#allocation2 + $0x80] sm:$0xff] %v2084_v55  ;;  %v2092_v4 = vadd.f32 %v1664_v0, %v648_v53  ;;  %v1666_v6 = vpop.f32.mrb[7].mxu0  ;;  %2214 = vst [vmem:[#allocation2 + $0x90] sm:$0xff] %v2086_v61  ;;  %v2094_v7 = vadd.f32 %v1777_v5, %v650_v59  ;;  %v1779_v10 = vpop.f32.mrb[7].mxu1  ;;  %v690_v59 = vld [vmem:[#allocation2 + $0x210] sm:$0xff]  ;;  %v696_v63 = vld [vmem:[#allocation2 + $0x240] sm:$0xff] }
 0x264   : > { %2213 = vst [vmem:[#allocation2 + $0x88] sm:$0xff] %v2085_v62  ;;  %v2093_v8 = vadd.f32 %v1666_v6, %v649_v60  ;;  %2215 = vst [vmem:[#allocation2 + $0x98] sm:$0xff] %v2087_v3  ;;  %v2095_v12 = vadd.f32 %v1779_v10, %v651_v1  ;;  %v689_v60 = vld [vmem:[#allocation2 + $0x208] sm:$0xff]  ;;  %v691_v62 = vld [vmem:[#allocation2 + $0x218] sm:$0xff] }
 0x265   : > { %2220 = vst [vmem:[#allocation2 + $0xc0] sm:$0xff] %v2092_v4  ;;  %2222 = vst [vmem:[#allocation2 + $0xd0] sm:$0xff] %v2094_v7  ;;  %v698_v4 = vld [vmem:[#allocation2 + $0x250] sm:$0xff]  ;;  %v697_v5 = vld [vmem:[#allocation2 + $0x248] sm:$0xff] }
 0x266   : > { %2221 = vst [vmem:[#allocation2 + $0xc8] sm:$0xff] %v2093_v8  ;;  %2223 = vst [vmem:[#allocation2 + $0xd8] sm:$0xff] %v2095_v12  ;;  %v699_v12 = vld [vmem:[#allocation2 + $0x258] sm:$0xff] }
 0x268   : > { %v1670_v16 = vpop.f32.mrb[8].mxu0  ;;  %v1783_v21 = vpop.f32.mrb[8].mxu1 }
 0x269   : > { %v2100_v20 = vadd.f32 %v1670_v16, %v656_v13  ;;  %v1672_v23 = vpop.f32.mrb[9].mxu0  ;;  %v2102_v26 = vadd.f32 %v1783_v21, %v658_v14  ;;  %v1785_v28 = vpop.f32.mrb[9].mxu1 }
 0x26a   : > { %v2101_v27 = vadd.f32 %v1672_v23, %v657_v15  ;;  %v1674_v31 = vpop.f32.mrb[10].mxu0  ;;  %v2103_v57 = vadd.f32 %v1785_v28, %v659_v17  ;;  %v1787_v18 = vpop.f32.mrb[10].mxu1  ;;  %v704_v23 = vld [vmem:[#allocation2 + $0x280] sm:$0xff] }
 0x26b   : > { %2228 = vst [vmem:[#allocation2 + $0x100] sm:$0xff] %v2100_v20  ;;  %v2108_v11 = vadd.f32 %v1674_v31, %v664_v19  ;;  %v1676_v29 = vpop.f32.mrb[11].mxu0  ;;  %2230 = vst [vmem:[#allocation2 + $0x110] sm:$0xff] %v2102_v26  ;;  %v2110_v36 = vadd.f32 %v1787_v18, %v666_v24  ;;  %v1789_v54 = vpop.f32.mrb[11].mxu1  ;;  %v706_v24 = vld [vmem:[#allocation2 + $0x290] sm:$0xff]  ;;  %v712_v28 = vld [vmem:[#allocation2 + $0x2c0] sm:$0xff] }
 0x26c   : > { %2229 = vst [vmem:[#allocation2 + $0x108] sm:$0xff] %v2101_v27  ;;  %v2109_v47 = vadd.f32 %v1676_v29, %v665_v25  ;;  %2231 = vst [vmem:[#allocation2 + $0x118] sm:$0xff] %v2103_v57  ;;  %v2111_v2 = vadd.f32 %v1789_v54, %v667_v32  ;;  %v705_v25 = vld [vmem:[#allocation2 + $0x288] sm:$0xff]  ;;  %v707_v27 = vld [vmem:[#allocation2 + $0x298] sm:$0xff] }
 0x26d   : > { %2236 = vst [vmem:[#allocation2 + $0x140] sm:$0xff] %v2108_v11  ;;  %2238 = vst [vmem:[#allocation2 + $0x150] sm:$0xff] %v2110_v36  ;;  %v714_v11 = vld [vmem:[#allocation2 + $0x2d0] sm:$0xff]  ;;  %v713_v18 = vld [vmem:[#allocation2 + $0x2c8] sm:$0xff] }
 0x26e   : > { %2237 = vst [vmem:[#allocation2 + $0x148] sm:$0xff] %v2109_v47  ;;  %2239 = vst [vmem:[#allocation2 + $0x158] sm:$0xff] %v2111_v2  ;;  %v715_v2 = vld [vmem:[#allocation2 + $0x2d8] sm:$0xff] }
 0x270   : > { %v1680_v33 = vpop.f32.mrb[12].mxu0  ;;  %v1793_v38 = vpop.f32.mrb[12].mxu1 }
 0x271   : > { %v2116_v37 = vadd.f32 %v1680_v33, %v672_v9  ;;  %v1682_v39 = vpop.f32.mrb[13].mxu0  ;;  %v2118_v42 = vadd.f32 %v1793_v38, %v674_v22  ;;  %v1795_v44 = vpop.f32.mrb[13].mxu1 }
 0x272   : > { %v2117_v43 = vadd.f32 %v1682_v39, %v673_v30  ;;  %v1684_v45 = vpop.f32.mrb[14].mxu0  ;;  %v2119_v48 = vadd.f32 %v1795_v44, %v675_v34  ;;  %v1797_v50 = vpop.f32.mrb[14].mxu1  ;;  %v720_v39 = vld [vmem:[#allocation2 + $0x300] sm:$0xff] }
 0x273   : > { %2244 = vst [vmem:[#allocation2 + $0x180] sm:$0xff] %v2116_v37  ;;  %v2124_v49 = vadd.f32 %v1684_v45, %v680_v35  ;;  %v1686_v51 = vpop.f32.mrb[15].mxu0  ;;  %2246 = vst [vmem:[#allocation2 + $0x190] sm:$0xff] %v2118_v42  ;;  %v2126_v52 = vadd.f32 %v1797_v50, %v682_v40  ;;  %v1799_v55 = vpop.f32.mrb[15].mxu1  ;;  %v722_v40 = vld [vmem:[#allocation2 + $0x310] sm:$0xff]  ;;  %v728_v44 = vld [vmem:[#allocation2 + $0x340] sm:$0xff] }
 0x274   : > { %2245 = vst [vmem:[#allocation2 + $0x188] sm:$0xff] %v2117_v43  ;;  %v2125_v53 = vadd.f32 %v1686_v51, %v681_v41  ;;  %2247 = vst [vmem:[#allocation2 + $0x198] sm:$0xff] %v2119_v48  ;;  %v2127_v56 = vadd.f32 %v1799_v55, %v683_v46  ;;  %v721_v41 = vld [vmem:[#allocation2 + $0x308] sm:$0xff]  ;;  %v723_v43 = vld [vmem:[#allocation2 + $0x318] sm:$0xff] }
 0x275   : > { %2252 = vst [vmem:[#allocation2 + $0x1c0] sm:$0xff] %v2124_v49  ;;  %2254 = vst [vmem:[#allocation2 + $0x1d0] sm:$0xff] %v2126_v52  ;;  %v730_v49 = vld [vmem:[#allocation2 + $0x350] sm:$0xff]  ;;  %v729_v50 = vld [vmem:[#allocation2 + $0x348] sm:$0xff] }
 0x276   : > { %2253 = vst [vmem:[#allocation2 + $0x1c8] sm:$0xff] %v2125_v53  ;;  %2255 = vst [vmem:[#allocation2 + $0x1d8] sm:$0xff] %v2127_v56  ;;  %v731_v56 = vld [vmem:[#allocation2 + $0x358] sm:$0xff] }
 0x278   : > { %v1690_v61 = vpop.f32.mrb[16].mxu0  ;;  %v1803_v1 = vpop.f32.mrb[16].mxu1 }
 0x279   : > { %v2132_v0 = vadd.f32 %v1690_v61, %v688_v58  ;;  %v1692_v3 = vpop.f32.mrb[17].mxu0  ;;  %v2134_v6 = vadd.f32 %v1803_v1, %v690_v59  ;;  %v1805_v8 = vpop.f32.mrb[17].mxu1 }
 0x27a   : > { %v2133_v7 = vadd.f32 %v1692_v3, %v689_v60  ;;  %v1694_v10 = vpop.f32.mrb[18].mxu0  ;;  %v2135_v13 = vadd.f32 %v1805_v8, %v691_v62  ;;  %v1807_v15 = vpop.f32.mrb[18].mxu1  ;;  %v736_v3 = vld [vmem:[#allocation2 + $0x380] sm:$0xff] }
 0x27b   : > { %2260 = vst [vmem:[#allocation2 + $0x200] sm:$0xff] %v2132_v0  ;;  %v2140_v14 = vadd.f32 %v1694_v10, %v696_v63  ;;  %v1696_v16 = vpop.f32.mrb[19].mxu0  ;;  %2262 = vst [vmem:[#allocation2 + $0x210] sm:$0xff] %v2134_v6  ;;  %v2142_v17 = vadd.f32 %v1807_v15, %v698_v4  ;;  %v1809_v20 = vpop.f32.mrb[19].mxu1  ;;  %v738_v4 = vld [vmem:[#allocation2 + $0x390] sm:$0xff]  ;;  %v744_v8 = vld [vmem:[#allocation2 + $0x3c0] sm:$0xff] }
 0x27c   : > { %2261 = vst [vmem:[#allocation2 + $0x208] sm:$0xff] %v2133_v7  ;;  %v2141_v19 = vadd.f32 %v1696_v16, %v697_v5  ;;  %2263 = vst [vmem:[#allocation2 + $0x218] sm:$0xff] %v2135_v13  ;;  %v2143_v21 = vadd.f32 %v1809_v20, %v699_v12  ;;  %v737_v5 = vld [vmem:[#allocation2 + $0x388] sm:$0xff]  ;;  %v739_v7 = vld [vmem:[#allocation2 + $0x398] sm:$0xff] }
 0x27d   : > { %2268 = vst [vmem:[#allocation2 + $0x240] sm:$0xff] %v2140_v14  ;;  %2270 = vst [vmem:[#allocation2 + $0x250] sm:$0xff] %v2142_v17  ;;  %v746_v14 = vld [vmem:[#allocation2 + $0x3d0] sm:$0xff]  ;;  %v745_v15 = vld [vmem:[#allocation2 + $0x3c8] sm:$0xff] }
 0x27e   : > { %2269 = vst [vmem:[#allocation2 + $0x248] sm:$0xff] %v2141_v19  ;;  %2271 = vst [vmem:[#allocation2 + $0x258] sm:$0xff] %v2143_v21  ;;  %v747_v21 = vld [vmem:[#allocation2 + $0x3d8] sm:$0xff] }
 0x280   : > { %v1700_v26 = vpop.f32.mrb[20].mxu0  ;;  %v1813_v32 = vpop.f32.mrb[20].mxu1 }
 0x281   : > { %v2148_v31 = vadd.f32 %v1700_v26, %v704_v23  ;;  %v1702_v57 = vpop.f32.mrb[21].mxu0  ;;  %v2150_v29 = vadd.f32 %v1813_v32, %v706_v24  ;;  %v1815_v47 = vpop.f32.mrb[21].mxu1 }
 0x282   : > { %v2149_v36 = vadd.f32 %v1702_v57, %v705_v25  ;;  %v1704_v54 = vpop.f32.mrb[22].mxu0  ;;  %v2151_v9 = vadd.f32 %v1815_v47, %v707_v27  ;;  %v1817_v30 = vpop.f32.mrb[22].mxu1  ;;  %v628_v57 = vld [vmem:[#allocation2 + $0x20] sm:$0xff] }
 0x283   : > { %2276 = vst [vmem:[#allocation2 + $0x280] sm:$0xff] %v2148_v31  ;;  %v2156_v22 = vadd.f32 %v1704_v54, %v712_v28  ;;  %v1706_v33 = vpop.f32.mrb[23].mxu0  ;;  %2278 = vst [vmem:[#allocation2 + $0x290] sm:$0xff] %v2150_v29  ;;  %v2158_v34 = vadd.f32 %v1817_v30, %v714_v11  ;;  %v1819_v37 = vpop.f32.mrb[23].mxu1  ;;  %v630_v11 = vld [vmem:[#allocation2 + $0x30] sm:$0xff]  ;;  %v636_v47 = vld [vmem:[#allocation2 + $0x60] sm:$0xff] }
 0x284   : > { %2277 = vst [vmem:[#allocation2 + $0x288] sm:$0xff] %v2149_v36  ;;  %v2157_v35 = vadd.f32 %v1706_v33, %v713_v18  ;;  %2279 = vst [vmem:[#allocation2 + $0x298] sm:$0xff] %v2151_v9  ;;  %v2159_v38 = vadd.f32 %v1819_v37, %v715_v2  ;;  %v629_v18 = vld [vmem:[#allocation2 + $0x28] sm:$0xff]  ;;  %v631_v36 = vld [vmem:[#allocation2 + $0x38] sm:$0xff] }
 0x285   : > { %2284 = vst [vmem:[#allocation2 + $0x2c0] sm:$0xff] %v2156_v22  ;;  %2286 = vst [vmem:[#allocation2 + $0x2d0] sm:$0xff] %v2158_v34  ;;  %v638_v22 = vld [vmem:[#allocation2 + $0x70] sm:$0xff]  ;;  %v637_v30 = vld [vmem:[#allocation2 + $0x68] sm:$0xff] }
 0x286   : > { %2285 = vst [vmem:[#allocation2 + $0x2c8] sm:$0xff] %v2157_v35  ;;  %2287 = vst [vmem:[#allocation2 + $0x2d8] sm:$0xff] %v2159_v38  ;;  %v639_v38 = vld [vmem:[#allocation2 + $0x78] sm:$0xff] }
 0x288   : > { %v1710_v42 = vpop.f32.mrb[24].mxu0  ;;  %v1823_v46 = vpop.f32.mrb[24].mxu1 }
 0x289   : > { %v2164_v45 = vadd.f32 %v1710_v42, %v720_v39  ;;  %v1712_v48 = vpop.f32.mrb[25].mxu0  ;;  %v2166_v51 = vadd.f32 %v1823_v46, %v722_v40  ;;  %v1825_v53 = vpop.f32.mrb[25].mxu1 }
 0x28a   : > { %v2165_v52 = vadd.f32 %v1712_v48, %v721_v41  ;;  %v1714_v55 = vpop.f32.mrb[26].mxu0  ;;  %v2167_v58 = vadd.f32 %v1825_v53, %v723_v43  ;;  %v1827_v60 = vpop.f32.mrb[26].mxu1  ;;  %v644_v48 = vld [vmem:[#allocation2 + $0xa0] sm:$0xff] }
 0x28b   : > { %2292 = vst [vmem:[#allocation2 + $0x300] sm:$0xff] %v2164_v45  ;;  %v2172_v59 = vadd.f32 %v1714_v55, %v728_v44  ;;  %v1716_v61 = vpop.f32.mrb[27].mxu0  ;;  %2294 = vst [vmem:[#allocation2 + $0x310] sm:$0xff] %v2166_v51  ;;  %v2174_v62 = vadd.f32 %v1827_v60, %v730_v49  ;;  %v1829_v0 = vpop.f32.mrb[27].mxu1  ;;  %v646_v49 = vld [vmem:[#allocation2 + $0xb0] sm:$0xff]  ;;  %v652_v53 = vld [vmem:[#allocation2 + $0xe0] sm:$0xff] }
 0x28c   : > { %2293 = vst [vmem:[#allocation2 + $0x308] sm:$0xff] %v2165_v52  ;;  %v2173_v63 = vadd.f32 %v1716_v61, %v729_v50  ;;  %2295 = vst [vmem:[#allocation2 + $0x318] sm:$0xff] %v2167_v58  ;;  %v2175_v1 = vadd.f32 %v1829_v0, %v731_v56  ;;  %v645_v50 = vld [vmem:[#allocation2 + $0xa8] sm:$0xff]  ;;  %v647_v52 = vld [vmem:[#allocation2 + $0xb8] sm:$0xff] }
 0x28d   : > { %2300 = vst [vmem:[#allocation2 + $0x340] sm:$0xff] %v2172_v59  ;;  %2302 = vst [vmem:[#allocation2 + $0x350] sm:$0xff] %v2174_v62  ;;  %v654_v59 = vld [vmem:[#allocation2 + $0xf0] sm:$0xff]  ;;  %v653_v60 = vld [vmem:[#allocation2 + $0xe8] sm:$0xff] }
 0x28e   : > { %2301 = vst [vmem:[#allocation2 + $0x348] sm:$0xff] %v2173_v63  ;;  %2303 = vst [vmem:[#allocation2 + $0x358] sm:$0xff] %v2175_v1  ;;  %v655_v1 = vld [vmem:[#allocation2 + $0xf8] sm:$0xff] }
 0x290   : > { %v1720_v6 = vpop.f32.mrb[28].mxu0  ;;  %v1833_v12 = vpop.f32.mrb[28].mxu1 }
 0x291   : > { %v2180_v10 = vadd.f32 %v1720_v6, %v736_v3  ;;  %v1722_v13 = vpop.f32.mrb[29].mxu0  ;;  %v2182_v16 = vadd.f32 %v1833_v12, %v738_v4  ;;  %v1835_v19 = vpop.f32.mrb[29].mxu1 }
 0x292   : > { %v2181_v17 = vadd.f32 %v1722_v13, %v737_v5  ;;  %v1724_v20 = vpop.f32.mrb[30].mxu0  ;;  %v2183_v23 = vadd.f32 %v1835_v19, %v739_v7  ;;  %v1837_v25 = vpop.f32.mrb[30].mxu1  ;;  %v660_v13 = vld [vmem:[#allocation2 + $0x120] sm:$0xff] }
 0x293   : > { %2308 = vst [vmem:[#allocation2 + $0x380] sm:$0xff] %v2180_v10  ;;  %v2188_v24 = vadd.f32 %v1724_v20, %v744_v8  ;;  %v1726_v26 = vpop.f32.mrb[31].mxu0  ;;  %2310 = vst [vmem:[#allocation2 + $0x390] sm:$0xff] %v2182_v16  ;;  %v2190_v27 = vadd.f32 %v1837_v25, %v746_v14  ;;  %v1839_v31 = vpop.f32.mrb[31].mxu1  ;;  %v662_v14 = vld [vmem:[#allocation2 + $0x130] sm:$0xff]  ;;  %v668_v19 = vld [vmem:[#allocation2 + $0x160] sm:$0xff] }
 0x294   : > { %2309 = vst [vmem:[#allocation2 + $0x388] sm:$0xff] %v2181_v17  ;;  %v2189_v28 = vadd.f32 %v1726_v26, %v745_v15  ;;  %2311 = vst [vmem:[#allocation2 + $0x398] sm:$0xff] %v2183_v23  ;;  %v2191_v32 = vadd.f32 %v1839_v31, %v747_v21  ;;  %v661_v15 = vld [vmem:[#allocation2 + $0x128] sm:$0xff]  ;;  %v663_v17 = vld [vmem:[#allocation2 + $0x138] sm:$0xff] }
 0x295   : > { %2316 = vst [vmem:[#allocation2 + $0x3c0] sm:$0xff] %v2188_v24  ;;  %2318 = vst [vmem:[#allocation2 + $0x3d0] sm:$0xff] %v2190_v27  ;;  %v670_v24 = vld [vmem:[#allocation2 + $0x170] sm:$0xff]  ;;  %v669_v25 = vld [vmem:[#allocation2 + $0x168] sm:$0xff] }
 0x296   : > { %2317 = vst [vmem:[#allocation2 + $0x3c8] sm:$0xff] %v2189_v28  ;;  %2319 = vst [vmem:[#allocation2 + $0x3d8] sm:$0xff] %v2191_v32  ;;  %v671_v32 = vld [vmem:[#allocation2 + $0x178] sm:$0xff] }
 0x298   : > { %v1876_v29 = vpop.f32.mrb[32].mxu0  ;;  %v1989_v2 = vpop.f32.mrb[32].mxu1 }
 0x299   : > { %v2072_v54 = vadd.f32 %v1876_v29, %v628_v57  ;;  %v1878_v9 = vpop.f32.mrb[33].mxu0  ;;  %v2074_v33 = vadd.f32 %v1989_v2, %v630_v11  ;;  %v1991_v35 = vpop.f32.mrb[33].mxu1 }
 0x29a   : > { %v2073_v34 = vadd.f32 %v1878_v9, %v629_v18  ;;  %v1880_v37 = vpop.f32.mrb[34].mxu0  ;;  %v2075_v39 = vadd.f32 %v1991_v35, %v631_v36  ;;  %v1993_v41 = vpop.f32.mrb[34].mxu1  ;;  %v676_v9 = vld [vmem:[#allocation2 + $0x1a0] sm:$0xff] }
 0x29b   : > { %2200 = vst [vmem:[#allocation2 + $0x20] sm:$0xff] %v2072_v54  ;;  %v2080_v40 = vadd.f32 %v1880_v37, %v636_v47  ;;  %v1882_v42 = vpop.f32.mrb[35].mxu0  ;;  %2202 = vst [vmem:[#allocation2 + $0x30] sm:$0xff] %v2074_v33  ;;  %v2082_v43 = vadd.f32 %v1993_v41, %v638_v22  ;;  %v1995_v45 = vpop.f32.mrb[35].mxu1  ;;  %v678_v22 = vld [vmem:[#allocation2 + $0x1b0] sm:$0xff]  ;;  %v684_v35 = vld [vmem:[#allocation2 + $0x1e0] sm:$0xff] }
 0x29c   : > { %2201 = vst [vmem:[#allocation2 + $0x28] sm:$0xff] %v2073_v34  ;;  %v2081_v44 = vadd.f32 %v1882_v42, %v637_v30  ;;  %2203 = vst [vmem:[#allocation2 + $0x38] sm:$0xff] %v2075_v39  ;;  %v2083_v46 = vadd.f32 %v1995_v45, %v639_v38  ;;  %v677_v30 = vld [vmem:[#allocation2 + $0x1a8] sm:$0xff]  ;;  %v679_v34 = vld [vmem:[#allocation2 + $0x1b8] sm:$0xff] }
 0x29d   : > { %2208 = vst [vmem:[#allocation2 + $0x60] sm:$0xff] %v2080_v40  ;;  %2210 = vst [vmem:[#allocation2 + $0x70] sm:$0xff] %v2082_v43  ;;  %v686_v40 = vld [vmem:[#allocation2 + $0x1f0] sm:$0xff]  ;;  %v685_v41 = vld [vmem:[#allocation2 + $0x1e8] sm:$0xff] }
 0x29e   : > { %2209 = vst [vmem:[#allocation2 + $0x68] sm:$0xff] %v2081_v44  ;;  %2211 = vst [vmem:[#allocation2 + $0x78] sm:$0xff] %v2083_v46  ;;  %v687_v46 = vld [vmem:[#allocation2 + $0x1f8] sm:$0xff] }
 0x2a0   : > { %v1886_v51 = vpop.f32.mrb[36].mxu0  ;;  %v1999_v56 = vpop.f32.mrb[36].mxu1 }
 0x2a1   : > { %v2088_v55 = vadd.f32 %v1886_v51, %v644_v48  ;;  %v1888_v58 = vpop.f32.mrb[37].mxu0  ;;  %v2090_v61 = vadd.f32 %v1999_v56, %v646_v49  ;;  %v2001_v63 = vpop.f32.mrb[37].mxu1 }
 0x2a2   : > { %v2089_v62 = vadd.f32 %v1888_v58, %v645_v50  ;;  %v1890_v0 = vpop.f32.mrb[38].mxu0  ;;  %v2091_v3 = vadd.f32 %v2001_v63, %v647_v52  ;;  %v2003_v5 = vpop.f32.mrb[38].mxu1  ;;  %v692_v58 = vld [vmem:[#allocation2 + $0x220] sm:$0xff] }
 0x2a3   : > { %2216 = vst [vmem:[#allocation2 + $0xa0] sm:$0xff] %v2088_v55  ;;  %v2096_v4 = vadd.f32 %v1890_v0, %v652_v53  ;;  %v1892_v6 = vpop.f32.mrb[39].mxu0  ;;  %2218 = vst [vmem:[#allocation2 + $0xb0] sm:$0xff] %v2090_v61  ;;  %v2098_v7 = vadd.f32 %v2003_v5, %v654_v59  ;;  %v2005_v10 = vpop.f32.mrb[39].mxu1  ;;  %v694_v59 = vld [vmem:[#allocation2 + $0x230] sm:$0xff]  ;;  %v700_v63 = vld [vmem:[#allocation2 + $0x260] sm:$0xff] }
 0x2a4   : > { %2217 = vst [vmem:[#allocation2 + $0xa8] sm:$0xff] %v2089_v62  ;;  %v2097_v8 = vadd.f32 %v1892_v6, %v653_v60  ;;  %2219 = vst [vmem:[#allocation2 + $0xb8] sm:$0xff] %v2091_v3  ;;  %v2099_v12 = vadd.f32 %v2005_v10, %v655_v1  ;;  %v693_v60 = vld [vmem:[#allocation2 + $0x228] sm:$0xff]  ;;  %v695_v62 = vld [vmem:[#allocation2 + $0x238] sm:$0xff] }
 0x2a5   : > { %2224 = vst [vmem:[#allocation2 + $0xe0] sm:$0xff] %v2096_v4  ;;  %2226 = vst [vmem:[#allocation2 + $0xf0] sm:$0xff] %v2098_v7  ;;  %v702_v4 = vld [vmem:[#allocation2 + $0x270] sm:$0xff]  ;;  %v701_v5 = vld [vmem:[#allocation2 + $0x268] sm:$0xff] }
 0x2a6   : > { %2225 = vst [vmem:[#allocation2 + $0xe8] sm:$0xff] %v2097_v8  ;;  %2227 = vst [vmem:[#allocation2 + $0xf8] sm:$0xff] %v2099_v12  ;;  %v703_v12 = vld [vmem:[#allocation2 + $0x278] sm:$0xff] }
 0x2a8   : > { %v1896_v16 = vpop.f32.mrb[40].mxu0  ;;  %v2009_v21 = vpop.f32.mrb[40].mxu1 }
 0x2a9   : > { %v2104_v20 = vadd.f32 %v1896_v16, %v660_v13  ;;  %v1898_v23 = vpop.f32.mrb[41].mxu0  ;;  %v2106_v26 = vadd.f32 %v2009_v21, %v662_v14  ;;  %v2011_v28 = vpop.f32.mrb[41].mxu1 }
 0x2aa   : > { %v2105_v27 = vadd.f32 %v1898_v23, %v661_v15  ;;  %v1900_v31 = vpop.f32.mrb[42].mxu0  ;;  %v2107_v57 = vadd.f32 %v2011_v28, %v663_v17  ;;  %v2013_v18 = vpop.f32.mrb[42].mxu1  ;;  %v708_v23 = vld [vmem:[#allocation2 + $0x2a0] sm:$0xff] }
 0x2ab   : > { %2232 = vst [vmem:[#allocation2 + $0x120] sm:$0xff] %v2104_v20  ;;  %v2112_v11 = vadd.f32 %v1900_v31, %v668_v19  ;;  %v1902_v29 = vpop.f32.mrb[43].mxu0  ;;  %2234 = vst [vmem:[#allocation2 + $0x130] sm:$0xff] %v2106_v26  ;;  %v2114_v36 = vadd.f32 %v2013_v18, %v670_v24  ;;  %v2015_v54 = vpop.f32.mrb[43].mxu1  ;;  %v710_v24 = vld [vmem:[#allocation2 + $0x2b0] sm:$0xff]  ;;  %v716_v28 = vld [vmem:[#allocation2 + $0x2e0] sm:$0xff] }
 0x2ac   : > { %2233 = vst [vmem:[#allocation2 + $0x128] sm:$0xff] %v2105_v27  ;;  %v2113_v47 = vadd.f32 %v1902_v29, %v669_v25  ;;  %2235 = vst [vmem:[#allocation2 + $0x138] sm:$0xff] %v2107_v57  ;;  %v2115_v2 = vadd.f32 %v2015_v54, %v671_v32  ;;  %v709_v25 = vld [vmem:[#allocation2 + $0x2a8] sm:$0xff]  ;;  %v711_v27 = vld [vmem:[#allocation2 + $0x2b8] sm:$0xff] }
 0x2ad   : > { %2240 = vst [vmem:[#allocation2 + $0x160] sm:$0xff] %v2112_v11  ;;  %2242 = vst [vmem:[#allocation2 + $0x170] sm:$0xff] %v2114_v36  ;;  %v718_v11 = vld [vmem:[#allocation2 + $0x2f0] sm:$0xff]  ;;  %v717_v18 = vld [vmem:[#allocation2 + $0x2e8] sm:$0xff] }
 0x2ae   : > { %2241 = vst [vmem:[#allocation2 + $0x168] sm:$0xff] %v2113_v47  ;;  %2243 = vst [vmem:[#allocation2 + $0x178] sm:$0xff] %v2115_v2  ;;  %v719_v2 = vld [vmem:[#allocation2 + $0x2f8] sm:$0xff] }
 0x2b0   : > { %v1906_v33 = vpop.f32.mrb[44].mxu0  ;;  %v2019_v38 = vpop.f32.mrb[44].mxu1 }
 0x2b1   : > { %v2120_v37 = vadd.f32 %v1906_v33, %v676_v9  ;;  %v1908_v39 = vpop.f32.mrb[45].mxu0  ;;  %v2122_v42 = vadd.f32 %v2019_v38, %v678_v22  ;;  %v2021_v44 = vpop.f32.mrb[45].mxu1 }
 0x2b2   : > { %v2121_v43 = vadd.f32 %v1908_v39, %v677_v30  ;;  %v1910_v45 = vpop.f32.mrb[46].mxu0  ;;  %v2123_v48 = vadd.f32 %v2021_v44, %v679_v34  ;;  %v2023_v50 = vpop.f32.mrb[46].mxu1  ;;  %v724_v39 = vld [vmem:[#allocation2 + $0x320] sm:$0xff] }
 0x2b3   : > { %2248 = vst [vmem:[#allocation2 + $0x1a0] sm:$0xff] %v2120_v37  ;;  %v2128_v49 = vadd.f32 %v1910_v45, %v684_v35  ;;  %v1912_v51 = vpop.f32.mrb[47].mxu0  ;;  %2250 = vst [vmem:[#allocation2 + $0x1b0] sm:$0xff] %v2122_v42  ;;  %v2130_v52 = vadd.f32 %v2023_v50, %v686_v40  ;;  %v2025_v55 = vpop.f32.mrb[47].mxu1  ;;  %v726_v40 = vld [vmem:[#allocation2 + $0x330] sm:$0xff]  ;;  %v732_v44 = vld [vmem:[#allocation2 + $0x360] sm:$0xff] }
 0x2b4   : > { %2249 = vst [vmem:[#allocation2 + $0x1a8] sm:$0xff] %v2121_v43  ;;  %v2129_v53 = vadd.f32 %v1912_v51, %v685_v41  ;;  %2251 = vst [vmem:[#allocation2 + $0x1b8] sm:$0xff] %v2123_v48  ;;  %v2131_v56 = vadd.f32 %v2025_v55, %v687_v46  ;;  %v725_v41 = vld [vmem:[#allocation2 + $0x328] sm:$0xff]  ;;  %v727_v43 = vld [vmem:[#allocation2 + $0x338] sm:$0xff] }
 0x2b5   : > { %2256 = vst [vmem:[#allocation2 + $0x1e0] sm:$0xff] %v2128_v49  ;;  %2258 = vst [vmem:[#allocation2 + $0x1f0] sm:$0xff] %v2130_v52  ;;  %v734_v49 = vld [vmem:[#allocation2 + $0x370] sm:$0xff]  ;;  %v733_v50 = vld [vmem:[#allocation2 + $0x368] sm:$0xff] }
 0x2b6   : > { %2257 = vst [vmem:[#allocation2 + $0x1e8] sm:$0xff] %v2129_v53  ;;  %2259 = vst [vmem:[#allocation2 + $0x1f8] sm:$0xff] %v2131_v56  ;;  %v735_v56 = vld [vmem:[#allocation2 + $0x378] sm:$0xff] }
 0x2b8   : > { %v1916_v61 = vpop.f32.mrb[48].mxu0  ;;  %v2029_v1 = vpop.f32.mrb[48].mxu1 }
 0x2b9   : > { %v2136_v0 = vadd.f32 %v1916_v61, %v692_v58  ;;  %v1918_v3 = vpop.f32.mrb[49].mxu0  ;;  %v2138_v6 = vadd.f32 %v2029_v1, %v694_v59  ;;  %v2031_v8 = vpop.f32.mrb[49].mxu1 }
 0x2ba   : > { %v2137_v7 = vadd.f32 %v1918_v3, %v693_v60  ;;  %v1920_v10 = vpop.f32.mrb[50].mxu0  ;;  %v2139_v13 = vadd.f32 %v2031_v8, %v695_v62  ;;  %v2033_v15 = vpop.f32.mrb[50].mxu1  ;;  %v740_v3 = vld [vmem:[#allocation2 + $0x3a0] sm:$0xff] }
 0x2bb   : > { %2264 = vst [vmem:[#allocation2 + $0x220] sm:$0xff] %v2136_v0  ;;  %v2144_v14 = vadd.f32 %v1920_v10, %v700_v63  ;;  %v1922_v16 = vpop.f32.mrb[51].mxu0  ;;  %2266 = vst [vmem:[#allocation2 + $0x230] sm:$0xff] %v2138_v6  ;;  %v2146_v17 = vadd.f32 %v2033_v15, %v702_v4  ;;  %v2035_v20 = vpop.f32.mrb[51].mxu1  ;;  %v742_v4 = vld [vmem:[#allocation2 + $0x3b0] sm:$0xff]  ;;  %v748_v8 = vld [vmem:[#allocation2 + $0x3e0] sm:$0xff] }
 0x2bc   : > { %2265 = vst [vmem:[#allocation2 + $0x228] sm:$0xff] %v2137_v7  ;;  %v2145_v19 = vadd.f32 %v1922_v16, %v701_v5  ;;  %2267 = vst [vmem:[#allocation2 + $0x238] sm:$0xff] %v2139_v13  ;;  %v2147_v21 = vadd.f32 %v2035_v20, %v703_v12  ;;  %v741_v5 = vld [vmem:[#allocation2 + $0x3a8] sm:$0xff]  ;;  %v743_v7 = vld [vmem:[#allocation2 + $0x3b8] sm:$0xff] }
 0x2bd   : > { %2272 = vst [vmem:[#allocation2 + $0x260] sm:$0xff] %v2144_v14  ;;  %2274 = vst [vmem:[#allocation2 + $0x270] sm:$0xff] %v2146_v17  ;;  %v750_v14 = vld [vmem:[#allocation2 + $0x3f0] sm:$0xff]  ;;  %v749_v15 = vld [vmem:[#allocation2 + $0x3e8] sm:$0xff] }
 0x2be   : > { %2273 = vst [vmem:[#allocation2 + $0x268] sm:$0xff] %v2145_v19  ;;  %2275 = vst [vmem:[#allocation2 + $0x278] sm:$0xff] %v2147_v21  ;;  %v751_v21 = vld [vmem:[#allocation2 + $0x3f8] sm:$0xff] }
 0x2c0   : > { %v1926_v26 = vpop.f32.mrb[52].mxu0  ;;  %v2039_v32 = vpop.f32.mrb[52].mxu1 }
 0x2c1   : > { %v2152_v31 = vadd.f32 %v1926_v26, %v708_v23  ;;  %v1928_v57 = vpop.f32.mrb[53].mxu0  ;;  %v2154_v29 = vadd.f32 %v2039_v32, %v710_v24  ;;  %v2041_v47 = vpop.f32.mrb[53].mxu1 }
 0x2c2   : > { %v2153_v36 = vadd.f32 %v1928_v57, %v709_v25  ;;  %v1930_v54 = vpop.f32.mrb[54].mxu0  ;;  %v2155_v9 = vadd.f32 %v2041_v47, %v711_v27  ;;  %v2043_v30 = vpop.f32.mrb[54].mxu1 }
 0x2c3   : > { %2280 = vst [vmem:[#allocation2 + $0x2a0] sm:$0xff] %v2152_v31  ;;  %v2160_v22 = vadd.f32 %v1930_v54, %v716_v28  ;;  %v1932_v33 = vpop.f32.mrb[55].mxu0  ;;  %2282 = vst [vmem:[#allocation2 + $0x2b0] sm:$0xff] %v2154_v29  ;;  %v2162_v34 = vadd.f32 %v2043_v30, %v718_v11  ;;  %v2045_v37 = vpop.f32.mrb[55].mxu1 }
 0x2c4   : > { %2281 = vst [vmem:[#allocation2 + $0x2a8] sm:$0xff] %v2153_v36  ;;  %v2161_v35 = vadd.f32 %v1932_v33, %v717_v18  ;;  %2283 = vst [vmem:[#allocation2 + $0x2b8] sm:$0xff] %v2155_v9  ;;  %v2163_v38 = vadd.f32 %v2045_v37, %v719_v2 }
 0x2c5   : > { %2288 = vst [vmem:[#allocation2 + $0x2e0] sm:$0xff] %v2160_v22  ;;  %2290 = vst [vmem:[#allocation2 + $0x2f0] sm:$0xff] %v2162_v34 }
 0x2c6   : > { %2289 = vst [vmem:[#allocation2 + $0x2e8] sm:$0xff] %v2161_v35  ;;  %2291 = vst [vmem:[#allocation2 + $0x2f8] sm:$0xff] %v2163_v38 }
 0x2c8   : > { %v1936_v42 = vpop.f32.mrb[56].mxu0  ;;  %v2049_v46 = vpop.f32.mrb[56].mxu1 }
 0x2c9   : > { %v2168_v45 = vadd.f32 %v1936_v42, %v724_v39  ;;  %v1938_v48 = vpop.f32.mrb[57].mxu0  ;;  %v2170_v51 = vadd.f32 %v2049_v46, %v726_v40  ;;  %v2051_v53 = vpop.f32.mrb[57].mxu1 }
 0x2ca   : > { %v2169_v52 = vadd.f32 %v1938_v48, %v725_v41  ;;  %v1940_v55 = vpop.f32.mrb[58].mxu0  ;;  %v2171_v58 = vadd.f32 %v2051_v53, %v727_v43  ;;  %v2053_v60 = vpop.f32.mrb[58].mxu1 }
 0x2cb   : > { %2296 = vst [vmem:[#allocation2 + $0x320] sm:$0xff] %v2168_v45  ;;  %v2176_v59 = vadd.f32 %v1940_v55, %v732_v44  ;;  %v1942_v61 = vpop.f32.mrb[59].mxu0  ;;  %2298 = vst [vmem:[#allocation2 + $0x330] sm:$0xff] %v2170_v51  ;;  %v2178_v62 = vadd.f32 %v2053_v60, %v734_v49  ;;  %v2055_v0 = vpop.f32.mrb[59].mxu1 }
 0x2cc   : > { %2297 = vst [vmem:[#allocation2 + $0x328] sm:$0xff] %v2169_v52  ;;  %v2177_v63 = vadd.f32 %v1942_v61, %v733_v50  ;;  %2299 = vst [vmem:[#allocation2 + $0x338] sm:$0xff] %v2171_v58  ;;  %v2179_v1 = vadd.f32 %v2055_v0, %v735_v56 }
 0x2cd   : > { %2304 = vst [vmem:[#allocation2 + $0x360] sm:$0xff] %v2176_v59  ;;  %2306 = vst [vmem:[#allocation2 + $0x370] sm:$0xff] %v2178_v62 }
 0x2ce   : > { %2305 = vst [vmem:[#allocation2 + $0x368] sm:$0xff] %v2177_v63  ;;  %2307 = vst [vmem:[#allocation2 + $0x378] sm:$0xff] %v2179_v1 }
 0x2d0   : > { %v1946_v6 = vpop.f32.mrb[60].mxu0  ;;  %v2059_v12 = vpop.f32.mrb[60].mxu1  ;;  %2327 = sbr.rel (%p4161_p4) target bundleno = 1059 (0x423), region = 68 }
 0x2d1   : > { %v2184_v10 = vadd.f32 %v1946_v6, %v740_v3  ;;  %v1948_v13 = vpop.f32.mrb[61].mxu0  ;;  %v2186_v16 = vadd.f32 %v2059_v12, %v742_v4  ;;  %v2061_v19 = vpop.f32.mrb[61].mxu1 }
 0x2d2   : > { %v2185_v17 = vadd.f32 %v1948_v13, %v741_v5  ;;  %v1950_v20 = vpop.f32.mrb[62].mxu0  ;;  %v2187_v23 = vadd.f32 %v2061_v19, %v743_v7  ;;  %v2063_v25 = vpop.f32.mrb[62].mxu1 }
 0x2d3   : > { %2312 = vst [vmem:[#allocation2 + $0x3a0] sm:$0xff] %v2184_v10  ;;  %v2192_v24 = vadd.f32 %v1950_v20, %v748_v8  ;;  %v1952_v26 = vpop.f32.mrb[63].mxu0  ;;  %2314 = vst [vmem:[#allocation2 + $0x3b0] sm:$0xff] %v2186_v16  ;;  %v2194_v27 = vadd.f32 %v2063_v25, %v750_v14  ;;  %v2065_v31 = vpop.f32.mrb[63].mxu1 }
 0x2d4   : > { %2313 = vst [vmem:[#allocation2 + $0x3a8] sm:$0xff] %v2185_v17  ;;  %v2193_v28 = vadd.f32 %v1952_v26, %v749_v15  ;;  %2315 = vst [vmem:[#allocation2 + $0x3b8] sm:$0xff] %v2187_v23  ;;  %v2195_v32 = vadd.f32 %v2065_v31, %v751_v21 }
 0x2d5   : > { %2320 = vst [vmem:[#allocation2 + $0x3e0] sm:$0xff] %v2192_v24  ;;  %2322 = vst [vmem:[#allocation2 + $0x3f0] sm:$0xff] %v2194_v27 }
 0x2d6   : > { %2321 = vst [vmem:[#allocation2 + $0x3e8] sm:$0xff] %v2193_v28  ;;  %2323 = vst [vmem:[#allocation2 + $0x3f8] sm:$0xff] %v2195_v32 }
 0x2d7   : > { %v2458_v57 = vlaneseq  ;;  %v2344_v47 = vld [vmem:[#allocation2 + $0x80] sm:$0xff]  ;;  %v2350_v54 = vld [vmem:[#allocation2 + $0xb0] sm:$0xff]  ;;  %v2351_v2 = vld [vmem:[#allocation2 + $0xb8] sm:$0xff]  ;;  %s4983_s17 = smov 64  }
 0x2d8   : > { %v2358_v9 = vld [vmem:[#allocation2 + $0xf0] sm:$0xff]  ;;  %v2359_v33 = vld [vmem:[#allocation2 + $0xf8] sm:$0xff]  ;;  %v5831_v40 = vld [vmem:[#allocation8] sm:$0xff] }
 0x2d9   : > { %v5824_v11 = vshrl.u32 %v2458_v57, 7  ;;  %v2366_v34 = vld [vmem:[#allocation2 + $0x130] sm:$0xff]  ;;  %v2367_v35 = vld [vmem:[#allocation2 + $0x138] sm:$0xff] }
 0x2da   : > { %v2374_v37 = vld [vmem:[#allocation2 + $0x170] sm:$0xff]  ;;  %v2375_v38 = vld [vmem:[#allocation2 + $0x178] sm:$0xff] }
 0x2db   : > { %v2460_v18 = vsub.s32 0, %v5824_v11  ;;  %v2484_v29 = vsub.s32 6, %v5824_v11  ;;  %v2488_v36 = vsub.s32 7, %v5824_v11  ;;  %v2468_v22 = vsub.s32 2, %v5824_v11  ;;  %v2382_v39 = vld [vmem:[#allocation2 + $0x1b0] sm:$0xff]  ;;  %v2383_v41 = vld [vmem:[#allocation2 + $0x1b8] sm:$0xff] }
 0x2dc   : > { %v2472_v30 = vsub.s32 3, %v5824_v11  ;;  %v2390_v42 = vld [vmem:[#allocation2 + $0x1f0] sm:$0xff]  ;;  %v2391_v43 = vld [vmem:[#allocation2 + $0x1f8] sm:$0xff] }
 0x2dd   : > { %v5834_v44 = vrot.slane %v5831_v40, %v2460_v18  ;;  %v5837_v45 = vrot.slane %v5831_v40, %v2484_v29  ;;  %v5840_v46 = vrot.slane %v5831_v40, %v2488_v36  ;;  %v2398_v48 = vld [vmem:[#allocation2 + $0x230] sm:$0xff]  ;;  %v2399_v49 = vld [vmem:[#allocation2 + $0x238] sm:$0xff]  ;;  %v5843_v51 = vrot.slane %v5831_v40, %v2468_v22 }
 0x2de   : > { %v2406_v50 = vld [vmem:[#allocation2 + $0x270] sm:$0xff]  ;;  %v5846_v52 = vrot.slane %v5831_v40, %v2472_v30  ;;  %v2407_v53 = vld [vmem:[#allocation2 + $0x278] sm:$0xff] }
 0x2df   : > { %v2414_v55 = vld [vmem:[#allocation2 + $0x2b0] sm:$0xff]  ;;  %v2415_v56 = vld [vmem:[#allocation2 + $0x2b8] sm:$0xff]  ;;  %v5849_v58 = vadd.f32 %v5834_v44, %v2344_v47  ;;  %v2520_v59 = vadd.f32 %v5837_v45, %v2350_v54  ;;  %v2521_v60 = vadd.f32 %v5840_v46, %v2351_v2  ;;  %v2528_v61 = vadd.f32 %v5837_v45, %v2358_v9 }
 0x2e0   : > { %v2422_v62 = vld [vmem:[#allocation2 + $0x2f0] sm:$0xff]  ;;  %v2423_v63 = vld [vmem:[#allocation2 + $0x2f8] sm:$0xff]  ;;  %v2529_v1 = vadd.f32 %v5840_v46, %v2359_v33  ;;  %v2536_v3 = vadd.f32 %v5837_v45, %v2366_v34  ;;  %v2537_v4 = vadd.f32 %v5840_v46, %v2367_v35  ;;  %v2544_v5 = vadd.f32 %v5837_v45, %v2374_v37 }
 0x2e1   : > { %v2430_v0 = vld [vmem:[#allocation2 + $0x330] sm:$0xff]  ;;  %v2431_v6 = vld [vmem:[#allocation2 + $0x338] sm:$0xff]  ;;  %v2545_v10 = vadd.f32 %v5840_v46, %v2375_v38  ;;  %v2552_v12 = vadd.f32 %v5837_v45, %v2382_v39  ;;  %v2553_v13 = vadd.f32 %v5840_v46, %v2383_v41  ;;  %v2560_v14 = vadd.f32 %v5837_v45, %v2390_v42  ;;  %2678 = vrot.lane.b32.xlu1 %v5849_v58, %s4983_s17 }
 0x2e2   : > { %v2438_v7 = vld [vmem:[#allocation2 + $0x370] sm:$0xff]  ;;  %v2439_v8 = vld [vmem:[#allocation2 + $0x378] sm:$0xff]  ;;  %v2561_v19 = vadd.f32 %v5840_v46, %v2391_v43  ;;  %v2568_v20 = vadd.f32 %v5837_v45, %v2398_v48  ;;  %v2569_v21 = vadd.f32 %v5840_v46, %v2399_v49  ;;  %v2576_v23 = vadd.f32 %v5837_v45, %v2406_v50 }
 0x2e3   : > { %v2446_v15 = vld [vmem:[#allocation2 + $0x3b0] sm:$0xff]  ;;  %v2447_v16 = vld [vmem:[#allocation2 + $0x3b8] sm:$0xff]  ;;  %v2577_v25 = vadd.f32 %v5840_v46, %v2407_v53  ;;  %v2584_v26 = vadd.f32 %v5837_v45, %v2414_v55  ;;  %v2585_v27 = vadd.f32 %v5840_v46, %v2415_v56  ;;  %v2592_v28 = vadd.f32 %v5837_v45, %v2422_v62  ;;  %v2328_v53 = vld [vmem:[#allocation2] sm:$0xff] }
 0x2e4   : > { %v2454_v17 = vld [vmem:[#allocation2 + $0x3f0] sm:$0xff]  ;;  %v2455_v24 = vld [vmem:[#allocation2 + $0x3f8] sm:$0xff]  ;;  %v2593_v31 = vadd.f32 %v5840_v46, %v2423_v63  ;;  %v2600_v32 = vadd.f32 %v5837_v45, %v2430_v0  ;;  %v2601_v57 = vadd.f32 %v5840_v46, %v2431_v6  ;;  %v2608_v18 = vadd.f32 %v5837_v45, %v2438_v7  ;;  %v2352_v55 = vld [vmem:[#allocation2 + $0xc0] sm:$0xff] }
 0x2e5   : > { %v2609_v29 = vadd.f32 %v5840_v46, %v2439_v8  ;;  %v2616_v36 = vadd.f32 %v5837_v45, %v2446_v15  ;;  %v2617_v47 = vadd.f32 %v5840_v46, %v2447_v16  ;;  %v2624_v54 = vadd.f32 %v5837_v45, %v2454_v17  ;;  %v2334_v33 = vld [vmem:[#allocation2 + $0x30] sm:$0xff]  ;;  %v2335_v39 = vld [vmem:[#allocation2 + $0x38] sm:$0xff]  ;;  %v2360_v8 = vld [vmem:[#allocation2 + $0x100] sm:$0xff] }
 0x2e6   : > { %v2625_v2 = vadd.f32 %v5840_v46, %v2455_v24  ;;  %v4383_v9 = vpack.c.bf16 %v2521_v60, %v2520_v59  ;;  %v4384_v22 = vpack.c.bf16 %v2529_v1, %v2528_v61  ;;  %v4385_v30 = vpack.c.bf16 %v2537_v4, %v2536_v3  ;;  %v2342_v41 = vld [vmem:[#allocation2 + $0x70] sm:$0xff]  ;;  %v2343_v42 = vld [vmem:[#allocation2 + $0x78] sm:$0xff]  ;;  %v2336_v1 = vld [vmem:[#allocation2 + $0x40] sm:$0xff] }
 0x2e7   : > { %v4386_v34 = vpack.c.bf16 %v2545_v10, %v2544_v5  ;;  %v4387_v35 = vpack.c.bf16 %v2553_v13, %v2552_v12  ;;  %v4388_v37 = vpack.c.bf16 %v2561_v19, %v2560_v14  ;;  %v4389_v38 = vpack.c.bf16 %v2569_v21, %v2568_v20  ;;  %v2368_v3 = vld [vmem:[#allocation2 + $0x140] sm:$0xff] }
 0x2e8   : > { %v4390_v43 = vpack.c.bf16 %v2577_v25, %v2576_v23  ;;  %v4391_v48 = vpack.c.bf16 %v2585_v27, %v2584_v26  ;;  %v4392_v49 = vpack.c.bf16 %v2593_v31, %v2592_v28  ;;  %v4393_v50 = vpack.c.bf16 %v2601_v57, %v2600_v32  ;;  %3780 = vst [vmem:[%s5458_s13 + $0x58] sm:$0xff] %v4383_v9  ;;  %v2384_v10 = vld [vmem:[#allocation2 + $0x1c0] sm:$0xff] }
 0x2e9   : > { %3781 = vst [vmem:[%s5458_s13 + $0x78] sm:$0xff] %v4384_v22  ;;  %3782 = vst [vmem:[%s5458_s13 + $0x98] sm:$0xff] %v4385_v30  ;;  %v4394_v56 = vpack.c.bf16 %v2609_v29, %v2608_v18  ;;  %v4395_v59 = vpack.c.bf16 %v2617_v47, %v2616_v36  ;;  %v4396_v60 = vpack.c.bf16 %v2625_v2, %v2624_v54  ;;  %v2376_v14 = vld [vmem:[#allocation2 + $0x180] sm:$0xff]  ;;  %v2476_v26 = vsub.s32 4, %v5824_v11  ;;  %v2337_v2 = vld [vmem:[#allocation2 + $0x48] sm:$0xff] }
 0x2ea   : > { %3783 = vst [vmem:[%s5458_s13 + $0xb8] sm:$0xff] %v4386_v34  ;;  %3784 = vst [vmem:[%s5458_s13 + $0xd8] sm:$0xff] %v4387_v35  ;;  %v2504_v61 = vadd.f32 %v5837_v45, %v2334_v33  ;;  %v2505_v62 = vadd.f32 %v5840_v46, %v2335_v39  ;;  %v2512_v63 = vadd.f32 %v5837_v45, %v2342_v41  ;;  %v2400_v15 = vld [vmem:[#allocation2 + $0x240] sm:$0xff]  ;;  %v2464_v31 = vsub.s32 1, %v5824_v11  ;;  %v2329_v30 = vld [vmem:[#allocation2 + $0x8] sm:$0xff] }
 0x2eb   : > { %3785 = vst [vmem:[%s5458_s13 + $0xf8] sm:$0xff] %v4388_v37  ;;  %3786 = vst [vmem:[%s5458_s13 + $0x118] sm:$0xff] %v4389_v38  ;;  %v2513_v0 = vadd.f32 %v5840_v46, %v2343_v42  ;;  %v5900_v4 = vadd.f32 %v5834_v44, %v2328_v53  ;;  %v5903_v5 = vadd.f32 %v5834_v44, %v2352_v55  ;;  %v2392_v19 = vld [vmem:[#allocation2 + $0x200] sm:$0xff]  ;;  %v2353_v33 = vld [vmem:[#allocation2 + $0xc8] sm:$0xff]  ;;  %v2480_v34 = vsub.s32 5, %v5824_v11 }
 0x2ec   : > { %3787 = vst [vmem:[%s5458_s13 + $0x138] sm:$0xff] %v4390_v43  ;;  %3788 = vst [vmem:[%s5458_s13 + $0x158] sm:$0xff] %v4391_v48  ;;  %v4381_v6 = vpack.c.bf16 %v2505_v62, %v2504_v61  ;;  %v5910_v45 = vadd.f32 %v5834_v44, %v2336_v1  ;;  %v5913_v46 = vadd.f32 %v5834_v44, %v2368_v3  ;;  %v2416_v20 = vld [vmem:[#allocation2 + $0x2c0] sm:$0xff]  ;;  %v2369_v39 = vld [vmem:[#allocation2 + $0x148] sm:$0xff] }
 0x2ed   : > { %3789 = vst [vmem:[%s5458_s13 + $0x178] sm:$0xff] %v4392_v49  ;;  %3790 = vst [vmem:[%s5458_s13 + $0x198] sm:$0xff] %v4393_v50  ;;  %v4382_v7 = vpack.c.bf16 %v2513_v0, %v2512_v63  ;;  %2674 = vrot.lane.b32.xlu0 %v5900_v4, %s4983_s17  ;;  %2680 = vrot.lane.b32.xlu1 %v5903_v5, %s4983_s17  ;;  %v5922_v12 = vadd.f32 %v5834_v44, %v2360_v8  ;;  %v2408_v24 = vld [vmem:[#allocation2 + $0x280] sm:$0xff]  ;;  %v2361_v42 = vld [vmem:[#allocation2 + $0x108] sm:$0xff] }
 0x2ee   : > { %3791 = vst [vmem:[%s5458_s13 + $0x1b8] sm:$0xff] %v4394_v56  ;;  %3792 = vst [vmem:[%s5458_s13 + $0x1d8] sm:$0xff] %v4395_v59  ;;  %v5925_v13 = vadd.f32 %v5834_v44, %v2384_v10  ;;  %v5932_v16 = vadd.f32 %v5834_v44, %v2376_v14  ;;  %v5935_v17 = vadd.f32 %v5834_v44, %v2400_v15  ;;  %v2432_v25 = vld [vmem:[#allocation2 + $0x340] sm:$0xff]  ;;  %v2385_v43 = vld [vmem:[#allocation2 + $0x1c8] sm:$0xff] }
 0x2ef   : > { %3793 = vst [vmem:[%s5458_s13 + $0x1f8] sm:$0xff] %v4396_v60  ;;  %3778 = vst [vmem:[%s5458_s13 + $0x18] sm:$0xff] %v4381_v6  ;;  %v5942_v21 = vadd.f32 %v5834_v44, %v2392_v19  ;;  %v5945_v23 = vadd.f32 %v5834_v44, %v2416_v20  ;;  %v5953_v27 = vadd.f32 %v5834_v44, %v2408_v24  ;;  %v2424_v32 = vld [vmem:[#allocation2 + $0x300] sm:$0xff]  ;;  %v2377_v49 = vld [vmem:[#allocation2 + $0x188] sm:$0xff] }
 0x2f0   : > { %3779 = vst [vmem:[%s5458_s13 + $0x38] sm:$0xff] %v4382_v7  ;;  %v5956_v28 = vadd.f32 %v5834_v44, %v2432_v25  ;;  %v2448_v57 = vld [vmem:[#allocation2 + $0x3c0] sm:$0xff]  ;;  %v5960_v18 = vrot.slane %v5831_v40, %v2476_v26  ;;  %v5967_v29 = vadd.f32 %v5834_v44, %v2424_v32  ;;  %v2465_v47 = vrot.slane %v5831_v40, %v2464_v31  ;;  %v2401_v50 = vld [vmem:[#allocation2 + $0x248] sm:$0xff]  ;;  %v2338_v14 = vld [vmem:[#allocation2 + $0x50] sm:$0xff] }
 0x2f1   : > { %2676 = vrot.lane.b32.xlu0 %v5910_v45, %s4983_s17  ;;  %2684 = vrot.lane.b32.xlu1 %v5913_v46, %s4983_s17  ;;  %v5970_v36 = vadd.f32 %v5834_v44, %v2448_v57  ;;  %v2440_v54 = vld [vmem:[#allocation2 + $0x380] sm:$0xff]  ;;  %v5992_v38 = vrot.slane %v5831_v40, %v2480_v34  ;;  %v2393_v56 = vld [vmem:[#allocation2 + $0x208] sm:$0xff]  ;;  %v6049_v19 = vadd.f32 %v5843_v51, %v2338_v14  ;;  %v2330_v20 = vld [vmem:[#allocation2 + $0x10] sm:$0xff] }
 0x2f2   : > { %v5978_v9 = vadd.f32 %v5834_v44, %v2440_v54  ;;  %v5980_v22 = vadd.f32 %v2465_v47, %v2337_v2  ;;  %v5987_v35 = vadd.f32 %v2465_v47, %v2329_v30  ;;  %v5989_v37 = vadd.f32 %v2465_v47, %v2353_v33  ;;  %v2345_v44 = vld [vmem:[#allocation2 + $0x88] sm:$0xff]  ;;  %v2354_v24 = vld [vmem:[#allocation2 + $0xd0] sm:$0xff] }
 0x2f3   : > { %v5998_v11 = vadd.f32 %v2465_v47, %v2345_v44  ;;  %v6000_v41 = vadd.f32 %v2465_v47, %v2369_v39  ;;  %v6006_v40 = vadd.f32 %v2465_v47, %v2361_v42  ;;  %v6008_v48 = vadd.f32 %v2465_v47, %v2385_v43  ;;  %v2417_v59 = vld [vmem:[#allocation2 + $0x2c8] sm:$0xff]  ;;  %7218 = vst [vmem:[#allocation40_spill] sm:$0xff] %v6049_v19  ;;  %v2346_v31 = vld [vmem:[#allocation2 + $0x90] sm:$0xff] }
 0x2f4   : > { %v6014_v53 = vadd.f32 %v2465_v47, %v2377_v49  ;;  %v6016_v55 = vadd.f32 %v2465_v47, %v2401_v50  ;;  %v6022_v60 = vadd.f32 %v2465_v47, %v2393_v56  ;;  %v6024_v61 = vadd.f32 %v2465_v47, %v2417_v59  ;;  %v2409_v62 = vld [vmem:[#allocation2 + $0x288] sm:$0xff]  ;;  %v2370_v32 = vld [vmem:[#allocation2 + $0x150] sm:$0xff] }
 0x2f5   : > { %2682 = vrot.lane.b32.xlu0 %v5922_v12, %s4983_s17  ;;  %2688 = vrot.lane.b32.xlu1 %v5925_v13, %s4983_s17  ;;  %v2433_v63 = vld [vmem:[#allocation2 + $0x348] sm:$0xff]  ;;  %v6030_v0 = vadd.f32 %v2465_v47, %v2409_v62  ;;  %v6056_v25 = vadd.f32 %v5843_v51, %v2330_v20  ;;  %v6059_v26 = vadd.f32 %v5843_v51, %v2354_v24  ;;  %v2362_v54 = vld [vmem:[#allocation2 + $0x110] sm:$0xff] }
 0x2f6   : > { %v6032_v1 = vadd.f32 %v2465_v47, %v2433_v63  ;;  %v2425_v3 = vld [vmem:[#allocation2 + $0x308] sm:$0xff]  ;;  %v6066_v57 = vadd.f32 %v5843_v51, %v2346_v31  ;;  %v2386_v2 = vld [vmem:[#allocation2 + $0x1d0] sm:$0xff]  ;;  %v6076_v30 = vadd.f32 %v5843_v51, %v2362_v54  ;;  %v2339_v31 = vld [vmem:[#allocation2 + $0x58] sm:$0xff] }
 0x2f7   : > { %7213 = vst [vmem:[#allocation35_spill] sm:$0xff] %v6030_v0  ;;  %v2449_v6 = vld [vmem:[#allocation2 + $0x3c8] sm:$0xff]  ;;  %v6038_v7 = vadd.f32 %v2465_v47, %v2425_v3  ;;  %7219 = vst [vmem:[#allocation41_spill] sm:$0xff] %v6056_v25  ;;  %v6079_v33 = vadd.f32 %v5843_v51, %v2386_v2  ;;  %v2378_v34 = vld [vmem:[#allocation2 + $0x190] sm:$0xff]  ;;  %v6129_v54 = vadd.f32 %v5846_v52, %v2339_v31 }
 0x2f8   : > { %7214 = vst [vmem:[#allocation36_spill] sm:$0xff] %v6032_v1  ;;  %v6040_v8 = vadd.f32 %v2465_v47, %v2449_v6  ;;  %v2441_v10 = vld [vmem:[#allocation2 + $0x388] sm:$0xff]  ;;  %7220 = vst [vmem:[#allocation42_spill] sm:$0xff] %v6059_v26  ;;  %v2402_v44 = vld [vmem:[#allocation2 + $0x250] sm:$0xff]  ;;  %v6086_v39 = vadd.f32 %v5843_v51, %v2378_v34 }
 0x2f9   : > { %2686 = vrot.lane.b32.xlu0 %v5932_v16, %s4983_s17  ;;  %2692 = vrot.lane.b32.xlu1 %v5935_v17, %s4983_s17  ;;  %7215 = vst [vmem:[#allocation37_spill] sm:$0xff] %v6038_v7  ;;  %v6046_v15 = vadd.f32 %v2465_v47, %v2441_v10  ;;  %7221 = vst [vmem:[#allocation43_spill] sm:$0xff] %v6066_v57  ;;  %v6069_v47 = vadd.f32 %v5843_v51, %v2370_v32  ;;  %v2394_v43 = vld [vmem:[#allocation2 + $0x210] sm:$0xff]  ;;  %v2331_v2 = vld [vmem:[#allocation2 + $0x18] sm:$0xff] }
 0x2fa   : > { %7216 = vst [vmem:[#allocation38_spill] sm:$0xff] %v6040_v8  ;;  %7223 = vst [vmem:[#allocation45_spill] sm:$0xff] %v6076_v30  ;;  %v6089_v42 = vadd.f32 %v5843_v51, %v2402_v44  ;;  %v2418_v49 = vld [vmem:[#allocation2 + $0x2d0] sm:$0xff]  ;;  %v6096_v50 = vadd.f32 %v5843_v51, %v2394_v43  ;;  %v2355_v34 = vld [vmem:[#allocation2 + $0xd8] sm:$0xff]  ;;  %v6136_v44 = vadd.f32 %v5846_v52, %v2331_v2 }
 0x2fb   : > { %7217 = vst [vmem:[#allocation39_spill] sm:$0xff] %v6046_v15  ;;  %7222 = vst [vmem:[#allocation44_spill] sm:$0xff] %v6069_v47  ;;  %v6099_v56 = vadd.f32 %v5843_v51, %v2418_v49  ;;  %v2410_v59 = vld [vmem:[#allocation2 + $0x290] sm:$0xff]  ;;  %v6139_v43 = vadd.f32 %v5846_v52, %v2355_v34  ;;  %v2371_v49 = vld [vmem:[#allocation2 + $0x158] sm:$0xff] }
 0x2fc   : > { %7224 = vst [vmem:[#allocation46_spill] sm:$0xff] %v6079_v33  ;;  %7225 = vst [vmem:[#allocation47_spill] sm:$0xff] %v6086_v39  ;;  %v2434_v62 = vld [vmem:[#allocation2 + $0x350] sm:$0xff]  ;;  %v6106_v63 = vadd.f32 %v5843_v51, %v2410_v59  ;;  %v6165_v34 = vld [vmem:[%s5456_s19 + $0x10] sm:$0xff] }
 0x2fd   : > { %2690 = vrot.lane.b32.xlu0 %v5942_v21, %s4983_s17  ;;  %2696 = vrot.lane.b32.xlu1 %v5945_v23, %s4983_s17  ;;  %7226 = vst [vmem:[#allocation48_spill] sm:$0xff] %v6089_v42  ;;  %7227 = vst [vmem:[#allocation49_spill] sm:$0xff] %v6096_v50  ;;  %v6109_v3 = vadd.f32 %v5843_v51, %v2434_v62  ;;  %v2426_v6 = vld [vmem:[#allocation2 + $0x310] sm:$0xff]  ;;  %v6149_v62 = vadd.f32 %v5846_v52, %v2371_v49  ;;  %v2379_v49 = vld [vmem:[#allocation2 + $0x198] sm:$0xff] }
 0x2fe   : > { %7228 = vst [vmem:[#allocation50_spill] sm:$0xff] %v6099_v56  ;;  %7229 = vst [vmem:[#allocation51_spill] sm:$0xff] %v6106_v63  ;;  %v2450_v10 = vld [vmem:[#allocation2 + $0x3d0] sm:$0xff]  ;;  %v6116_v14 = vadd.f32 %v5843_v51, %v2426_v6  ;;  %v2363_v6 = vld [vmem:[#allocation2 + $0x118] sm:$0xff] }
 0x2ff   : > { %7230 = vst [vmem:[#allocation52_spill] sm:$0xff] %v6109_v3  ;;  %v6119_v20 = vadd.f32 %v5843_v51, %v2450_v10  ;;  %v2442_v24 = vld [vmem:[#allocation2 + $0x390] sm:$0xff]  ;;  %7234 = vst [vmem:[#allocation56_spill] sm:$0xff] %v6129_v54  ;;  %v2387_v10 = vld [vmem:[#allocation2 + $0x1d8] sm:$0xff]  ;;  %v6159_v31 = vadd.f32 %v5846_v52, %v2363_v6  ;;  %v6175_v6 = vadd.f32 %v5846_v52, %v2379_v49 }
 0x300   : > { %7231 = vst [vmem:[#allocation53_spill] sm:$0xff] %v6116_v14  ;;  %v6126_v32 = vadd.f32 %v5843_v51, %v2442_v24  ;;  %7235 = vst [vmem:[#allocation57_spill] sm:$0xff] %v6136_v44  ;;  %v2347_v51 = vld [vmem:[#allocation2 + $0x98] sm:$0xff]  ;;  %v6162_v2 = vadd.f32 %v5846_v52, %v2387_v10 }
 0x301   : > { %2694 = vrot.lane.b32.xlu0 %v5953_v27, %s4983_s17  ;;  %2700 = vrot.lane.b32.xlu1 %v5956_v28, %s4983_s17  ;;  %7232 = vst [vmem:[#allocation54_spill] sm:$0xff] %v6119_v20  ;;  %7236 = vst [vmem:[#allocation58_spill] sm:$0xff] %v6139_v43  ;;  %v6146_v59 = vadd.f32 %v5846_v52, %v2347_v51  ;;  %v6152_v24 = vld [vmem:[%s5447_s27 + $0x10] sm:$0xff] }
 0x302   : > { %7233 = vst [vmem:[#allocation55_spill] sm:$0xff] %v6126_v32  ;;  %7238 = vst [vmem:[#allocation60_spill] sm:$0xff] %v6149_v62  ;;  %v2660_v51 = vmul.f32 %v6152_v24, %v5849_v58  ;;  %v2395_v58 = vld [vmem:[#allocation2 + $0x218] sm:$0xff] }
 0x303   : > { %7237 = vst [vmem:[#allocation59_spill] sm:$0xff] %v6146_v59  ;;  %7239 = vst [vmem:[#allocation61_spill] sm:$0xff] %v6159_v31 }
 0x304   : > { %7240 = vst [vmem:[#allocation62_spill] sm:$0xff] %v6162_v2  ;;  %7241 = vst [vmem:[#allocation63_spill] sm:$0xff] %v6175_v6 }
 0x305   : > { %2698 = vrot.lane.b32.xlu0 %v5967_v29, %s4983_s17  ;;  %2704 = vrot.lane.b32.xlu1 %v5970_v36, %s4983_s17 }
 0x309   : > { %2702 = vrot.lane.b32.xlu0 %v5978_v9, %s4983_s17  ;;  %2852 = vrot.lane.b32.xlu1 %v5980_v22, %s4983_s17 }
 0x30d   : > { %2850 = vrot.lane.b32.xlu0 %v5987_v35, %s4983_s17  ;;  %2856 = vrot.lane.b32.xlu1 %v5989_v37, %s4983_s17 }
 0x311   : > { %2854 = vrot.lane.b32.xlu0 %v5998_v11, %s4983_s17  ;;  %2860 = vrot.lane.b32.xlu1 %v6000_v41, %s4983_s17 }
 0x315   : > { %2858 = vrot.lane.b32.xlu0 %v6006_v40, %s4983_s17  ;;  %2864 = vrot.lane.b32.xlu1 %v6008_v48, %s4983_s17 }
 0x319   : > { %2862 = vrot.lane.b32.xlu0 %v6014_v53, %s4983_s17  ;;  %2868 = vrot.lane.b32.xlu1 %v6016_v55, %s4983_s17 }
 0x31d   : > { %2866 = vrot.lane.b32.xlu0 %v6022_v60, %s4983_s17  ;;  %2872 = vrot.lane.b32.xlu1 %v6024_v61, %s4983_s17 }
 0x321   : > { %2870 = vrot.lane.b32.xlu0 %v6030_v0, %s4983_s17  ;;  %2876 = vrot.lane.b32.xlu1 %v6032_v1, %s4983_s17 }
 0x325   : > { %2874 = vrot.lane.b32.xlu0 %v6038_v7, %s4983_s17  ;;  %2880 = vrot.lane.b32.xlu1 %v6040_v8, %s4983_s17 }
 0x329   : > { %2878 = vrot.lane.b32.xlu0 %v6046_v15, %s4983_s17  ;;  %3028 = vrot.lane.b32.xlu1 %v6049_v19, %s4983_s17 }
 0x32d   : > { %3026 = vrot.lane.b32.xlu0 %v6056_v25, %s4983_s17  ;;  %3032 = vrot.lane.b32.xlu1 %v6059_v26, %s4983_s17  ;;  %v2332_v26 = vld [vmem:[#allocation2 + $0x20] sm:$0xff] }
 0x331   : > { %3030 = vrot.lane.b32.xlu0 %v6066_v57, %s4983_s17  ;;  %3036 = vrot.lane.b32.xlu1 %v6069_v47, %s4983_s17 }
 0x335   : > { %3034 = vrot.lane.b32.xlu0 %v6076_v30, %s4983_s17  ;;  %3040 = vrot.lane.b32.xlu1 %v6079_v33, %s4983_s17 }
 0x339   : > { %3038 = vrot.lane.b32.xlu0 %v6086_v39, %s4983_s17  ;;  %3044 = vrot.lane.b32.xlu1 %v6089_v42, %s4983_s17  ;;  %v6249_v39 = vld [vmem:[%s5447_s27 + $0x38] sm:$0xff] }
 0x33d   : > { %3042 = vrot.lane.b32.xlu0 %v6096_v50, %s4983_s17  ;;  %3048 = vrot.lane.b32.xlu1 %v6099_v56, %s4983_s17  ;;  %v6239_v56 = vld [vmem:[%s5456_s19 + $0x28] sm:$0xff] }
 0x341   : > { %3046 = vrot.lane.b32.xlu0 %v6106_v63, %s4983_s17  ;;  %3052 = vrot.lane.b32.xlu1 %v6109_v3, %s4983_s17  ;;  %v6226_v63 = vld [vmem:[%s5447_s27 + $0x20] sm:$0xff] }
 0x345   : > { %3050 = vrot.lane.b32.xlu0 %v6116_v14, %s4983_s17  ;;  %3056 = vrot.lane.b32.xlu1 %v6119_v20, %s4983_s17  ;;  %v6218_v14 = vld [vmem:[%s5447_s27 + $0x8] sm:$0xff] }
 0x349   : > { %3054 = vrot.lane.b32.xlu0 %v6126_v32, %s4983_s17  ;;  %3204 = vrot.lane.b32.xlu1 %v6129_v54, %s4983_s17  ;;  %v2435_v32 = vld [vmem:[#allocation2 + $0x358] sm:$0xff] }
 0x34d   : > { %3202 = vrot.lane.b32.xlu0 %v6136_v44, %s4983_s17  ;;  %3208 = vrot.lane.b32.xlu1 %v6139_v43, %s4983_s17  ;;  %v2403_v43 = vld [vmem:[#allocation2 + $0x258] sm:$0xff] }
 0x34e   : > { %v6178_v10 = vadd.f32 %v5846_v52, %v2403_v43 }
 0x350   : > { %7242 = vst [vmem:[#allocation64_spill] sm:$0xff] %v6178_v10 }
 0x351   : > { %3206 = vrot.lane.b32.xlu0 %v6146_v59, %s4983_s17  ;;  %3212 = vrot.lane.b32.xlu1 %v6149_v62, %s4983_s17  ;;  %v2419_v59 = vld [vmem:[#allocation2 + $0x2d8] sm:$0xff] }
 0x352   : > { %v6188_v49 = vadd.f32 %v5846_v52, %v2419_v59 }
 0x353   : > { %v2679_v44 = vpop.permute.xlu1 %2678 }
 0x354   : > { %v2708_v54 = vmul.f32 %v2679_v44, %v6165_v34  ;;  %7244 = vst [vmem:[#allocation66_spill] sm:$0xff] %v6188_v49 }
 0x355   : > { %3210 = vrot.lane.b32.xlu0 %v6159_v31, %s4983_s17  ;;  %3216 = vrot.lane.b32.xlu1 %v6162_v2, %s4983_s17  ;;  %v6185_v2 = vadd.f32 %v5846_v52, %v2395_v58  ;;  %v2411_v31 = vld [vmem:[#allocation2 + $0x298] sm:$0xff]  ;;  %v6208_v58 = vld [vmem:[%s5456_s19 + $0x18] sm:$0xff] }
 0x356   : > { %v2724_v62 = vadd.f32 %v2708_v54, %v2660_v51  ;;  %v6191_v54 = vld [vmem:[%s5447_s27] sm:$0xff]  ;;  %v6205_v59 = vadd.f32 %v5846_v52, %v2411_v31  ;;  %v6221_v31 = vld [vmem:[%s5447_s27 + $0x28] sm:$0xff] }
 0x357   : > { %7243 = vst [vmem:[#allocation65_spill] sm:$0xff] %v6185_v2  ;;  %v6200_v51 = vld [vmem:[%s5456_s19] sm:$0xff]  ;;  %v2663_v42 = vmul.f32 %v6221_v31, %v5913_v46 }
 0x358   : > { %v2740_v44 = vmul.f32 0.0078125, %v2724_v62  ;;  %v6194_v62 = vld [vmem:[%s5447_s27 + $0x18] sm:$0xff]  ;;  %7245 = vst [vmem:[#allocation67_spill] sm:$0xff] %v6205_v59  ;;  %v6261_v46 = vld [vmem:[%s5456_s19 + $0x20] sm:$0xff] }
 0x359   : > { %3214 = vrot.lane.b32.xlu0 %v6175_v6, %s4983_s17  ;;  %3220 = vrot.lane.b32.xlu1 %v6178_v10, %s4983_s17  ;;  %v2427_v10 = vld [vmem:[#allocation2 + $0x318] sm:$0xff] }
 0x35a   : > { %v4287_v43 = vpack.c.bf16 %v2740_v44, %v2740_v44  ;;  %v6211_v44 = vadd.f32 %v5846_v52, %v2435_v32  ;;  %v2451_v6 = vld [vmem:[#allocation2 + $0x3d8] sm:$0xff] }
 0x35c   : > { %2820 = vst [vmem:[%s5458_s13 + $0x40] sm:$0xf] %v4287_v43  ;;  %7246 = vst [vmem:[#allocation68_spill] sm:$0xff] %v6211_v44  ;;  %v2658_v43 = vmul.f32 %v6191_v54, %v5900_v4  ;;  %v6231_v4 = vld [vmem:[%s5456_s19 + $0x8] sm:$0xff] }
 0x35d   : > { %3218 = vrot.lane.b32.xlu0 %v6185_v2, %s4983_s17  ;;  %3224 = vrot.lane.b32.xlu1 %v6188_v49, %s4983_s17  ;;  %v2661_v2 = vmul.f32 %v6194_v62, %v5903_v5  ;;  %v6236_v5 = vadd.f32 %v5846_v52, %v2427_v10  ;;  %v2340_v10 = vld [vmem:[#allocation2 + $0x60] sm:$0xff] }
 0x35f   : > { %v2675_v20 = vpop.permute.xlu0 %2674  ;;  %v2681_v49 = vpop.permute.xlu1 %2680  ;;  %7247 = vst [vmem:[#allocation69_spill] sm:$0xff] %v6236_v5 }
 0x360   : > { %v2706_v3 = vmul.f32 %v2675_v20, %v6200_v51  ;;  %v2709_v32 = vmul.f32 %v2681_v49, %v6208_v58  ;;  %v6242_v20 = vadd.f32 %v5846_v52, %v2451_v6  ;;  %v2662_v6 = vmul.f32 %v6226_v63, %v5922_v12 }
 0x361   : > { %3222 = vrot.lane.b32.xlu0 %v6205_v59, %s4983_s17  ;;  %3228 = vrot.lane.b32.xlu1 %v6211_v44, %s4983_s17  ;;  %v2659_v59 = vmul.f32 %v6218_v14, %v5910_v45  ;;  %v2443_v44 = vld [vmem:[#allocation2 + $0x398] sm:$0xff] }
 0x362   : > { %7248 = vst [vmem:[#allocation70_spill] sm:$0xff] %v6242_v20  ;;  %v2722_v49 = vadd.f32 %v2706_v3, %v2658_v43  ;;  %v2725_v50 = vadd.f32 %v2709_v32, %v2661_v2  ;;  %v6256_v43 = vld [vmem:[%s5447_s27 + $0x30] sm:$0xff]  ;;  %v6266_v12 = vadd.f32 %v5846_v52, %v2443_v44  ;;  %v2356_v52 = vld [vmem:[#allocation2 + $0xe0] sm:$0xff] }
 0x363   : > { %v2677_v33 = vpop.permute.xlu0 %2676  ;;  %v2685_v30 = vpop.permute.xlu1 %2684  ;;  %v2664_v19 = vmul.f32 %v6256_v43, %v5932_v16  ;;  %v6296_v16 = vadd.f32 %v5960_v18, %v2332_v26  ;;  %v2372_v26 = vld [vmem:[#allocation2 + $0x160] sm:$0xff] }
 0x364   : > { %v2738_v47 = vmul.f32 0.0078125, %v2722_v49  ;;  %v2741_v3 = vmul.f32 0.0078125, %v2725_v50  ;;  %v2707_v2 = vmul.f32 %v2677_v33, %v6231_v4  ;;  %v2711_v45 = vmul.f32 %v2685_v30, %v6239_v56  ;;  %7249 = vst [vmem:[#allocation71_spill] sm:$0xff] %v6266_v12  ;;  %v6269_v50 = vld [vmem:[%s5456_s19 + $0x38] sm:$0xff] }
 0x365   : > { %3226 = vrot.lane.b32.xlu0 %v6236_v5, %s4983_s17  ;;  %3232 = vrot.lane.b32.xlu1 %v6242_v20, %s4983_s17  ;;  %v2665_v30 = vmul.f32 %v6249_v39, %v5925_v13  ;;  %v6274_v33 = vadd.f32 %v5960_v18, %v2340_v10  ;;  %v6277_v20 = vld [vmem:[%s5447_s27 + $0x48] sm:$0xff]  ;;  %7251 = vst [vmem:[#allocation73_spill] sm:$0xff] %v6296_v16 }
 0x366   : > { %v4285_v32 = vpack.c.bf16 %v2738_v47, %v2738_v47  ;;  %v4288_v49 = vpack.c.bf16 %v2741_v3, %v2741_v3  ;;  %v2723_v5 = vadd.f32 %v2707_v2, %v2659_v59  ;;  %v2727_v57 = vadd.f32 %v2711_v45, %v2663_v42  ;;  %v6286_v42 = vld [vmem:[%s5447_s27 + $0x40] sm:$0xff]  ;;  %v6291_v3 = vld [vmem:[%s5456_s19 + $0x30] sm:$0xff] }
 0x367   : > { %7250 = vst [vmem:[#allocation72_spill] sm:$0xff] %v6274_v33  ;;  %v2683_v44 = vpop.permute.xlu0 %2682  ;;  %v2689_v25 = vpop.permute.xlu1 %2688  ;;  %v2666_v8 = vmul.f32 %v6286_v42, %v5942_v21 }
 0x368   : > { %2818 = vst [vmem:[%s5458_s13] sm:$0xf] %v4285_v32  ;;  %2821 = vst [vmem:[%s5458_s13 + $0x60] sm:$0xf] %v4288_v49  ;;  %v2739_v13 = vmul.f32 0.0078125, %v2723_v5  ;;  %v2743_v10 = vmul.f32 0.0078125, %v2727_v57  ;;  %v2710_v47 = vmul.f32 %v2683_v44, %v6261_v46  ;;  %v2713_v59 = vmul.f32 %v2689_v25, %v6269_v50  ;;  %v6299_v57 = vld [vmem:[%s5456_s19 + $0x48] sm:$0xff] }
 0x369   : > { %3230 = vrot.lane.b32.xlu0 %v6266_v12, %s4983_s17  ;;  %3380 = vrot.lane.b32.xlu1 %v6274_v33, %s4983_s17  ;;  %v2667_v25 = vmul.f32 %v6277_v20, %v5935_v17  ;;  %v6304_v5 = vadd.f32 %v5960_v18, %v2356_v52  ;;  %v2348_v44 = vld [vmem:[#allocation2 + $0xa0] sm:$0xff] }
 0x36a   : > { %v4286_v2 = vpack.c.bf16 %v2739_v13, %v2739_v13  ;;  %v4290_v45 = vpack.c.bf16 %v2743_v10, %v2743_v10  ;;  %v2726_v32 = vadd.f32 %v2710_v47, %v2662_v6  ;;  %v2729_v49 = vadd.f32 %v2713_v59, %v2665_v30  ;;  %v6307_v33 = vld [vmem:[%s5447_s27 + $0x58] sm:$0xff]  ;;  %v6316_v30 = vld [vmem:[%s5447_s27 + $0x50] sm:$0xff]  ;;  %v6321_v10 = vld [vmem:[%s5456_s19 + $0x40] sm:$0xff] }
 0x36b   : > { %7252 = vst [vmem:[#allocation74_spill] sm:$0xff] %v6304_v5  ;;  %v2687_v12 = vpop.permute.xlu0 %2686  ;;  %v2693_v15 = vpop.permute.xlu1 %2692  ;;  %7253 = vst [vmem:[#allocation75_spill] sm:$0xff] %v6316_v30  ;;  %v6326_v21 = vadd.f32 %v5960_v18, %v2348_v44  ;;  %v6329_v47 = vld [vmem:[%s5456_s19 + $0x58] sm:$0xff]  ;;  %v2668_v1 = vmul.f32 %v6316_v30, %v5953_v27 }
 0x36c   : > { %2819 = vst [vmem:[%s5458_s13 + $0x20] sm:$0xf] %v4286_v2  ;;  %2823 = vst [vmem:[%s5458_s13 + $0xa0] sm:$0xf] %v4290_v45  ;;  %v2742_v17 = vmul.f32 0.0078125, %v2726_v32  ;;  %v2745_v52 = vmul.f32 0.0078125, %v2729_v49  ;;  %v2712_v13 = vmul.f32 %v2687_v12, %v6291_v3  ;;  %v2715_v6 = vmul.f32 %v2693_v15, %v6299_v57 }
 0x36d   : > { %3378 = vrot.lane.b32.xlu0 %v6296_v16, %s4983_s17  ;;  %3384 = vrot.lane.b32.xlu1 %v6304_v5, %s4983_s17  ;;  %7254 = vst [vmem:[#allocation76_spill] sm:$0xff] %v6326_v21  ;;  %v2669_v15 = vmul.f32 %v6307_v33, %v5945_v23  ;;  %v6334_v12 = vadd.f32 %v5960_v18, %v2372_v26  ;;  %v2364_v49 = vld [vmem:[#allocation2 + $0x120] sm:$0xff]  ;;  %v6337_v5 = vld [vmem:[%s5447_s27 + $0x68] sm:$0xff] }
 0x36e   : > { %v4289_v59 = vpack.c.bf16 %v2742_v17, %v2742_v17  ;;  %v4292_v2 = vpack.c.bf16 %v2745_v52, %v2745_v52  ;;  %v2728_v45 = vadd.f32 %v2712_v13, %v2664_v19  ;;  %v2731_v32 = vadd.f32 %v2715_v6, %v2667_v25  ;;  %v2388_v44 = vld [vmem:[#allocation2 + $0x1e0] sm:$0xff]  ;;  %v6346_v25 = vld [vmem:[%s5447_s27 + $0x60] sm:$0xff]  ;;  %v6351_v52 = vld [vmem:[%s5456_s19 + $0x50] sm:$0xff] }
 0x36f   : > { %7255 = vst [vmem:[#allocation77_spill] sm:$0xff] %v6334_v12  ;;  %v2691_v16 = vpop.permute.xlu0 %2690  ;;  %v2697_v7 = vpop.permute.xlu1 %2696  ;;  %7256 = vst [vmem:[#allocation78_spill] sm:$0xff] %v6346_v25  ;;  %v6356_v27 = vadd.f32 %v5960_v18, %v2364_v49  ;;  %v6359_v13 = vld [vmem:[%s5456_s19 + $0x68] sm:$0xff]  ;;  %v2404_v49 = vld [vmem:[#allocation2 + $0x260] sm:$0xff]  ;;  %v2670_v0 = vmul.f32 %v6346_v25, %v5967_v29 }
 0x370   : > { %2822 = vst [vmem:[%s5458_s13 + $0x80] sm:$0xf] %v4289_v59  ;;  %2825 = vst [vmem:[%s5458_s13 + $0xe0] sm:$0xf] %v4292_v2  ;;  %v2744_v23 = vmul.f32 0.0078125, %v2728_v45  ;;  %v2747_v26 = vmul.f32 0.0078125, %v2731_v32  ;;  %v2714_v17 = vmul.f32 %v2691_v16, %v6321_v10  ;;  %v2717_v19 = vmul.f32 %v2697_v7, %v6329_v47 }
 0x371   : > { %3382 = vrot.lane.b32.xlu0 %v6326_v21, %s4983_s17  ;;  %7257 = vst [vmem:[#allocation79_spill] sm:$0xff] %v6351_v52  ;;  %3388 = vrot.lane.b32.xlu1 %v6334_v12, %s4983_s17  ;;  %7258 = vst [vmem:[#allocation80_spill] sm:$0xff] %v6356_v27  ;;  %v2671_v7 = vmul.f32 %v6337_v5, %v5956_v28  ;;  %v6364_v16 = vadd.f32 %v5960_v18, %v2388_v44  ;;  %v2380_v32 = vld [vmem:[#allocation2 + $0x1a0] sm:$0xff] }
 0x372   : > { %7259 = vst [vmem:[#allocation81_spill] sm:$0xff] %v6359_v13  ;;  %v4291_v6 = vpack.c.bf16 %v2744_v23, %v2744_v23  ;;  %v4294_v59 = vpack.c.bf16 %v2747_v26, %v2747_v26  ;;  %v2730_v2 = vadd.f32 %v2714_v17, %v2666_v8  ;;  %v2733_v45 = vadd.f32 %v2717_v19, %v2669_v15  ;;  %v6367_v12 = vld [vmem:[%s5447_s27 + $0x78] sm:$0xff]  ;;  %v6376_v26 = vld [vmem:[%s5447_s27 + $0x70] sm:$0xff]  ;;  %v6381_v15 = vld [vmem:[%s5456_s19 + $0x60] sm:$0xff] }
 0x373   : > { %7260 = vst [vmem:[#allocation82_spill] sm:$0xff] %v6364_v16  ;;  %v2695_v21 = vpop.permute.xlu0 %2694  ;;  %v2701_v30 = vpop.permute.xlu1 %2700  ;;  %v6386_v29 = vadd.f32 %v5960_v18, %v2380_v32  ;;  %v6389_v17 = vld [vmem:[%s5456_s19 + $0x78] sm:$0xff]  ;;  %v2672_v32 = vmul.f32 %v6376_v26, %v5978_v9 }
 0x374   : > { %2824 = vst [vmem:[%s5458_s13 + $0xc0] sm:$0xf] %v4291_v6  ;;  %2827 = vst [vmem:[%s5458_s13 + $0x120] sm:$0xf] %v4294_v59  ;;  %v2746_v28 = vmul.f32 0.0078125, %v2730_v2  ;;  %v2749_v44 = vmul.f32 0.0078125, %v2733_v45  ;;  %v2716_v23 = vmul.f32 %v2695_v21, %v6351_v52  ;;  %v2719_v8 = vmul.f32 %v2701_v30, %v6359_v13 }
 0x375   : > { %3386 = vrot.lane.b32.xlu0 %v6356_v27, %s4983_s17  ;;  %3392 = vrot.lane.b32.xlu1 %v6364_v16, %s4983_s17  ;;  %v2673_v30 = vmul.f32 %v6367_v12, %v5970_v36  ;;  %v6394_v21 = vadd.f32 %v5960_v18, %v2404_v49  ;;  %v2396_v45 = vld [vmem:[#allocation2 + $0x220] sm:$0xff] }
 0x376   : > { %v4293_v19 = vpack.c.bf16 %v2746_v28, %v2746_v28  ;;  %v4296_v6 = vpack.c.bf16 %v2749_v44, %v2749_v44  ;;  %v2732_v59 = vadd.f32 %v2716_v23, %v2668_v1  ;;  %v2735_v2 = vadd.f32 %v2719_v8, %v2671_v7  ;;  %v2420_v27 = vld [vmem:[#allocation2 + $0x2e0] sm:$0xff]  ;;  %v6405_v1 = vld [vmem:[%s5456_s19 + $0x70] sm:$0xff] }
 0x377   : > { %7261 = vst [vmem:[#allocation83_spill] sm:$0xff] %v6394_v21  ;;  %v2699_v25 = vpop.permute.xlu0 %2698  ;;  %v2705_v16 = vpop.permute.xlu1 %2704  ;;  %v6410_v9 = vadd.f32 %v5960_v18, %v2396_v45  ;;  %v2835_v7 = vmul.f32 %v6218_v14, %v5980_v22  ;;  %v2412_v8 = vld [vmem:[#allocation2 + $0x2a0] sm:$0xff] }
 0x378   : > { %2826 = vst [vmem:[%s5458_s13 + $0x100] sm:$0xf] %v4293_v19  ;;  %2829 = vst [vmem:[%s5458_s13 + $0x160] sm:$0xf] %v4296_v6  ;;  %v2748_v13 = vmul.f32 0.0078125, %v2732_v59  ;;  %v2751_v52 = vmul.f32 0.0078125, %v2735_v2  ;;  %v2718_v36 = vmul.f32 %v2699_v25, %v6381_v15  ;;  %v2721_v49 = vmul.f32 %v2705_v16, %v6389_v17 }
 0x379   : > { %3390 = vrot.lane.b32.xlu0 %v6386_v29, %s4983_s17  ;;  %3396 = vrot.lane.b32.xlu1 %v6394_v21, %s4983_s17  ;;  %v6415_v25 = vadd.f32 %v5960_v18, %v2420_v27  ;;  %v2436_v19 = vld [vmem:[#allocation2 + $0x360] sm:$0xff]  ;;  %v2834_v2 = vmul.f32 %v6191_v54, %v5987_v35  ;;  %v2837_v35 = vmul.f32 %v6194_v62, %v5989_v37 }
 0x37a   : > { %v4295_v16 = vpack.c.bf16 %v2748_v13, %v2748_v13  ;;  %v4298_v28 = vpack.c.bf16 %v2751_v52, %v2751_v52  ;;  %v2734_v44 = vadd.f32 %v2718_v36, %v2670_v0  ;;  %v2737_v23 = vadd.f32 %v2721_v49, %v2673_v30 }
 0x37b   : > { %v2703_v6 = vpop.permute.xlu0 %2702  ;;  %v2853_v59 = vpop.permute.xlu1 %2852  ;;  %v6428_v0 = vadd.f32 %v5960_v18, %v2412_v8  ;;  %v6433_v52 = vadd.f32 %v5960_v18, %v2436_v19 }
 0x37c   : > { %2828 = vst [vmem:[%s5458_s13 + $0x140] sm:$0xf] %v4295_v16  ;;  %2831 = vst [vmem:[%s5458_s13 + $0x1a0] sm:$0xf] %v4298_v28  ;;  %v2750_v45 = vmul.f32 0.0078125, %v2734_v44  ;;  %v2753_v21 = vmul.f32 0.0078125, %v2737_v23  ;;  %v2720_v22 = vmul.f32 %v2703_v6, %v6405_v1  ;;  %v2883_v27 = vmul.f32 %v2853_v59, %v6231_v4 }
 0x37d   : > { %3394 = vrot.lane.b32.xlu0 %v6410_v9, %s4983_s17  ;;  %3400 = vrot.lane.b32.xlu1 %v6415_v25, %s4983_s17  ;;  %7262 = vst [vmem:[#allocation84_spill] sm:$0xff] %v6433_v52  ;;  %v2428_v16 = vld [vmem:[#allocation2 + $0x320] sm:$0xff]  ;;  %v2836_v6 = vmul.f32 %v6152_v24, %v5998_v11  ;;  %v2839_v11 = vmul.f32 %v6221_v31, %v6000_v41 }
 0x37e   : > { %v4297_v13 = vpack.c.bf16 %v2750_v45, %v2750_v45  ;;  %v4300_v30 = vpack.c.bf16 %v2753_v21, %v2753_v21  ;;  %v2736_v36 = vadd.f32 %v2720_v22, %v2672_v32  ;;  %v2899_v49 = vadd.f32 %v2883_v27, %v2835_v7  ;;  %v2452_v28 = vld [vmem:[#allocation2 + $0x3e0] sm:$0xff] }
 0x37f   : > { %v2851_v44 = vpop.permute.xlu0 %2850  ;;  %v2857_v23 = vpop.permute.xlu1 %2856  ;;  %v2444_v21 = vld [vmem:[#allocation2 + $0x3a0] sm:$0xff]  ;;  %v6446_v32 = vadd.f32 %v5960_v18, %v2428_v16  ;;  %v6451_v7 = vadd.f32 %v5960_v18, %v2452_v28  ;;  %v2333_v28 = vld [vmem:[#allocation2 + $0x28] sm:$0xff] }
 0x380   : > { %2830 = vst [vmem:[%s5458_s13 + $0x180] sm:$0xf] %v4297_v13  ;;  %2833 = vst [vmem:[%s5458_s13 + $0x1e0] sm:$0xf] %v4300_v30  ;;  %v2752_v8 = vmul.f32 0.0078125, %v2736_v36  ;;  %v2915_v59 = vmul.f32 0.0078125, %v2899_v49  ;;  %v2882_v37 = vmul.f32 %v2851_v44, %v6200_v51  ;;  %v2885_v19 = vmul.f32 %v2857_v23, %v6208_v58 }
 0x381   : > { %3398 = vrot.lane.b32.xlu0 %v6428_v0, %s4983_s17  ;;  %3404 = vrot.lane.b32.xlu1 %v6433_v52, %s4983_s17  ;;  %v2341_v30 = vld [vmem:[#allocation2 + $0x68] sm:$0xff]  ;;  %v6454_v44 = vadd.f32 %v5960_v18, %v2444_v21  ;;  %v2841_v18 = vmul.f32 %v6249_v39, %v6008_v48 }
 0x382   : > { %v4299_v45 = vpack.c.bf16 %v2752_v8, %v2752_v8  ;;  %v4302_v22 = vpack.c.bf16 %v2915_v59, %v2915_v59  ;;  %v2898_v27 = vadd.f32 %v2882_v37, %v2834_v2  ;;  %v2901_v13 = vadd.f32 %v2885_v19, %v2837_v35  ;;  %v2357_v21 = vld [vmem:[#allocation2 + $0xe8] sm:$0xff] }
 0x383   : > { %v2855_v36 = vpop.permute.xlu0 %2854  ;;  %v2861_v49 = vpop.permute.xlu1 %2860  ;;  %v2838_v2 = vmul.f32 %v6226_v63, %v6006_v40  ;;  %v6469_v35 = vadd.f32 %v5992_v38, %v2341_v30  ;;  %v2349_v30 = vld [vmem:[#allocation2 + $0xa8] sm:$0xff] }
 0x384   : > { %2832 = vst [vmem:[%s5458_s13 + $0x1c0] sm:$0xf] %v4299_v45  ;;  %2995 = vst [vmem:[%s5458_s13 + $0x24] sm:$0xf] %v4302_v22  ;;  %v2914_v16 = vmul.f32 0.0078125, %v2898_v27  ;;  %v2917_v23 = vmul.f32 0.0078125, %v2901_v13  ;;  %v2884_v52 = vmul.f32 %v2855_v36, %v6165_v34  ;;  %v2887_v41 = vmul.f32 %v2861_v49, %v6239_v56 }
 0x385   : > { %3402 = vrot.lane.b32.xlu0 %v6446_v32, %s4983_s17  ;;  %3408 = vrot.lane.b32.xlu1 %v6451_v7, %s4983_s17  ;;  %7263 = vst [vmem:[#allocation85_spill] sm:$0xff] %v6469_v35  ;;  %v6472_v27 = vadd.f32 %v5992_v38, %v2333_v28  ;;  %v2373_v28 = vld [vmem:[#allocation2 + $0x168] sm:$0xff] }
 0x386   : > { %v4301_v8 = vpack.c.bf16 %v2914_v16, %v2914_v16  ;;  %v4304_v59 = vpack.c.bf16 %v2917_v23, %v2917_v23  ;;  %v2900_v37 = vadd.f32 %v2884_v52, %v2836_v6  ;;  %v2903_v19 = vadd.f32 %v2887_v41, %v2839_v11 }
 0x387   : > { %v2859_v45 = vpop.permute.xlu0 %2858  ;;  %v2865_v22 = vpop.permute.xlu1 %2864  ;;  %7264 = vst [vmem:[#allocation86_spill] sm:$0xff] %v6472_v27  ;;  %v2840_v52 = vmul.f32 %v6256_v43, %v6014_v53  ;;  %v2843_v6 = vmul.f32 %v6277_v20, %v6016_v55  ;;  %v6487_v11 = vadd.f32 %v5992_v38, %v2357_v21  ;;  %v2365_v21 = vld [vmem:[#allocation2 + $0x128] sm:$0xff] }
 0x388   : > { %2994 = vst [vmem:[%s5458_s13 + $0x4] sm:$0xf] %v4301_v8  ;;  %2997 = vst [vmem:[%s5458_s13 + $0x64] sm:$0xf] %v4304_v59  ;;  %v2916_v40 = vmul.f32 0.0078125, %v2900_v37  ;;  %v2919_v13 = vmul.f32 0.0078125, %v2903_v19  ;;  %v2886_v36 = vmul.f32 %v2859_v45, %v6261_v46  ;;  %v2889_v48 = vmul.f32 %v2865_v22, %v6269_v50 }
 0x389   : > { %3406 = vrot.lane.b32.xlu0 %v6454_v44, %s4983_s17  ;;  %3540 = vrot.lane.b32.xlu1 %v6469_v35, %s4983_s17  ;;  %7265 = vst [vmem:[#allocation87_spill] sm:$0xff] %v6487_v11  ;;  %v6490_v37 = vadd.f32 %v5992_v38, %v2349_v30  ;;  %v6505_v22 = vadd.f32 %v5992_v38, %v2373_v28  ;;  %v2389_v30 = vld [vmem:[#allocation2 + $0x1e8] sm:$0xff] }
 0x38a   : > { %v4303_v49 = vpack.c.bf16 %v2916_v40, %v2916_v40  ;;  %v4306_v16 = vpack.c.bf16 %v2919_v13, %v2919_v13  ;;  %v2902_v23 = vadd.f32 %v2886_v36, %v2838_v2  ;;  %v2905_v41 = vadd.f32 %v2889_v48, %v2841_v18  ;;  %v2381_v28 = vld [vmem:[#allocation2 + $0x1a8] sm:$0xff] }
 0x38b   : > { %v2863_v8 = vpop.permute.xlu0 %2862  ;;  %v2869_v59 = vpop.permute.xlu1 %2868  ;;  %7266 = vst [vmem:[#allocation88_spill] sm:$0xff] %v6490_v37  ;;  %v2842_v2 = vmul.f32 %v6286_v42, %v6022_v60  ;;  %v2845_v18 = vmul.f32 %v6307_v33, %v6024_v61  ;;  %7267 = vst [vmem:[#allocation89_spill] sm:$0xff] %v6505_v22 }
 0x38c   : > { %2996 = vst [vmem:[%s5458_s13 + $0x44] sm:$0xf] %v4303_v49  ;;  %2999 = vst [vmem:[%s5458_s13 + $0xa4] sm:$0xf] %v4306_v16  ;;  %v2918_v53 = vmul.f32 0.0078125, %v2902_v23  ;;  %v2921_v19 = vmul.f32 0.0078125, %v2905_v41  ;;  %v2888_v45 = vmul.f32 %v2863_v8, %v6291_v3  ;;  %v2891_v55 = vmul.f32 %v2869_v59, %v6299_v57 }
 0x38d   : > { %3538 = vrot.lane.b32.xlu0 %v6472_v27, %s4983_s17  ;;  %3544 = vrot.lane.b32.xlu1 %v6487_v11, %s4983_s17  ;;  %v6508_v23 = vadd.f32 %v5992_v38, %v2365_v21 }
 0x38e   : > { %v4305_v40 = vpack.c.bf16 %v2918_v53, %v2918_v53  ;;  %v4308_v13 = vpack.c.bf16 %v2921_v19, %v2921_v19  ;;  %v2904_v36 = vadd.f32 %v2888_v45, %v2840_v52  ;;  %v2907_v48 = vadd.f32 %v2891_v55, %v2843_v6  ;;  %v7269_v52 = vld [vmem:[#allocation35_spill] sm:$0xff]  ;;  %v7271_v53 = vld [vmem:[#allocation36_spill] sm:$0xff] }
 0x38f   : > { %v2867_v49 = vpop.permute.xlu0 %2866  ;;  %v2873_v16 = vpop.permute.xlu1 %2872  ;;  %7268 = vst [vmem:[#allocation90_spill] sm:$0xff] %v6508_v23  ;;  %v7270_v6 = vld [vmem:[#allocation75_spill] sm:$0xff]  ;;  %v2847_v19 = vmul.f32 %v6337_v5, %v7271_v53  ;;  %v6523_v45 = vadd.f32 %v5992_v38, %v2389_v30  ;;  %v7275_v53 = vld [vmem:[#allocation81_spill] sm:$0xff] }
 0x390   : > { %2998 = vst [vmem:[%s5458_s13 + $0x84] sm:$0xf] %v4305_v40  ;;  %3001 = vst [vmem:[%s5458_s13 + $0xe4] sm:$0xf] %v4308_v13  ;;  %v2920_v60 = vmul.f32 0.0078125, %v2904_v36  ;;  %v2923_v41 = vmul.f32 0.0078125, %v2907_v48  ;;  %v2890_v8 = vmul.f32 %v2867_v49, %v6321_v10  ;;  %v2893_v61 = vmul.f32 %v2873_v16, %v6329_v47 }
 0x391   : > { %3542 = vrot.lane.b32.xlu0 %v6490_v37, %s4983_s17  ;;  %v2844_v59 = vmul.f32 %v7270_v6, %v7269_v52  ;;  %3548 = vrot.lane.b32.xlu1 %v6505_v22, %s4983_s17  ;;  %7272 = vst [vmem:[#allocation35_spill] sm:$0xff] %v6523_v45  ;;  %v2405_v36 = vld [vmem:[#allocation2 + $0x268] sm:$0xff]  ;;  %v6526_v16 = vadd.f32 %v5992_v38, %v2381_v28 }
 0x392   : > { %v4307_v55 = vpack.c.bf16 %v2920_v60, %v2920_v60  ;;  %v4310_v21 = vpack.c.bf16 %v2923_v41, %v2923_v41  ;;  %v2906_v40 = vadd.f32 %v2890_v8, %v2842_v2  ;;  %v2909_v13 = vadd.f32 %v2893_v61, %v2845_v18  ;;  %v7274_v37 = vld [vmem:[#allocation79_spill] sm:$0xff]  ;;  %v7276_v2 = vld [vmem:[#allocation37_spill] sm:$0xff]  ;;  %v7277_v18 = vld [vmem:[#allocation78_spill] sm:$0xff] }
 0x393   : > { %v2871_v48 = vpop.permute.xlu0 %2870  ;;  %v2877_v49 = vpop.permute.xlu1 %2876  ;;  %7273 = vst [vmem:[#allocation75_spill] sm:$0xff] %v6526_v16  ;;  %v2397_v60 = vld [vmem:[#allocation2 + $0x228] sm:$0xff]  ;;  %v2846_v41 = vmul.f32 %v7277_v18, %v7276_v2  ;;  %v7278_v8 = vld [vmem:[#allocation38_spill] sm:$0xff]  ;;  %v6541_v28 = vadd.f32 %v5992_v38, %v2405_v36 }
 0x394   : > { %3000 = vst [vmem:[%s5458_s13 + $0xc4] sm:$0xf] %v4307_v55  ;;  %3003 = vst [vmem:[%s5458_s13 + $0x124] sm:$0xf] %v4310_v21  ;;  %v2922_v52 = vmul.f32 0.0078125, %v2906_v40  ;;  %v2925_v22 = vmul.f32 0.0078125, %v2909_v13  ;;  %v2892_v11 = vmul.f32 %v2871_v48, %v7274_v37  ;;  %v2895_v30 = vmul.f32 %v2877_v49, %v7275_v53 }
 0x395   : > { %3546 = vrot.lane.b32.xlu0 %v6508_v23, %s4983_s17  ;;  %3552 = vrot.lane.b32.xlu1 %v6523_v45, %s4983_s17  ;;  %v2849_v61 = vmul.f32 %v6367_v12, %v7278_v8  ;;  %7279 = vst [vmem:[#allocation36_spill] sm:$0xff] %v6541_v28  ;;  %v2421_v48 = vld [vmem:[#allocation2 + $0x2e8] sm:$0xff]  ;;  %v6544_v23 = vadd.f32 %v5992_v38, %v2397_v60 }
 0x396   : > { %v4309_v55 = vpack.c.bf16 %v2922_v52, %v2922_v52  ;;  %v4312_v21 = vpack.c.bf16 %v2925_v22, %v2925_v22  ;;  %v2908_v40 = vadd.f32 %v2892_v11, %v2844_v59  ;;  %v2911_v13 = vadd.f32 %v2895_v30, %v2847_v19  ;;  %v2413_v52 = vld [vmem:[#allocation2 + $0x2a8] sm:$0xff]  ;;  %v7281_v59 = vld [vmem:[#allocation40_spill] sm:$0xff] }
 0x397   : > { %v2875_v49 = vpop.permute.xlu0 %2874  ;;  %v2881_v27 = vpop.permute.xlu1 %2880  ;;  %v7280_v11 = vld [vmem:[#allocation39_spill] sm:$0xff]  ;;  %v3011_v19 = vmul.f32 %v6218_v14, %v7281_v59  ;;  %v6559_v30 = vadd.f32 %v5992_v38, %v2421_v48 }
 0x398   : > { %3002 = vst [vmem:[%s5458_s13 + $0x104] sm:$0xf] %v4309_v55  ;;  %3005 = vst [vmem:[%s5458_s13 + $0x164] sm:$0xf] %v4312_v21  ;;  %v2924_v2 = vmul.f32 0.0078125, %v2908_v40  ;;  %v2927_v45 = vmul.f32 0.0078125, %v2911_v13  ;;  %v2894_v35 = vmul.f32 %v2875_v49, %v6381_v15  ;;  %v2897_v36 = vmul.f32 %v2881_v27, %v6389_v17 }
 0x399   : > { %3550 = vrot.lane.b32.xlu0 %v6526_v16, %s4983_s17  ;;  %v2848_v22 = vmul.f32 %v6376_v26, %v7280_v11  ;;  %3556 = vrot.lane.b32.xlu1 %v6541_v28, %s4983_s17  ;;  %7282 = vst [vmem:[#allocation79_spill] sm:$0xff] %v6559_v30  ;;  %v2437_v21 = vld [vmem:[#allocation2 + $0x368] sm:$0xff]  ;;  %v6562_v49 = vadd.f32 %v5992_v38, %v2413_v52 }
 0x39a   : > { %v4311_v60 = vpack.c.bf16 %v2924_v2, %v2924_v2  ;;  %v4314_v8 = vpack.c.bf16 %v2927_v45, %v2927_v45  ;;  %v2910_v27 = vadd.f32 %v2894_v35, %v2846_v41  ;;  %v2913_v55 = vadd.f32 %v2897_v36, %v2849_v61  ;;  %v2429_v2 = vld [vmem:[#allocation2 + $0x328] sm:$0xff]  ;;  %v7283_v35 = vld [vmem:[#allocation41_spill] sm:$0xff]  ;;  %v7284_v41 = vld [vmem:[#allocation42_spill] sm:$0xff] }
 0x39b   : > { %v2879_v40 = vpop.permute.xlu0 %2878  ;;  %v3029_v13 = vpop.permute.xlu1 %3028  ;;  %v3010_v45 = vmul.f32 %v6191_v54, %v7283_v35  ;;  %v3013_v61 = vmul.f32 %v6194_v62, %v7284_v41  ;;  %v6577_v36 = vadd.f32 %v5992_v38, %v2437_v21 }
 0x39c   : > { %3004 = vst [vmem:[%s5458_s13 + $0x144] sm:$0xf] %v4311_v60  ;;  %3007 = vst [vmem:[%s5458_s13 + $0x1a4] sm:$0xf] %v4314_v8  ;;  %v2926_v11 = vmul.f32 0.0078125, %v2910_v27  ;;  %v2929_v28 = vmul.f32 0.0078125, %v2913_v55  ;;  %v2896_v16 = vmul.f32 %v2879_v40, %v6405_v1  ;;  %v3059_v48 = vmul.f32 %v3029_v13, %v6231_v4 }
 0x39d   : > { %3554 = vrot.lane.b32.xlu0 %v6544_v23, %s4983_s17  ;;  %3560 = vrot.lane.b32.xlu1 %v6559_v30, %s4983_s17  ;;  %7285 = vst [vmem:[#allocation81_spill] sm:$0xff] %v6577_v36  ;;  %v2453_v27 = vld [vmem:[#allocation2 + $0x3e8] sm:$0xff]  ;;  %v6580_v13 = vadd.f32 %v5992_v38, %v2429_v2 }
 0x39e   : > { %v4313_v52 = vpack.c.bf16 %v2926_v11, %v2926_v11  ;;  %v4316_v59 = vpack.c.bf16 %v2929_v28, %v2929_v28  ;;  %v2912_v60 = vadd.f32 %v2896_v16, %v2848_v22  ;;  %v3075_v8 = vadd.f32 %v3059_v48, %v3011_v19  ;;  %v7286_v16 = vld [vmem:[#allocation43_spill] sm:$0xff]  ;;  %v7287_v22 = vld [vmem:[#allocation44_spill] sm:$0xff] }
 0x39f   : > { %v3027_v55 = vpop.permute.xlu0 %3026  ;;  %v3033_v40 = vpop.permute.xlu1 %3032  ;;  %v3012_v28 = vmul.f32 %v6152_v24, %v7286_v16  ;;  %v3015_v19 = vmul.f32 %v6221_v31, %v7287_v22  ;;  %v6595_v11 = vadd.f32 %v5992_v38, %v2453_v27  ;;  %v7288_v27 = vld [vmem:[#allocation45_spill] sm:$0xff] }
 0x3a0   : > { %3006 = vst [vmem:[%s5458_s13 + $0x184] sm:$0xf] %v4313_v52  ;;  %3009 = vst [vmem:[%s5458_s13 + $0x1e4] sm:$0xf] %v4316_v59  ;;  %v2928_v35 = vmul.f32 0.0078125, %v2912_v60  ;;  %v3091_v30 = vmul.f32 0.0078125, %v3075_v8  ;;  %v3058_v41 = vmul.f32 %v3027_v55, %v6200_v51  ;;  %v3061_v21 = vmul.f32 %v3033_v40, %v6208_v58 }
 0x3a1   : > { %3558 = vrot.lane.b32.xlu0 %v6562_v49, %s4983_s17  ;;  %3564 = vrot.lane.b32.xlu1 %v6577_v36, %s4983_s17  ;;  %v2445_v60 = vld [vmem:[#allocation2 + $0x3a8] sm:$0xff] }
 0x3a2   : > { %v4315_v48 = vpack.c.bf16 %v2928_v35, %v2928_v35  ;;  %v4318_v2 = vpack.c.bf16 %v3091_v30, %v3091_v30  ;;  %v3074_v52 = vadd.f32 %v3058_v41, %v3010_v45  ;;  %v3077_v59 = vadd.f32 %v3061_v21, %v3013_v61  ;;  %v7289_v61 = vld [vmem:[#allocation46_spill] sm:$0xff] }
 0x3a3   : > { %v3031_v8 = vpop.permute.xlu0 %3030  ;;  %v3037_v55 = vpop.permute.xlu1 %3036  ;;  %v3014_v30 = vmul.f32 %v6226_v63, %v7288_v27  ;;  %v6608_v45 = vadd.f32 %v5992_v38, %v2445_v60  ;;  %v3017_v35 = vmul.f32 %v6249_v39, %v7289_v61  ;;  %v7290_v60 = vld [vmem:[#allocation47_spill] sm:$0xff] }
 0x3a4   : > { %3008 = vst [vmem:[%s5458_s13 + $0x1c4] sm:$0xf] %v4315_v48  ;;  %3171 = vst [vmem:[%s5458_s13 + $0x28] sm:$0xf] %v4318_v2  ;;  %v3090_v40 = vmul.f32 0.0078125, %v3074_v52  ;;  %v3093_v16 = vmul.f32 0.0078125, %v3077_v59  ;;  %v3060_v36 = vmul.f32 %v3031_v8, %v6165_v34  ;;  %v3063_v22 = vmul.f32 %v3037_v55, %v6239_v56 }
 0x3a5   : > { %3562 = vrot.lane.b32.xlu0 %v6580_v13, %s4983_s17  ;;  %3568 = vrot.lane.b32.xlu1 %v6595_v11, %s4983_s17 }
 0x3a6   : > { %v4317_v41 = vpack.c.bf16 %v3090_v40, %v3090_v40  ;;  %v4320_v21 = vpack.c.bf16 %v3093_v16, %v3093_v16  ;;  %v3076_v34 = vadd.f32 %v3060_v36, %v3012_v28  ;;  %v3079_v48 = vadd.f32 %v3063_v22, %v3015_v19  ;;  %v7291_v36 = vld [vmem:[#allocation48_spill] sm:$0xff] }
 0x3a7   : > { %v3035_v2 = vpop.permute.xlu0 %3034  ;;  %v3041_v52 = vpop.permute.xlu1 %3040  ;;  %v3016_v40 = vmul.f32 %v6256_v43, %v7290_v60  ;;  %v3019_v28 = vmul.f32 %v6277_v20, %v7291_v36  ;;  %v7293_v36 = vld [vmem:[#allocation50_spill] sm:$0xff] }
 0x3a8   : > { %3170 = vst [vmem:[%s5458_s13 + $0x8] sm:$0xf] %v4317_v41  ;;  %3173 = vst [vmem:[%s5458_s13 + $0x68] sm:$0xf] %v4320_v21  ;;  %v3092_v59 = vmul.f32 0.0078125, %v3076_v34  ;;  %v3095_v8 = vmul.f32 0.0078125, %v3079_v48  ;;  %v3062_v55 = vmul.f32 %v3035_v2, %v6261_v46  ;;  %v3065_v38 = vmul.f32 %v3041_v52, %v6269_v50 }
 0x3a9   : > { %3566 = vrot.lane.b32.xlu0 %v6608_v45, %s4983_s17  ;;  %v7292_v52 = vld [vmem:[#allocation49_spill] sm:$0xff] }
 0x3aa   : > { %v4319_v19 = vpack.c.bf16 %v3092_v59, %v3092_v59  ;;  %v4322_v16 = vpack.c.bf16 %v3095_v8, %v3095_v8  ;;  %v3078_v22 = vadd.f32 %v3062_v55, %v3014_v30  ;;  %v3081_v27 = vadd.f32 %v3065_v38, %v3017_v35 }
 0x3ab   : > { %v3039_v61 = vpop.permute.xlu0 %3038  ;;  %v3045_v41 = vpop.permute.xlu1 %3044  ;;  %v3018_v60 = vmul.f32 %v6286_v42, %v7292_v52  ;;  %v3021_v59 = vmul.f32 %v6307_v33, %v7293_v36  ;;  %v7295_v36 = vld [vmem:[#allocation52_spill] sm:$0xff] }
 0x3ac   : > { %3172 = vst [vmem:[%s5458_s13 + $0x48] sm:$0xf] %v4319_v19  ;;  %3175 = vst [vmem:[%s5458_s13 + $0xa8] sm:$0xf] %v4322_v16  ;;  %v3094_v21 = vmul.f32 0.0078125, %v3078_v22  ;;  %v3097_v34 = vmul.f32 0.0078125, %v3081_v27  ;;  %v3064_v48 = vmul.f32 %v3039_v61, %v6291_v3  ;;  %v3067_v2 = vmul.f32 %v3045_v41, %v6299_v57 }
 0x3ad   : > { %v7294_v41 = vld [vmem:[#allocation51_spill] sm:$0xff] }
 0x3ae   : > { %v4321_v30 = vpack.c.bf16 %v3094_v21, %v3094_v21  ;;  %v4324_v35 = vpack.c.bf16 %v3097_v34, %v3097_v34  ;;  %v3080_v8 = vadd.f32 %v3064_v48, %v3016_v40  ;;  %v3083_v55 = vadd.f32 %v3067_v2, %v3019_v28 }
 0x3af   : > { %v3043_v38 = vpop.permute.xlu0 %3042  ;;  %v3049_v19 = vpop.permute.xlu1 %3048  ;;  %v3020_v52 = vmul.f32 %v7270_v6, %v7294_v41  ;;  %v3023_v21 = vmul.f32 %v6337_v5, %v7295_v36  ;;  %v7297_v36 = vld [vmem:[#allocation54_spill] sm:$0xff] }
 0x3b0   : > { %3174 = vst [vmem:[%s5458_s13 + $0x88] sm:$0xf] %v4321_v30  ;;  %3177 = vst [vmem:[%s5458_s13 + $0xe8] sm:$0xf] %v4324_v35  ;;  %v3096_v16 = vmul.f32 0.0078125, %v3080_v8  ;;  %v3099_v22 = vmul.f32 0.0078125, %v3083_v55  ;;  %v3066_v27 = vmul.f32 %v3043_v38, %v6321_v10  ;;  %v3069_v61 = vmul.f32 %v3049_v19, %v6329_v47 }
 0x3b1   : > { %v7296_v19 = vld [vmem:[#allocation53_spill] sm:$0xff] }
 0x3b2   : > { %v4323_v40 = vpack.c.bf16 %v3096_v16, %v3096_v16  ;;  %v4326_v28 = vpack.c.bf16 %v3099_v22, %v3099_v22  ;;  %v3082_v34 = vadd.f32 %v3066_v27, %v3018_v60  ;;  %v3085_v48 = vadd.f32 %v3069_v61, %v3021_v59 }
 0x3b3   : > { %v3047_v2 = vpop.permute.xlu0 %3046  ;;  %v3053_v30 = vpop.permute.xlu1 %3052  ;;  %v3022_v41 = vmul.f32 %v7277_v18, %v7296_v19  ;;  %v3025_v16 = vmul.f32 %v6367_v12, %v7297_v36  ;;  %v7299_v36 = vld [vmem:[#allocation56_spill] sm:$0xff] }
 0x3b4   : > { %3176 = vst [vmem:[%s5458_s13 + $0xc8] sm:$0xf] %v4323_v40  ;;  %3179 = vst [vmem:[%s5458_s13 + $0x128] sm:$0xf] %v4326_v28  ;;  %v3098_v35 = vmul.f32 0.0078125, %v3082_v34  ;;  %v3101_v8 = vmul.f32 0.0078125, %v3085_v48  ;;  %v3068_v55 = vmul.f32 %v3047_v2, %v7274_v37  ;;  %v3071_v38 = vmul.f32 %v3053_v30, %v7275_v53 }
 0x3b5   : > { %v7298_v30 = vld [vmem:[#allocation55_spill] sm:$0xff] }
 0x3b6   : > { %v4325_v60 = vpack.c.bf16 %v3098_v35, %v3098_v35  ;;  %v4328_v59 = vpack.c.bf16 %v3101_v8, %v3101_v8  ;;  %v3084_v22 = vadd.f32 %v3068_v55, %v3020_v52  ;;  %v3087_v27 = vadd.f32 %v3071_v38, %v3023_v21 }
 0x3b7   : > { %v3051_v61 = vpop.permute.xlu0 %3050  ;;  %v3057_v40 = vpop.permute.xlu1 %3056  ;;  %v3024_v19 = vmul.f32 %v6376_v26, %v7298_v30  ;;  %v3187_v35 = vmul.f32 %v6218_v14, %v7299_v36  ;;  %v7301_v14 = vld [vmem:[#allocation58_spill] sm:$0xff] }
 0x3b8   : > { %3178 = vst [vmem:[%s5458_s13 + $0x108] sm:$0xf] %v4325_v60  ;;  %3181 = vst [vmem:[%s5458_s13 + $0x168] sm:$0xf] %v4328_v59  ;;  %v3100_v28 = vmul.f32 0.0078125, %v3084_v22  ;;  %v3103_v34 = vmul.f32 0.0078125, %v3087_v27  ;;  %v3070_v48 = vmul.f32 %v3051_v61, %v6381_v15  ;;  %v3073_v2 = vmul.f32 %v3057_v40, %v6389_v17 }
 0x3b9   : > { %v7300_v40 = vld [vmem:[#allocation57_spill] sm:$0xff] }
 0x3ba   : > { %v4327_v52 = vpack.c.bf16 %v3100_v28, %v3100_v28  ;;  %v4330_v21 = vpack.c.bf16 %v3103_v34, %v3103_v34  ;;  %v3086_v8 = vadd.f32 %v3070_v48, %v3022_v41  ;;  %v3089_v55 = vadd.f32 %v3073_v2, %v3025_v16 }
 0x3bb   : > { %v3055_v38 = vpop.permute.xlu0 %3054  ;;  %v3205_v60 = vpop.permute.xlu1 %3204  ;;  %v3186_v30 = vmul.f32 %v6191_v54, %v7300_v40  ;;  %v3189_v28 = vmul.f32 %v6194_v62, %v7301_v14  ;;  %v6673_v40 = vld [vmem:[%s5456_s19 + $0x10] sm:$0xff] }
 0x3bc   : > { %3180 = vst [vmem:[%s5458_s13 + $0x148] sm:$0xf] %v4327_v52  ;;  %3183 = vst [vmem:[%s5458_s13 + $0x1a8] sm:$0xf] %v4330_v21  ;;  %v3102_v59 = vmul.f32 0.0078125, %v3086_v8  ;;  %v3105_v22 = vmul.f32 0.0078125, %v3089_v55  ;;  %v3072_v27 = vmul.f32 %v3055_v38, %v6405_v1  ;;  %v3235_v61 = vmul.f32 %v3205_v60, %v6231_v4 }
 0x3bd   : > { %v7302_v8 = vld [vmem:[#allocation59_spill] sm:$0xff]  ;;  %v7303_v55 = vld [vmem:[#allocation60_spill] sm:$0xff]  ;;  %v7304_v14 = vld [vmem:[#allocation61_spill] sm:$0xff] }
 0x3be   : > { %v4329_v41 = vpack.c.bf16 %v3102_v59, %v3102_v59  ;;  %v4332_v16 = vpack.c.bf16 %v3105_v22, %v3105_v22  ;;  %v3088_v34 = vadd.f32 %v3072_v27, %v3024_v19  ;;  %v3251_v48 = vadd.f32 %v3235_v61, %v3187_v35 }
 0x3bf   : > { %v3203_v2 = vpop.permute.xlu0 %3202  ;;  %v3209_v36 = vpop.permute.xlu1 %3208  ;;  %v3188_v62 = vmul.f32 %v6152_v24, %v7302_v8  ;;  %v3191_v19 = vmul.f32 %v6221_v31, %v7303_v55  ;;  %v3190_v31 = vmul.f32 %v6226_v63, %v7304_v14  ;;  %v7306_v63 = vld [vmem:[#allocation63_spill] sm:$0xff] }
 0x3c0   : > { %3182 = vst [vmem:[%s5458_s13 + $0x188] sm:$0xf] %v4329_v41  ;;  %3185 = vst [vmem:[%s5458_s13 + $0x1e8] sm:$0xf] %v4332_v16  ;;  %v3104_v52 = vmul.f32 0.0078125, %v3088_v34  ;;  %v3267_v21 = vmul.f32 0.0078125, %v3251_v48  ;;  %v3234_v4 = vmul.f32 %v3203_v2, %v6200_v51  ;;  %v3237_v54 = vmul.f32 %v3209_v36, %v6208_v58 }
 0x3c1   : > { %v7305_v41 = vld [vmem:[#allocation62_spill] sm:$0xff] }
 0x3c2   : > { %v4331_v35 = vpack.c.bf16 %v3104_v52, %v3104_v52  ;;  %v4334_v38 = vpack.c.bf16 %v3267_v21, %v3267_v21  ;;  %v3250_v60 = vadd.f32 %v3234_v4, %v3186_v30  ;;  %v3253_v59 = vadd.f32 %v3237_v54, %v3189_v28 }
 0x3c3   : > { %v3207_v22 = vpop.permute.xlu0 %3206  ;;  %v3213_v27 = vpop.permute.xlu1 %3212  ;;  %v3193_v30 = vmul.f32 %v6249_v39, %v7305_v41  ;;  %v3192_v54 = vmul.f32 %v6256_v43, %v7306_v63  ;;  %v7307_v39 = vld [vmem:[#allocation64_spill] sm:$0xff]  ;;  %v7308_v43 = vld [vmem:[#allocation65_spill] sm:$0xff] }
 0x3c4   : > { %3184 = vst [vmem:[%s5458_s13 + $0x1c8] sm:$0xf] %v4331_v35  ;;  %3347 = vst [vmem:[%s5458_s13 + $0x2c] sm:$0xf] %v4334_v38  ;;  %v3266_v61 = vmul.f32 0.0078125, %v3250_v60  ;;  %v3269_v51 = vmul.f32 0.0078125, %v3253_v59  ;;  %v3236_v58 = vmul.f32 %v6673_v40, %v3207_v22  ;;  %v3239_v24 = vmul.f32 %v3213_v27, %v6239_v56 }
 0x3c5   : > { %v3195_v8 = vmul.f32 %v6277_v20, %v7307_v39  ;;  %v3194_v27 = vmul.f32 %v6286_v42, %v7308_v43  ;;  %v7309_v20 = vld [vmem:[#allocation66_spill] sm:$0xff]  ;;  %v7310_v42 = vld [vmem:[#allocation67_spill] sm:$0xff] }
 0x3c6   : > { %v4333_v28 = vpack.c.bf16 %v3266_v61, %v3266_v61  ;;  %v4336_v16 = vpack.c.bf16 %v3269_v51, %v3269_v51  ;;  %v3252_v34 = vadd.f32 %v3236_v58, %v3188_v62  ;;  %v3255_v48 = vadd.f32 %v3239_v24, %v3191_v19 }
 0x3c7   : > { %v3211_v2 = vpop.permute.xlu0 %3210  ;;  %v3217_v36 = vpop.permute.xlu1 %3216  ;;  %v3197_v61 = vmul.f32 %v6307_v33, %v7309_v20  ;;  %v7311_v33 = vld [vmem:[#allocation68_spill] sm:$0xff] }
 0x3c8   : > { %3346 = vst [vmem:[%s5458_s13 + $0xc] sm:$0xf] %v4333_v28  ;;  %3349 = vst [vmem:[%s5458_s13 + $0x6c] sm:$0xf] %v4336_v16  ;;  %v3268_v52 = vmul.f32 0.0078125, %v3252_v34  ;;  %v3271_v21 = vmul.f32 0.0078125, %v3255_v48  ;;  %v3238_v56 = vmul.f32 %v3211_v2, %v6261_v46  ;;  %v3241_v4 = vmul.f32 %v3217_v36, %v6269_v50 }
 0x3c9   : > { %v3196_v16 = vmul.f32 %v7270_v6, %v7310_v42  ;;  %v3199_v34 = vmul.f32 %v6337_v5, %v7311_v33  ;;  %v7312_v6 = vld [vmem:[#allocation69_spill] sm:$0xff] }
 0x3ca   : > { %v4335_v62 = vpack.c.bf16 %v3268_v52, %v3268_v52  ;;  %v4338_v55 = vpack.c.bf16 %v3271_v21, %v3271_v21  ;;  %v3254_v19 = vadd.f32 %v3238_v56, %v3190_v31  ;;  %v3257_v35 = vadd.f32 %v3241_v4, %v3193_v30 }
 0x3cb   : > { %v3215_v38 = vpop.permute.xlu0 %3214  ;;  %v3221_v60 = vpop.permute.xlu1 %3220  ;;  %v3198_v5 = vmul.f32 %v7277_v18, %v7312_v6 }
 0x3cc   : > { %3348 = vst [vmem:[%s5458_s13 + $0x4c] sm:$0xf] %v4335_v62  ;;  %3351 = vst [vmem:[%s5458_s13 + $0xac] sm:$0xf] %v4338_v55  ;;  %v3270_v59 = vmul.f32 0.0078125, %v3254_v19  ;;  %v3273_v46 = vmul.f32 0.0078125, %v3257_v35  ;;  %v3240_v50 = vmul.f32 %v3215_v38, %v6291_v3  ;;  %v3243_v22 = vmul.f32 %v3221_v60, %v6299_v57 }
 0x3ce   : > { %v4337_v51 = vpack.c.bf16 %v3270_v59, %v3270_v59  ;;  %v4340_v58 = vpack.c.bf16 %v3273_v46, %v3273_v46  ;;  %v3256_v24 = vadd.f32 %v3240_v50, %v3192_v54  ;;  %v3259_v14 = vadd.f32 %v3243_v22, %v3195_v8  ;;  %v7313_v54 = vld [vmem:[#allocation70_spill] sm:$0xff]  ;;  %v7314_v59 = vld [vmem:[#allocation71_spill] sm:$0xff]  ;;  %v6720_v46 = vld [vmem:[%s5447_s27 + $0x8] sm:$0xff] }
 0x3cf   : > { %v3219_v31 = vpop.permute.xlu0 %3218  ;;  %v3225_v41 = vpop.permute.xlu1 %3224  ;;  %v3201_v39 = vmul.f32 %v6367_v12, %v7313_v54  ;;  %v3200_v12 = vmul.f32 %v6376_v26, %v7314_v59  ;;  %v7315_v50 = vld [vmem:[#allocation72_spill] sm:$0xff] }
 0x3d0   : > { %3350 = vst [vmem:[%s5458_s13 + $0x8c] sm:$0xf] %v4337_v51  ;;  %3353 = vst [vmem:[%s5458_s13 + $0xec] sm:$0xf] %v4340_v58  ;;  %v3272_v30 = vmul.f32 0.0078125, %v3256_v24  ;;  %v3275_v3 = vmul.f32 0.0078125, %v3259_v14  ;;  %v3242_v57 = vmul.f32 %v3219_v31, %v6321_v10  ;;  %v3245_v28 = vmul.f32 %v3225_v41, %v6329_v47 }
 0x3d1   : > { %v3363_v22 = vmul.f32 %v6720_v46, %v7315_v50  ;;  %v6728_v24 = vld [vmem:[%s5456_s19 + $0x8] sm:$0xff]  ;;  %v6732_v31 = vld [vmem:[%s5447_s27] sm:$0xff]  ;;  %v7316_v41 = vld [vmem:[#allocation73_spill] sm:$0xff] }
 0x3d2   : > { %v4339_v48 = vpack.c.bf16 %v3272_v30, %v3272_v30  ;;  %v4342_v2 = vpack.c.bf16 %v3275_v3, %v3275_v3  ;;  %v3258_v36 = vadd.f32 %v3242_v57, %v3194_v27  ;;  %v3261_v52 = vadd.f32 %v3245_v28, %v3197_v61  ;;  %v6737_v3 = vld [vmem:[%s5447_s27 + $0x18] sm:$0xff]  ;;  %v7320_v50 = vld [vmem:[#allocation80_spill] sm:$0xff] }
 0x3d3   : > { %v3223_v21 = vpop.permute.xlu0 %3222  ;;  %v3229_v56 = vpop.permute.xlu1 %3228  ;;  %v3362_v30 = vmul.f32 %v6732_v31, %v7316_v41  ;;  %v7317_v57 = vld [vmem:[#allocation74_spill] sm:$0xff] }
 0x3d4   : > { %3352 = vst [vmem:[%s5458_s13 + $0xcc] sm:$0xf] %v4339_v48  ;;  %3355 = vst [vmem:[%s5458_s13 + $0x12c] sm:$0xf] %v4342_v2  ;;  %v3274_v4 = vmul.f32 0.0078125, %v3258_v36  ;;  %v3277_v10 = vmul.f32 0.0078125, %v3261_v52  ;;  %v3244_v47 = vmul.f32 %v3223_v21, %v7274_v37  ;;  %v3247_v63 = vmul.f32 %v3229_v56, %v7275_v53 }
 0x3d5   : > { %v3365_v28 = vmul.f32 %v6737_v3, %v7317_v57  ;;  %v6744_v52 = vld [vmem:[%s5456_s19] sm:$0xff]  ;;  %v6748_v56 = vld [vmem:[%s5456_s19 + $0x18] sm:$0xff] }
 0x3d6   : > { %v4341_v8 = vpack.c.bf16 %v3274_v4, %v3274_v4  ;;  %v4344_v62 = vpack.c.bf16 %v3277_v10, %v3277_v10  ;;  %v3260_v55 = vadd.f32 %v3244_v47, %v3196_v16  ;;  %v3263_v19 = vadd.f32 %v3247_v63, %v3199_v34  ;;  %v6752_v10 = vld [vmem:[%s5447_s27 + $0x10] sm:$0xff]  ;;  %v7318_v47 = vld [vmem:[#allocation76_spill] sm:$0xff] }
 0x3d7   : > { %v3227_v35 = vpop.permute.xlu0 %3226  ;;  %v3233_v38 = vpop.permute.xlu1 %3232  ;;  %v3364_v63 = vmul.f32 %v6752_v10, %v7318_v47  ;;  %v6805_v47 = vld [vmem:[%s5456_s19 + $0x48] sm:$0xff] }
 0x3d8   : > { %3354 = vst [vmem:[%s5458_s13 + $0x10c] sm:$0xf] %v4341_v8  ;;  %3357 = vst [vmem:[%s5458_s13 + $0x16c] sm:$0xf] %v4344_v62  ;;  %v3276_v37 = vmul.f32 0.0078125, %v3260_v55  ;;  %v3279_v60 = vmul.f32 0.0078125, %v3263_v19  ;;  %v3246_v53 = vmul.f32 %v3227_v35, %v6381_v15  ;;  %v3249_v18 = vmul.f32 %v3233_v38, %v6389_v17 }
 0x3d9   : > { %v7319_v8 = vld [vmem:[#allocation77_spill] sm:$0xff] }
 0x3da   : > { %v4343_v43 = vpack.c.bf16 %v3276_v37, %v3276_v37  ;;  %v4346_v27 = vpack.c.bf16 %v3279_v60, %v3279_v60  ;;  %v3262_v20 = vadd.f32 %v3246_v53, %v3198_v5  ;;  %v3265_v61 = vadd.f32 %v3249_v18, %v3201_v39  ;;  %v6758_v39 = vld [vmem:[%s5447_s27 + $0x28] sm:$0xff] }
 0x3db   : > { %v3231_v51 = vpop.permute.xlu0 %3230  ;;  %v3381_v58 = vpop.permute.xlu1 %3380  ;;  %v3367_v62 = vmul.f32 %v6758_v39, %v7319_v8  ;;  %v6765_v60 = vld [vmem:[%s5456_s19 + $0x28] sm:$0xff]  ;;  %v6816_v8 = vld [vmem:[%s5447_s27 + $0x58] sm:$0xff] }
 0x3dc   : > { %3356 = vst [vmem:[%s5458_s13 + $0x14c] sm:$0xf] %v4343_v43  ;;  %3359 = vst [vmem:[%s5458_s13 + $0x1ac] sm:$0xf] %v4346_v27  ;;  %v3278_v15 = vmul.f32 0.0078125, %v3262_v20  ;;  %v3281_v17 = vmul.f32 0.0078125, %v3265_v61  ;;  %v3248_v26 = vmul.f32 %v3231_v51, %v6405_v1  ;;  %v3411_v14 = vmul.f32 %v6728_v24, %v3381_v58 }
 0x3dd   : > { %v6776_v43 = vld [vmem:[%s5447_s27 + $0x38] sm:$0xff] }
 0x3de   : > { %v4345_v42 = vpack.c.bf16 %v3278_v15, %v3278_v15  ;;  %v4348_v16 = vpack.c.bf16 %v3281_v17, %v3281_v17  ;;  %v3264_v1 = vadd.f32 %v3248_v26, %v3200_v12  ;;  %v3427_v33 = vadd.f32 %v3411_v14, %v3363_v22  ;;  %v6771_v12 = vld [vmem:[%s5447_s27 + $0x20] sm:$0xff]  ;;  %v7321_v27 = vld [vmem:[#allocation82_spill] sm:$0xff] }
 0x3df   : > { %v3379_v34 = vpop.permute.xlu0 %3378  ;;  %v3385_v48 = vpop.permute.xlu1 %3384  ;;  %v3366_v22 = vmul.f32 %v6771_v12, %v7320_v50  ;;  %v3369_v20 = vmul.f32 %v6776_v43, %v7321_v27  ;;  %v6781_v17 = vld [vmem:[%s5456_s19 + $0x20] sm:$0xff]  ;;  %v6785_v14 = vld [vmem:[%s5456_s19 + $0x38] sm:$0xff]  ;;  %v6831_v50 = vld [vmem:[%s5447_s27 + $0x50] sm:$0xff] }
 0x3e0   : > { %3358 = vst [vmem:[%s5458_s13 + $0x18c] sm:$0xf] %v4345_v42  ;;  %3361 = vst [vmem:[%s5458_s13 + $0x1ec] sm:$0xf] %v4348_v16  ;;  %v3280_v2 = vmul.f32 0.0078125, %v3264_v1  ;;  %v4350_v36 = vpack.c.bf16 %v3427_v33, %v3427_v33  ;;  %v3410_v21 = vmul.f32 %v6744_v52, %v3379_v34  ;;  %v3413_v4 = vmul.f32 %v6748_v56, %v3385_v48  ;;  %v6796_v16 = vld [vmem:[%s5447_s27 + $0x48] sm:$0xff] }
 0x3e1   : > { %v7322_v1 = vld [vmem:[#allocation83_spill] sm:$0xff]  ;;  %v6836_v27 = vld [vmem:[%s5447_s27 + $0x68] sm:$0xff] }
 0x3e2   : > { %v4347_v6 = vpack.c.bf16 %v3280_v2, %v3280_v2  ;;  %3507 = vst [vmem:[%s5458_s13 + $0x30] sm:$0xf] %v4350_v36  ;;  %v3426_v5 = vadd.f32 %v3410_v21, %v3362_v30  ;;  %v3429_v54 = vadd.f32 %v3413_v4, %v3365_v28  ;;  %v6791_v28 = vld [vmem:[%s5447_s27 + $0x30] sm:$0xff]  ;;  %v3371_v33 = vmul.f32 %v6796_v16, %v7322_v1 }
 0x3e3   : > { %v3383_v55 = vpop.permute.xlu0 %3382  ;;  %v3389_v19 = vpop.permute.xlu1 %3388  ;;  %v3368_v42 = vmul.f32 %v6791_v28, %v6386_v29  ;;  %v6801_v21 = vld [vmem:[%s5456_s19 + $0x30] sm:$0xff] }
 0x3e4   : > { %3360 = vst [vmem:[%s5458_s13 + $0x1cc] sm:$0xf] %v4347_v6  ;;  %v4349_v35 = vpack.c.bf16 %v3426_v5, %v3426_v5  ;;  %v4352_v38 = vpack.c.bf16 %v3429_v54, %v3429_v54  ;;  %v3412_v37 = vmul.f32 %v6673_v40, %v3383_v55  ;;  %v3415_v53 = vmul.f32 %v6765_v60, %v3389_v19  ;;  %v6811_v5 = vld [vmem:[%s5447_s27 + $0x40] sm:$0xff] }
 0x3e5   : > { %v3370_v54 = vmul.f32 %v6811_v5, %v6410_v9 }
 0x3e6   : > { %3506 = vst [vmem:[%s5458_s13 + $0x10] sm:$0xf] %v4349_v35  ;;  %3509 = vst [vmem:[%s5458_s13 + $0x70] sm:$0xf] %v4352_v38  ;;  %v3428_v18 = vadd.f32 %v3412_v37, %v3364_v63  ;;  %v3431_v59 = vadd.f32 %v3415_v53, %v3367_v62  ;;  %v3373_v62 = vmul.f32 %v6816_v8, %v6415_v25  ;;  %v6821_v37 = vld [vmem:[%s5456_s19 + $0x40] sm:$0xff] }
 0x3e7   : > { %v3387_v61 = vpop.permute.xlu0 %3386  ;;  %v3393_v51 = vpop.permute.xlu1 %3392 }
 0x3e8   : > { %v4351_v58 = vpack.c.bf16 %v3428_v18, %v3428_v18  ;;  %v4354_v15 = vpack.c.bf16 %v3431_v59, %v3431_v59  ;;  %v3414_v26 = vmul.f32 %v6781_v17, %v3387_v61  ;;  %v3417_v41 = vmul.f32 %v6785_v14, %v3393_v51  ;;  %v6825_v18 = vld [vmem:[%s5456_s19 + $0x58] sm:$0xff] }
 0x3ea   : > { %3508 = vst [vmem:[%s5458_s13 + $0x50] sm:$0xf] %v4351_v58  ;;  %3511 = vst [vmem:[%s5458_s13 + $0xb0] sm:$0xf] %v4354_v15  ;;  %v3430_v30 = vadd.f32 %v3414_v26, %v3366_v22  ;;  %v3433_v57 = vadd.f32 %v3417_v41, %v3369_v20  ;;  %v3372_v22 = vmul.f32 %v6831_v50, %v6428_v0  ;;  %v7323_v20 = vld [vmem:[#allocation84_spill] sm:$0xff]  ;;  %v6841_v41 = vld [vmem:[%s5456_s19 + $0x50] sm:$0xff] }
 0x3eb   : > { %v3391_v34 = vpop.permute.xlu0 %3390  ;;  %v3397_v48 = vpop.permute.xlu1 %3396  ;;  %v3375_v61 = vmul.f32 %v6836_v27, %v7323_v20  ;;  %v6878_v20 = vld [vmem:[%s5456_s19 + $0x70] sm:$0xff] }
 0x3ec   : > { %v4353_v2 = vpack.c.bf16 %v3430_v30, %v3430_v30  ;;  %v4356_v36 = vpack.c.bf16 %v3433_v57, %v3433_v57  ;;  %v3416_v4 = vmul.f32 %v6801_v21, %v3391_v34  ;;  %v3419_v29 = vmul.f32 %v6805_v47, %v3397_v48  ;;  %v6845_v57 = vld [vmem:[%s5456_s19 + $0x68] sm:$0xff]  ;;  %v6856_v48 = vld [vmem:[%s5447_s27 + $0x78] sm:$0xff] }
 0x3ee   : > { %3510 = vst [vmem:[%s5458_s13 + $0x90] sm:$0xf] %v4353_v2  ;;  %3513 = vst [vmem:[%s5458_s13 + $0xf0] sm:$0xf] %v4356_v36  ;;  %v3432_v63 = vadd.f32 %v3416_v4, %v3368_v42  ;;  %v3435_v6 = vadd.f32 %v3419_v29, %v3371_v33  ;;  %v6851_v33 = vld [vmem:[%s5447_s27 + $0x60] sm:$0xff]  ;;  %v3377_v2 = vmul.f32 %v6856_v48, %v6451_v7  ;;  %v6871_v7 = vld [vmem:[%s5447_s27 + $0x70] sm:$0xff] }
 0x3ef   : > { %v3395_v55 = vpop.permute.xlu0 %3394  ;;  %v3401_v19 = vpop.permute.xlu1 %3400  ;;  %v3374_v34 = vmul.f32 %v6851_v33, %v6446_v32 }
 0x3f0   : > { %v4355_v35 = vpack.c.bf16 %v3432_v63, %v3432_v63  ;;  %v4358_v38 = vpack.c.bf16 %v3435_v6, %v3435_v6  ;;  %v3418_v53 = vmul.f32 %v6821_v37, %v3395_v55  ;;  %v3421_v9 = vmul.f32 %v6825_v18, %v3401_v19  ;;  %v6861_v6 = vld [vmem:[%s5456_s19 + $0x60] sm:$0xff] }
 0x3f2   : > { %3512 = vst [vmem:[%s5458_s13 + $0xd0] sm:$0xf] %v4355_v35  ;;  %3515 = vst [vmem:[%s5458_s13 + $0x130] sm:$0xf] %v4358_v38  ;;  %v3434_v59 = vadd.f32 %v3418_v53, %v3370_v54  ;;  %v3437_v25 = vadd.f32 %v3421_v9, %v3373_v62  ;;  %v6865_v62 = vld [vmem:[%s5456_s19 + $0x78] sm:$0xff]  ;;  %v3376_v35 = vmul.f32 %v6871_v7, %v6454_v44  ;;  %v7324_v38 = vld [vmem:[#allocation85_spill] sm:$0xff] }
 0x3f3   : > { %v3399_v51 = vpop.permute.xlu0 %3398  ;;  %v3405_v58 = vpop.permute.xlu1 %3404  ;;  %v3523_v53 = vmul.f32 %v6720_v46, %v7324_v38  ;;  %v7325_v44 = vld [vmem:[#allocation86_spill] sm:$0xff]  ;;  %v7326_v46 = vld [vmem:[#allocation87_spill] sm:$0xff] }
 0x3f4   : > { %v4357_v15 = vpack.c.bf16 %v3434_v59, %v3434_v59  ;;  %v4360_v26 = vpack.c.bf16 %v3437_v25, %v3437_v25  ;;  %v3420_v30 = vmul.f32 %v6841_v41, %v3399_v51  ;;  %v3423_v0 = vmul.f32 %v6845_v57, %v3405_v58 }
 0x3f6   : > { %3514 = vst [vmem:[%s5458_s13 + $0x110] sm:$0xf] %v4357_v15  ;;  %3517 = vst [vmem:[%s5458_s13 + $0x170] sm:$0xf] %v4360_v26  ;;  %v3436_v42 = vadd.f32 %v3420_v30, %v3372_v22  ;;  %v3439_v1 = vadd.f32 %v3423_v0, %v3375_v61  ;;  %v3522_v26 = vmul.f32 %v6732_v31, %v7325_v44  ;;  %v7332_v44 = vld [vmem:[#allocation36_spill] sm:$0xff] }
 0x3f7   : > { %v3403_v36 = vpop.permute.xlu0 %3402  ;;  %v3409_v4 = vpop.permute.xlu1 %3408  ;;  %v3525_v30 = vmul.f32 %v6737_v3, %v7326_v46 }
 0x3f8   : > { %v4359_v29 = vpack.c.bf16 %v3436_v42, %v3436_v42  ;;  %v4362_v63 = vpack.c.bf16 %v3439_v1, %v3439_v1  ;;  %v3422_v54 = vmul.f32 %v6861_v6, %v3403_v36  ;;  %v3425_v55 = vmul.f32 %v6865_v62, %v3409_v4 }
 0x3fa   : > { %3516 = vst [vmem:[%s5458_s13 + $0x150] sm:$0xf] %v4359_v29  ;;  %3519 = vst [vmem:[%s5458_s13 + $0x1b0] sm:$0xf] %v4362_v63  ;;  %v3438_v32 = vadd.f32 %v3422_v54, %v3374_v34  ;;  %v3441_v19 = vadd.f32 %v3425_v55, %v3377_v2  ;;  %v7327_v29 = vld [vmem:[#allocation88_spill] sm:$0xff]  ;;  %v7328_v63 = vld [vmem:[#allocation89_spill] sm:$0xff] }
 0x3fb   : > { %v3407_v9 = vpop.permute.xlu0 %3406  ;;  %v3541_v59 = vpop.permute.xlu1 %3540  ;;  %v3524_v31 = vmul.f32 %v6752_v10, %v7327_v29  ;;  %v3527_v3 = vmul.f32 %v6758_v39, %v7328_v63 }
 0x3fc   : > { %v4361_v25 = vpack.c.bf16 %v3438_v32, %v3438_v32  ;;  %v4364_v22 = vpack.c.bf16 %v3441_v19, %v3441_v19  ;;  %v3424_v61 = vmul.f32 %v6878_v20, %v3407_v9  ;;  %v3571_v51 = vmul.f32 %v6728_v24, %v3541_v59  ;;  %v7330_v9 = vld [vmem:[#allocation35_spill] sm:$0xff] }
 0x3fd   : > { %v3529_v39 = vmul.f32 %v6776_v43, %v7330_v9  ;;  %v3531_v43 = vmul.f32 %v6796_v16, %v7332_v44 }
 0x3fe   : > { %3518 = vst [vmem:[%s5458_s13 + $0x190] sm:$0xf] %v4361_v25  ;;  %3521 = vst [vmem:[%s5458_s13 + $0x1f0] sm:$0xf] %v4364_v22  ;;  %v3440_v58 = vadd.f32 %v3424_v61, %v3376_v35  ;;  %v3587_v15 = vadd.f32 %v3571_v51, %v3523_v53  ;;  %v7329_v53 = vld [vmem:[#allocation90_spill] sm:$0xff] }
 0x3ff   : > { %v3539_v0 = vpop.permute.xlu0 %3538  ;;  %v3545_v42 = vpop.permute.xlu1 %3544  ;;  %v3526_v10 = vmul.f32 %v6771_v12, %v7329_v53 }
 0x400   : > { %v4363_v1 = vpack.c.bf16 %v3440_v58, %v3440_v58  ;;  %v4366_v34 = vpack.c.bf16 %v3587_v15, %v3587_v15  ;;  %v3570_v2 = vmul.f32 %v6744_v52, %v3539_v0  ;;  %v3573_v24 = vmul.f32 %v6748_v56, %v3545_v42  ;;  %v7331_v15 = vld [vmem:[#allocation75_spill] sm:$0xff] }
 0x401   : > { %v3528_v12 = vmul.f32 %v6791_v28, %v7331_v15  ;;  %v3530_v28 = vmul.f32 %v6811_v5, %v6544_v23  ;;  %v3532_v23 = vmul.f32 %v6831_v50, %v6562_v49  ;;  %v7334_v5 = vld [vmem:[#allocation81_spill] sm:$0xff]  ;;  %v3534_v49 = vmul.f32 %v6851_v33, %v6580_v13 }
 0x402   : > { %3520 = vst [vmem:[%s5458_s13 + $0x1d0] sm:$0xf] %v4363_v1  ;;  %3667 = vst [vmem:[%s5458_s13 + $0x34] sm:$0xf] %v4366_v34  ;;  %v3586_v36 = vadd.f32 %v3570_v2, %v3522_v26  ;;  %v3589_v4 = vadd.f32 %v3573_v24, %v3525_v30  ;;  %v7333_v34 = vld [vmem:[#allocation79_spill] sm:$0xff]  ;;  %v3537_v50 = vmul.f32 %v6856_v48, %v6595_v11 }
 0x403   : > { %v3543_v54 = vpop.permute.xlu0 %3542  ;;  %v3549_v55 = vpop.permute.xlu1 %3548  ;;  %v3533_v16 = vmul.f32 %v6816_v8, %v7333_v34  ;;  %v3535_v8 = vmul.f32 %v6836_v27, %v7334_v5  ;;  %v3536_v13 = vmul.f32 %v6871_v7, %v6608_v45 }
 0x404   : > { %v4365_v32 = vpack.c.bf16 %v3586_v36, %v3586_v36  ;;  %v4368_v19 = vpack.c.bf16 %v3589_v4, %v3589_v4  ;;  %v3572_v52 = vmul.f32 %v6673_v40, %v3543_v54  ;;  %v3575_v56 = vmul.f32 %v6765_v60, %v3549_v55 }
 0x406   : > { %3666 = vst [vmem:[%s5458_s13 + $0x14] sm:$0xf] %v4365_v32  ;;  %3669 = vst [vmem:[%s5458_s13 + $0x74] sm:$0xf] %v4368_v19  ;;  %v3588_v35 = vadd.f32 %v3572_v52, %v3524_v31  ;;  %v3591_v38 = vadd.f32 %v3575_v56, %v3527_v3 }
 0x407   : > { %v3547_v59 = vpop.permute.xlu0 %3546  ;;  %v3553_v25 = vpop.permute.xlu1 %3552 }
 0x408   : > { %v4367_v22 = vpack.c.bf16 %v3588_v35, %v3588_v35  ;;  %v4370_v61 = vpack.c.bf16 %v3591_v38, %v3591_v38  ;;  %v3574_v40 = vmul.f32 %v6781_v17, %v3547_v59  ;;  %v3577_v60 = vmul.f32 %v6785_v14, %v3553_v25 }
 0x40a   : > { %3668 = vst [vmem:[%s5458_s13 + $0x54] sm:$0xf] %v4367_v22  ;;  %3671 = vst [vmem:[%s5458_s13 + $0xb4] sm:$0xf] %v4370_v61  ;;  %v3590_v51 = vadd.f32 %v3574_v40, %v3526_v10  ;;  %v3593_v58 = vadd.f32 %v3577_v60, %v3529_v39 }
 0x40b   : > { %v3551_v26 = vpop.permute.xlu0 %3550  ;;  %v3557_v46 = vpop.permute.xlu1 %3556 }
 0x40c   : > { %v4369_v30 = vpack.c.bf16 %v3590_v51, %v3590_v51  ;;  %v4372_v0 = vpack.c.bf16 %v3593_v58, %v3593_v58  ;;  %v3576_v17 = vmul.f32 %v6801_v21, %v3551_v26  ;;  %v3579_v14 = vmul.f32 %v6805_v47, %v3557_v46 }
 0x40e   : > { %3670 = vst [vmem:[%s5458_s13 + $0x94] sm:$0xf] %v4369_v30  ;;  %3673 = vst [vmem:[%s5458_s13 + $0xf4] sm:$0xf] %v4372_v0  ;;  %v3592_v42 = vadd.f32 %v3576_v17, %v3528_v12  ;;  %v3595_v1 = vadd.f32 %v3579_v14, %v3531_v43 }
 0x40f   : > { %v3555_v2 = vpop.permute.xlu0 %3554  ;;  %v3561_v24 = vpop.permute.xlu1 %3560 }
 0x410   : > { %v4371_v36 = vpack.c.bf16 %v3592_v42, %v3592_v42  ;;  %v4374_v4 = vpack.c.bf16 %v3595_v1, %v3595_v1  ;;  %v3578_v21 = vmul.f32 %v6821_v37, %v3555_v2  ;;  %v3581_v47 = vmul.f32 %v6825_v18, %v3561_v24 }
 0x412   : > { %3672 = vst [vmem:[%s5458_s13 + $0xd4] sm:$0xf] %v4371_v36  ;;  %3675 = vst [vmem:[%s5458_s13 + $0x134] sm:$0xf] %v4374_v4  ;;  %v3594_v29 = vadd.f32 %v3578_v21, %v3530_v28  ;;  %v3597_v31 = vadd.f32 %v3581_v47, %v3533_v16 }
 0x413   : > { %v3559_v63 = vpop.permute.xlu0 %3558  ;;  %v3565_v3 = vpop.permute.xlu1 %3564 }
 0x414   : > { %v4373_v54 = vpack.c.bf16 %v3594_v29, %v3594_v29  ;;  %v4376_v55 = vpack.c.bf16 %v3597_v31, %v3597_v31  ;;  %v3580_v37 = vmul.f32 %v6841_v41, %v3559_v63  ;;  %v3583_v18 = vmul.f32 %v6845_v57, %v3565_v3 }
 0x416   : > { %3674 = vst [vmem:[%s5458_s13 + $0x114] sm:$0xf] %v4373_v54  ;;  %3677 = vst [vmem:[%s5458_s13 + $0x174] sm:$0xf] %v4376_v55  ;;  %v3596_v32 = vadd.f32 %v3580_v37, %v3532_v23  ;;  %v3599_v19 = vadd.f32 %v3583_v18, %v3535_v8 }
 0x417   : > { %v3563_v27 = vpop.permute.xlu0 %3562  ;;  %v3569_v52 = vpop.permute.xlu1 %3568 }
 0x418   : > { %v4375_v56 = vpack.c.bf16 %v3596_v32, %v3596_v32  ;;  %v4378_v35 = vpack.c.bf16 %v3599_v19, %v3599_v19  ;;  %v3582_v41 = vmul.f32 %v6861_v6, %v3563_v27  ;;  %v3585_v57 = vmul.f32 %v6865_v62, %v3569_v52 }
 0x41a   : > { %3676 = vst [vmem:[%s5458_s13 + $0x154] sm:$0xf] %v4375_v56  ;;  %3679 = vst [vmem:[%s5458_s13 + $0x1b4] sm:$0xf] %v4378_v35  ;;  %v3598_v38 = vadd.f32 %v3582_v41, %v3534_v49  ;;  %v3601_v53 = vadd.f32 %v3585_v57, %v3537_v50 }
 0x41b   : > { %v3567_v33 = vpop.permute.xlu0 %3566 }
 0x41c   : > { %v4377_v11 = vpack.c.bf16 %v3598_v38, %v3598_v38  ;;  %v4380_v48 = vpack.c.bf16 %v3601_v53, %v3601_v53  ;;  %v3584_v10 = vmul.f32 %v6878_v20, %v3567_v33 }
 0x41e   : > { %3678 = vst [vmem:[%s5458_s13 + $0x194] sm:$0xf] %v4377_v11  ;;  %3681 = vst [vmem:[%s5458_s13 + $0x1f4] sm:$0xf] %v4380_v48  ;;  %v3600_v9 = vadd.f32 %v3584_v10, %v3536_v13 }
 0x420   : > { %v4379_v39 = vpack.c.bf16 %v3600_v9, %v3600_v9 }
 0x422   : > { %3680 = vst [vmem:[%s5458_s13 + $0x1d4] sm:$0xf] %v4379_v39 }
 0x423 PF: > { %s7335_s3 = sld [smem:[#allocation24_spill]]  ;;  %s7337_s11 = sld [smem:[#allocation29_spill]] }
 0x424   : > { %s7338_s18 = sld [smem:[#allocation93_spill]]  ;;  %s3809_s27 = sshll.u32 %s5458_s13, 4  ;;  %s6953_s27 = int_to_ptr.vmem [resolvable:$true] %s3809_s27 }
 0x425   : > { %s6957_s24 = scalar_lea.sflag [#allocation5], %s459_s23  ;;  %s4788_s12 = scalar_lea.vmem %s6953_s27, 8192 }
 0x426   : > { %p4789_p2 = scmp.ne.s32.totalorder %s6953_s27, %s4788_s12  ;;  %s4984_s19 = smov [#allocation12]  }
 0x427   : > { %s4792_s16 = sshll.u32 %s4984_s19, 4  ;;  %s4793_s16 = int_to_ptr.vmem [resolvable:$false] %s4792_s16 }
 0x428   : > { %s4794_s10 = scalar_lea.vmem %s4793_s16, 16384  ;;  %p4795_p6 = scmp.lt.s32.totalorder %s6953_s27, %s4793_s16 }
 0x429   : > { %s4398_s28 = sshll.u32 %s7335_s3, 13  ;;  %p7340_p1 = scmp.ne.s32.totalorder %s7337_s11, 0 }
 0x42a   : > { %s7339_s2 = smov %s7338_s18  ;;  %s6950_s6 = scalar_lea.hbm %s7338_s18, %s4398_s28 }
 0x42b   : > { %p4790_p5 = pnand %p4789_p2, %p7340_p1  ;;  %p4796_p3 = scmp.lt.s32.totalorder %s4794_s10, %s4788_s12 }
 0x42d   : > { %p4791_p12 = pneg %p4790_p5  ;;  %p4797_p0 = por %p4796_p3, %p4795_p6 }
 0x42f   : > { %p4798_p8 = pnand %p4797_p0, %p4791_p12 }
 0x431   : > { %4801 = shalt.err (!%p4798_p8)
}
 0x432   : > { %s4802_s23 = scalar_lea.hbm %s6950_s6, 8192  ;;  %s4806_s3 = scalar_lea.hbm %s7339_s2, 32768 }
 0x433   : > { %p4803_p9 = scmp.ne.s32.totalorder %s6950_s6, %s4802_s23  ;;  %p4807_p11 = scmp.lt.u32.totalorder %s6950_s6, %s7339_s2 }
 0x434   : > { %p4808_p13 = scmp.lt.u32.totalorder %s4806_s3, %s4802_s23  ;;  %p4810_p2 = scmp.lt.u32.totalorder %s4802_s23, %s6950_s6 }
 0x435   : > { %p4804_p7 = pnand %p4803_p9, %p7340_p1 }
 0x436   : > { %p4809_p4 = por %p4808_p13, %p4807_p11 }
 0x437   : > { %p4805_p10 = pneg %p4804_p7 }
 0x438   : > { %p4811_p5 = por %p4810_p2, %p4809_p4 }
 0x43a   : > { %p4812_p12 = pnand %p4811_p5, %p4805_p10 }
 0x43c   : > { %4815 = shalt.err (!%p4812_p12)
}
 0x43d   : > { %s4985_s30 = smov 512   ;;  %s4986_s21 = smov 32  }
 0x43e   : > { %4411 = dma.vmem_to_hbm [thread:$0]  (%p7340_p1), %s6953_s27, 8192, %s6950_s6, %s6957_s24, %s4985_s30, %s4985_s30, %s4986_s21  }
 0x43f PF: > { %s7341_s18 = sld [smem:[#allocation18_spill]]  ;;  %p4437_p6 = scmp.ge.s32.totalorder %s4970_s9, 2 }
 0x440   : > { %s7342_s12 = sld [smem:[#allocation30_spill]] }
 0x445   : > { %s3824_s19 = sand.u32 1, %s7341_s18  }
 0x446   : > { %p7343_p3 = scmp.ne.s32.totalorder %s7342_s12, 0  ;;  %s3825_s16 = scalar_lea.sflag [#allocation5], %s3824_s19 }
 0x448   : > { %p4431_p0 = pnand %p4437_p6, %p7343_p3 }
 0x44a   : > { %4901 = dma.done.wait (!%p4431_p0), %s3825_s16, 8192  }
 0x44b   : > { %4903 = vsyncadd (!%p4431_p0), %s3825_s16, 4294959104  ;;  %s27_s9 = sadd.s32 1, %s4970_s9   ;;  %s7345_s18 = sld [smem:[#allocation19_spill]] }
 0x44c   : > { %p6986_p8 = scmp.ge.s32.totalorder %s27_s9, 10   ;;  %s7346_s21 = sld [smem:[#allocation20_spill]] }
 0x44d   : > { %s7347_s11 = sld [smem:[#allocation21_spill]]  ;;  %s7348_s23 = sld [smem:[#allocation33_spill]] }
 0x44e   : > { %s7349_s27 = sld [smem:[#allocation22_spill]]  ;;  %s7350_s6 = smov %s5294_s22 }
 0x44f   : > { %s7351_s13 = sld [smem:[#allocation34_spill]]  ;;  %s7352_s17 = sld [smem:[#allocation32_spill]] }
 0x450   : > { %s7353_s19 = smov %s4914_s20  ;;  %s7354_s20 = smov %s5291_s5 }
 0x451   : > { %s7356_s24 = smov %s4934_s25  ;;  %s7357_s25 = smov %s4938_s26 }
 0x452   : > { %s7358_s26 = smov %s5350_s15  ;;  %s7359_s28 = smov %s4950_s29 }
 0x453   : > { %s7355_s22 = smov %s7347_s11  ;;  %s7360_s29 = smov %s7350_s6 }
 0x454   : > { %s7361_s30 = smov %s4962_s7  ;;  %s7362_s6 = smov %s4966_s8 }
 0x455   : > { %s7363_s7 = smov %s7351_s13  ;;  %s7364_s8 = smov %s7352_s17 }
 0x456   :  { %26 = sbr.rel (!%p6986_p8) target bundleno = 20 (0x14), region = 134 }
 0x45d   :  { %3830 = vsyncpa [#allocation4], 1 }
 0x45e   :  { %3832 = vsyncpa [#allocation4 + $0x1], 1 }
 0x45f   :  { %3833 = vsyncpa [#allocation7], 1 }
 0x460   :  { %3835 = vsyncpa [#allocation7 + $0x1], 1 }
 0x461   :  { %3836 = vsyncpa [#allocation10], 1 }
 0x462   :  { %3838 = vsyncpa [#allocation10 + $0x1], 1 }
 0x463   :  { %3839 = vsyncpa [#allocation5], 1 }
 0x464   :  { %3841 = vsyncpa [#allocation5 + $0x1], 1 }

</bundles_post_ra>
